<compile_context>
chip_gen: v5e
topology: v5e:2x2
jax: 0.10.0
libtpu: 0.0.40
codegen_flags: <defaults>
</compile_context>

<pallas_src>
import functools
import math

import jax
import jax.numpy as jnp
from jax import lax
from jax.experimental import pallas as pl
from jax.experimental.pallas import tpu as pltpu


# ----------------------------------------------------------------------------
# Hardware queries (robust fallbacks -- never fail at import/trace time).
# ----------------------------------------------------------------------------
def _device_kind() -> str:
    try:
        return jax.devices()[0].device_kind.lower()
    except Exception:
        return ""


def _default_tiles():
    """(tq, tk) defaults per TPU generation."""
    kind = _device_kind()
    if "v5 lite" in kind or "v5e" in kind or "v5lite" in kind:
        # v5e MXU is 4x128x128: tk>128 gains nothing, but larger tq cuts K/V
        # re-fetch and grid-step overhead.
        return 256, 128
    # v6e / v7x (and unknown): 256-wide MXU.
    return 256, 256


def _vmem_capacity_bytes() -> int:
    try:
        return int(pltpu.get_tpu_info().vmem_capacity_bytes)
    except Exception:
        kind = _device_kind()
        if "7" in kind:            # v7x: 64 MiB per TensorCore
            return 64 * 1024 * 1024
        return 128 * 1024 * 1024   # v5e / v6e


def _fit_tile(t: int, s: int) -> int:
    t = min(t, s)
    while t > 8 and s % t != 0:
        t //= 2
    return max(t, 1)


# ----------------------------------------------------------------------------
# Kernel 1: tiled-kv grid kernel (kv is the innermost "arbitrary" grid axis).
# ----------------------------------------------------------------------------
def _flash_fwd_tiled_kernel(q_ref, k_ref, v_ref, o_ref,
                            m_sc, l_sc, acc_sc,
                            *, causal, tq, tk, approx_recip):
    """One (batch, head, q-tile, kv-tile) grid step of flash attention v2."""
    qi = pl.program_id(2)
    kv = pl.program_id(3)

    @pl.when(kv == 0)
    def _():
        m_sc[...] = jnp.full_like(m_sc, -jnp.inf)
        l_sc[...] = jnp.zeros_like(l_sc)
        acc_sc[...] = jnp.zeros_like(acc_sc)

    def compute_tile():
        q = q_ref[0]                  # (tq, hd) -- scale already folded into Q
        k = k_ref[0]                  # (tk, hd)
        v = v_ref[0]                  # (tk, hd)

        # scores = Q K^T, contracted on head_dim, no explicit transpose.
        s = lax.dot_general(q, k, (((1,), (1,)), ((), ())),
                            preferred_element_type=jnp.float32)

        if causal:
            # Apply the mask only on diagonal-straddling tiles; tiles fully
            # below the diagonal skip the iota/compare/select VPU work.
            def _mask(sc):
                row = qi * tq + lax.broadcasted_iota(jnp.int32, (tq, tk), 0)
                col = kv * tk + lax.broadcasted_iota(jnp.int32, (tq, tk), 1)
                return jnp.where(row >= col, sc, -jnp.inf)

            fully_below = (kv * tk + (tk - 1)) <= (qi * tq)
            s = lax.cond(fully_below, lambda sc: sc, _mask, s)

        m_prev = m_sc[...]
        m_new = jnp.maximum(m_prev, s.max(axis=-1, keepdims=True))
        alpha = jnp.exp(m_prev - m_new)
        p = jnp.exp(s - m_new)

        l_sc[...] = alpha * l_sc[...] + p.sum(axis=-1, keepdims=True)
        acc_sc[...] = alpha * acc_sc[...] + lax.dot_general(
            p.astype(v.dtype), v, (((1,), (0,)), ((), ())),
            preferred_element_type=jnp.float32)
        m_sc[...] = m_new

    if causal:
        # Skip kv tiles that lie entirely above the diagonal (~2x less compute;
        # the BlockSpec index-clamp also skips their DMA).
        @pl.when(kv * tk <= qi * tq + (tq - 1))
        def _():
            compute_tile()
    else:
        compute_tile()

    @pl.when(kv == pl.num_programs(3) - 1)
    def _():
        inv_l = pl.reciprocal(l_sc[...], approx=approx_recip)
        o_ref[0] = (acc_sc[...] * inv_l).astype(o_ref.dtype)


# ----------------------------------------------------------------------------
# Kernel 2: whole-sequence K/V resident in VMEM, kv loop inside the kernel.
# ----------------------------------------------------------------------------
def _flash_fwd_wholekv_kernel(q_ref, k_ref, v_ref, o_ref,
                              m_sc, l_sc, acc_sc,
                              *, causal, tq, tk, seq_len, approx_recip):
    """One (batch, head, q-tile) grid step; K/V of the whole sequence in VMEM."""
    qi = pl.program_id(2)
    q = q_ref[0]                      # (tq, hd)

    m_sc[...] = jnp.full_like(m_sc, -jnp.inf)
    l_sc[...] = jnp.zeros_like(l_sc)
    acc_sc[...] = jnp.zeros_like(acc_sc)

    if causal:
        if tq % tk == 0:
            r = tq // tk
            num_kv = qi * r + r                       # last needed kv block + 1
        else:
            num_kv = (qi * tq + (tq - 1)) // tk + 1
    else:
        num_kv = seq_len // tk

    @pl.loop(0, num_kv)
    def _(kv):
        off = pl.multiple_of(kv * tk, tk)
        k = k_ref[0, pl.ds(off, tk), :]               # (tk, hd), VMEM slice
        v = v_ref[0, pl.ds(off, tk), :]

        s = lax.dot_general(q, k, (((1,), (1,)), ((), ())),
                            preferred_element_type=jnp.float32)

        if causal:
            def _mask(sc):
                row = qi * tq + lax.broadcasted_iota(jnp.int32, (tq, tk), 0)
                col = kv * tk + lax.broadcasted_iota(jnp.int32, (tq, tk), 1)
                return jnp.where(row >= col, sc, -jnp.inf)

            fully_below = (kv * tk + (tk - 1)) <= (qi * tq)
            s = lax.cond(fully_below, lambda sc: sc, _mask, s)

        m_prev = m_sc[...]
        m_new = jnp.maximum(m_prev, s.max(axis=-1, keepdims=True))
        alpha = jnp.exp(m_prev - m_new)
        p = jnp.exp(s - m_new)

        l_sc[...] = alpha * l_sc[...] + p.sum(axis=-1, keepdims=True)
        acc_sc[...] = alpha * acc_sc[...] + lax.dot_general(
            p.astype(v.dtype), v, (((1,), (0,)), ((), ())),
            preferred_element_type=jnp.float32)
        m_sc[...] = m_new

    inv_l = pl.reciprocal(l_sc[...], approx=approx_recip)
    o_ref[0] = (acc_sc[...] * inv_l).astype(o_ref.dtype)


# ----------------------------------------------------------------------------
# Wrapper
# ----------------------------------------------------------------------------
def flash_attention_pallas(q, k, v, *, num_heads, scale=1.0, causal=False,
                           tq=None, tk=None, kv_in_vmem=None):
    """q, k, v: (B, S, d_model) -> attention output (B, S, d_model).

    kv_in_vmem=None picks automatically: whole-sequence K/V per (b, h) when it
    fits the per-generation VMEM budget, else the tiled-kv grid kernel.
    """
    B, S, d_model = q.shape
    H = num_heads
    hd = d_model // H
    assert H * hd == d_model, "d_model must be divisible by num_heads"

    if scale != 1.0:
        # Scale Q once (in f32) rather than per kv tile inside the kernel.
        q = (q.astype(jnp.float32) * scale).astype(q.dtype)

    dtq, dtk = _default_tiles()
    tq = _fit_tile(dtq if tq is None else tq, S)
    tk = _fit_tile(dtk if tk is None else tk, S)
    assert S % tq == 0 and S % tk == 0, "seq_len must be divisible by the tiles"
    assert tq % 8 == 0 and tk % 8 == 0, "tiles must be sublane (8) aligned"

    itemsize = jnp.dtype(q.dtype).itemsize
    cap = _vmem_capacity_bytes()
    budget = min(cap // 2, 64 * 1024 * 1024)

    f32b = 4
    scratch_bytes = (tq * hd + 2 * tq) * f32b
    temps_bytes = 3 * tq * tk * f32b + tq * hd * f32b
    # Pipeline double-buffers each input/output block.
    wholekv_bytes = 2 * (2 * tq * hd + 2 * S * hd) * itemsize + scratch_bytes + temps_bytes
    tiled_bytes = 2 * (2 * tq * hd + 2 * tk * hd) * itemsize + scratch_bytes + temps_bytes

    if kv_in_vmem is None:
        kv_in_vmem = wholekv_bytes <= budget
    vmem_est = wholekv_bytes if kv_in_vmem else tiled_bytes

    approx_recip = jnp.dtype(q.dtype) != jnp.float32

    # Lane-dense "fused" path: slice heads out of d_model via the index_map so
    # head_dim sits on the lane axis; no split/merge-head transposes.
    fused = (hd % 128 == 0) or (H == 1)
    if fused:
        inputs = (q, k, v)
        out_shape = jax.ShapeDtypeStruct((B, S, d_model), q.dtype)

        def q_idx(b, h, qi):
            return (b, qi, h)

        def kv_idx(b, h, kvb):
            return (b, kvb, h)
    else:
        # TODO(synk): head_dim < 128 should pack 128//hd heads into one
        # lane-dense (1, tq, 128) block straight out of (B, S, d_model) and do
        # the per-head dots in-kernel; using the split-heads fallback layout.
        def split(t):
            return (t.reshape(B, S, H, hd).transpose(0, 2, 1, 3)
                     .reshape(B * H, S, hd))

        inputs = tuple(split(t) for t in (q, k, v))
        out_shape = jax.ShapeDtypeStruct((B * H, S, hd), q.dtype)

        def q_idx(b, h, qi):
            return (b * H + h, qi, 0)

        def kv_idx(b, h, kvb):
            return (b * H + h, kvb, 0)

    scratch = [pltpu.VMEM((tq, 1), jnp.float32),    # running max m_i
               pltpu.VMEM((tq, 1), jnp.float32),    # running denom l_i
               pltpu.VMEM((tq, hd), jnp.float32)]   # f32 output accumulator

    if kv_in_vmem:
        grid = (B, H, S // tq)
        in_specs = [
            pl.BlockSpec((1, tq, hd), lambda b, h, qi: q_idx(b, h, qi)),
            pl.BlockSpec((1, S, hd), lambda b, h, qi: kv_idx(b, h, 0)),
            pl.BlockSpec((1, S, hd), lambda b, h, qi: kv_idx(b, h, 0)),
        ]
        out_specs = pl.BlockSpec((1, tq, hd), lambda b, h, qi: q_idx(b, h, qi))
        kernel = functools.partial(_flash_fwd_wholekv_kernel, causal=causal,
                                   tq=tq, tk=tk, seq_len=S,
                                   approx_recip=approx_recip)
        # NOTE(v7x): leading parallel axes (B, H) feed the 2 TensorCores; keep
        # B*H >= 2 (merge B/H upstream if either is 1 and the other is odd).
        dim_sem = ("parallel", "parallel", "parallel")
        kv_refetch = 1
    else:
        if causal:
            # Clamp the kv block index for fully-masked tiles so the pipeline
            # issues no new DMA for them (compute is skipped by pl.when).
            if tq % tk == 0:
                r = tq // tk

                def clamp(qi, kvb):
                    return jnp.minimum(kvb, qi * r + (r - 1))
            else:
                def clamp(qi, kvb):
                    return jnp.minimum(kvb, (qi * tq + (tq - 1)) // tk)
        else:
            def clamp(qi, kvb):
                return kvb

        grid = (B, H, S // tq, S // tk)
        in_specs = [
            pl.BlockSpec((1, tq, hd), lambda b, h, qi, kvb: q_idx(b, h, qi)),
            pl.BlockSpec((1, tk, hd),
                         lambda b, h, qi, kvb: kv_idx(b, h, clamp(qi, kvb))),
            pl.BlockSpec((1, tk, hd),
                         lambda b, h, qi, kvb: kv_idx(b, h, clamp(qi, kvb))),
        ]
        out_specs = pl.BlockSpec((1, tq, hd),
                                 lambda b, h, qi, kvb: q_idx(b, h, qi))
        kernel = functools.partial(_flash_fwd_tiled_kernel, causal=causal,
                                   tq=tq, tk=tk, approx_recip=approx_recip)
        dim_sem = ("parallel", "parallel", "parallel", "arbitrary")
        kv_refetch = S // tq

    # Advisory cost estimate (causal halves flops/transcendentals; K/V HBM
    # traffic includes the re-fetch factor of the tiled path).
    flops = 4 * B * H * S * S * hd
    trans = B * H * S * S
    if causal:
        flops //= 2
        trans //= 2
        kv_refetch = max(1, kv_refetch // 2)
    cost = pl.CostEstimate(
        flops=int(flops),
        transcendentals=int(trans),
        bytes_accessed=int(itemsize * (2 * B * S * d_model
                                       + 2 * B * S * d_model * kv_refetch)))

    cp_kwargs = dict(dimension_semantics=dim_sem)
    if vmem_est > 16 * 1024 * 1024:
        # Raise the scoped-VMEM ceiling only when the tiles actually need it.
        cp_kwargs["vmem_limit_bytes"] = int(min(vmem_est * 5 // 4, cap * 3 // 4))

    out = pl.pallas_call(
        kernel,
        out_shape=out_shape,
        grid_spec=pltpu.PrefetchScalarGridSpec(
            num_scalar_prefetch=0,
            grid=grid,
            in_specs=in_specs,
            out_specs=out_specs,
            scratch_shapes=scratch,
        ),
        compiler_params=pltpu.CompilerParams(**cp_kwargs),
        cost_estimate=cost,
    )(*inputs)

    if not fused:
        out = (out.reshape(B, H, S, hd).transpose(0, 2, 1, 3)
                  .reshape(B, S, d_model))
    return out


def flash_attention_v2_forward(x, w_q, w_k, w_v, w_o, *, num_heads,
                               causal=False, block_size=None,
                               compute_dtype=None, kv_in_vmem=None):
    """Full FlashAttentionV2.forward (eval mode: dropout is identity).

    compute_dtype=jnp.bfloat16 feeds the MXU with bf16 Q/K/V -- recommended on
    ALL generations (v5e's MXU is bf16-native too); softmax state and
    accumulation stay f32 inside the kernel.  block_size=None picks
    generation-aware tiles automatically.
    """
    B, S, d_model = x.shape
    head_dim = d_model // num_heads
    scale = 1.0 / math.sqrt(head_dim)

    # Projections (PyTorch Linear: y = x @ W^T).  Fold the softmax scale into
    # W_q once in f32: no per-kv-tile VPU rescale in the kernel, and no extra
    # rounding from scaling an already-bf16 Q.
    q = x @ (w_q * scale).T
    k = x @ w_k.T
    v = x @ w_v.T
    if compute_dtype is not None:
        q, k, v = (t.astype(compute_dtype) for t in (q, k, v))

    out = flash_attention_pallas(q, k, v, num_heads=num_heads, scale=1.0,
                                 causal=causal, tq=block_size, tk=block_size,
                                 kv_in_vmem=kv_in_vmem)
    # TODO(synk): dropout skipped (module applies it only in training mode).
    return out.astype(x.dtype) @ w_o.T


def _reference_forward(x, w_q, w_k, w_v, w_o, *, num_heads, causal=False):
    """Pure-JAX reference for the numerical check."""
    B, S, d_model = x.shape
    head_dim = d_model // num_heads
    scale = 1.0 / math.sqrt(head_dim)
    q = (x @ w_q.T).reshape(B, S, num_heads, head_dim).transpose(0, 2, 1, 3)
    k = (x @ w_k.T).reshape(B, S, num_heads, head_dim).transpose(0, 2, 1, 3)
    v = (x @ w_v.T).reshape(B, S, num_heads, head_dim).transpose(0, 2, 1, 3)
    s = jnp.einsum("bhqd,bhkd->bhqk", q, k) * scale
    if causal:
        mask = jnp.tril(jnp.ones((S, S), dtype=bool))
        s = jnp.where(mask, s, -jnp.inf)
    p = jax.nn.softmax(s, axis=-1)
    o = jnp.einsum("bhqk,bhkd->bhqd", p, v)
    o = o.transpose(0, 2, 1, 3).reshape(B, S, d_model)
    return o @ w_o.T


if __name__ == "__main__":
    # Shapes consistent with the module: d_model=256, num_heads=2
    # -> head_dim=128 (power of 2, lane-dense), batch=2, seq=256.
    batch, seq, d_model, num_heads = 2, 256, 256, 2

    key = jax.random.PRNGKey(0)
    kx, kq, kk, kv_, ko = jax.random.split(key, 5)

    # PyTorch Linear default init: U(-1/sqrt(in), 1/sqrt(in)).
    bound = 1.0 / math.sqrt(d_model)
    w_q = jax.random.uniform(kq, (d_model, d_model), jnp.float32, -bound, bound)
    w_k = jax.random.uniform(kk, (d_model, d_model), jnp.float32, -bound, bound)
    w_v = jax.random.uniform(kv_, (d_model, d_model), jnp.float32, -bound, bound)
    w_o = jax.random.uniform(ko, (d_model, d_model), jnp.float32, -bound, bound)

    x = jax.random.normal(kx, (batch, seq, d_model), jnp.float32)

    ref = jax.block_until_ready(_reference_forward(
        x, w_q, w_k, w_v, w_o, num_heads=num_heads, causal=False))
    ref_c = jax.block_until_ready(_reference_forward(
        x, w_q, w_k, w_v, w_o, num_heads=num_heads, causal=True))

    # 1) f32, non-causal, auto path (whole-sequence K/V in VMEM at this S).
    out = jax.block_until_ready(flash_attention_v2_forward(
        x, w_q, w_k, w_v, w_o, num_heads=num_heads, causal=False))
    assert out.shape == (batch, seq, d_model)
    assert jnp.allclose(out, ref, atol=2e-3, rtol=2e-3), (
        f"non-causal (wholekv) max abs err = {jnp.max(jnp.abs(out - ref))}")

    # 2) f32, causal, auto path (exercises in-kernel kv-loop bound + cond mask).
    out_c = jax.block_until_ready(flash_attention_v2_forward(
        x, w_q, w_k, w_v, w_o, num_heads=num_heads, causal=True))
    assert jnp.allclose(out_c, ref_c, atol=2e-3, rtol=2e-3), (
        f"causal (wholekv) max abs err = {jnp.max(jnp.abs(out_c - ref_c))}")

    # 3) f32, non-causal, forced tiled-kv grid path (128x128 tiles).
    out_t = jax.block_until_ready(flash_attention_v2_forward(
        x, w_q, w_k, w_v, w_o, num_heads=num_heads, causal=False,
        block_size=128, kv_in_vmem=False))
    assert jnp.allclose(out_t, ref, atol=2e-3, rtol=2e-3), (
        f"non-causal (tiled) max abs err = {jnp.max(jnp.abs(out_t - ref))}")

    # 4) f32, causal, forced tiled-kv path (exercises the kv-index DMA clamp,
    #    diagonal-only masking, and the masked-tile compute skip).
    out_tc = jax.block_until_ready(flash_attention_v2_forward(
        x, w_q, w_k, w_v, w_o, num_heads=num_heads, causal=True,
        block_size=128, kv_in_vmem=False))
    assert jnp.allclose(out_tc, ref_c, atol=2e-3, rtol=2e-3), (
        f"causal (tiled) max abs err = {jnp.max(jnp.abs(out_tc - ref_c))}")

    # 5) bf16 MXU inputs (recommended on all generations), f32 softmax/accum.
    out_bf = jax.block_until_ready(flash_attention_v2_forward(
        x, w_q, w_k, w_v, w_o, num_heads=num_heads, causal=False,
        compute_dtype=jnp.bfloat16))
    assert jnp.allclose(out_bf, ref, atol=3e-2, rtol=3e-2), (
        f"bf16 max abs err = {jnp.max(jnp.abs(out_bf - ref))}")

    print("KERNEL_OK")
</pallas_src>

<mosaic_0001>
module attributes {stable_mosaic.version = 11 : i64} {
  func.func @_flash_fwd_wholekv_kernel(%arg0: i32, %arg1: i32, %arg2: i32, %arg3: memref<1x256x128xf32, #tpu.memory_space<vmem>>, %arg4: memref<1x256x128xf32, #tpu.memory_space<vmem>>, %arg5: memref<1x256x128xf32, #tpu.memory_space<vmem>>, %arg6: memref<1x256x128xf32, #tpu.memory_space<vmem>>, %arg7: memref<256x1xf32, #tpu.memory_space<vmem>>, %arg8: memref<256x1xf32, #tpu.memory_space<vmem>>, %arg9: memref<256x128xf32, #tpu.memory_space<vmem>>) attributes {dimension_semantics = [#tpu.dimension_semantics<parallel>, #tpu.dimension_semantics<parallel>, #tpu.dimension_semantics<parallel>], iteration_bounds = array<i64: 2, 2, 1>, scalar_prefetch = 0 : i64, scratch_operands = 3 : i64, tpu.core_type = #tpu.core_type<tc>, window_params = [{transform_indices = @transform_0, window_bounds = array<i64: 1, 256, 128>}, {transform_indices = @transform_1, window_bounds = array<i64: 1, 256, 128>}, {transform_indices = @transform_2, window_bounds = array<i64: 1, 256, 128>}, {transform_indices = @transform_3, window_bounds = array<i64: 1, 256, 128>}]} {
    %c0 = arith.constant 0 : index
    %c0_0 = arith.constant 0 : index
    %c0_1 = arith.constant 0 : index
    %0 = vector.load %arg3[%c0, %c0_0, %c0_1] : memref<1x256x128xf32, #tpu.memory_space<vmem>>, vector<1x256x128xf32>
    %1 = vector.shape_cast %0 : vector<1x256x128xf32> to vector<256x128xf32>
    %cst = arith.constant 0xFF800000 : f32
    %2 = vector.broadcast %cst : f32 to vector<256x1xf32>
    %c0_2 = arith.constant 0 : index
    %c0_3 = arith.constant 0 : index
    %3 = vector.load %arg7[%c0_2, %c0_3] : memref<256x1xf32, #tpu.memory_space<vmem>>, vector<256x1xf32>
    tpu.vector_store %arg7[%c0_2, %c0_3], %2 {strides = array<i32>} : memref<256x1xf32, #tpu.memory_space<vmem>>, vector<256x1xf32>,
    %cst_4 = arith.constant 0.000000e+00 : f32
    %4 = vector.broadcast %cst_4 : f32 to vector<256x1xf32>
    %c0_5 = arith.constant 0 : index
    %c0_6 = arith.constant 0 : index
    %5 = vector.load %arg8[%c0_5, %c0_6] : memref<256x1xf32, #tpu.memory_space<vmem>>, vector<256x1xf32>
    tpu.vector_store %arg8[%c0_5, %c0_6], %4 {strides = array<i32>} : memref<256x1xf32, #tpu.memory_space<vmem>>, vector<256x1xf32>,
    %cst_7 = arith.constant 0.000000e+00 : f32
    %6 = vector.broadcast %cst_7 : f32 to vector<256x128xf32>
    %c0_8 = arith.constant 0 : index
    %c0_9 = arith.constant 0 : index
    %7 = vector.load %arg9[%c0_8, %c0_9] : memref<256x128xf32, #tpu.memory_space<vmem>>, vector<256x128xf32>
    tpu.vector_store %arg9[%c0_8, %c0_9], %6 {strides = array<i32>} : memref<256x128xf32, #tpu.memory_space<vmem>>, vector<256x128xf32>,
    %c0_i32 = arith.constant 0 : i32
    %c1_i32 = arith.constant 1 : i32
    %8 = arith.muli %c0_i32, %c1_i32 : i32
    %c0_i32_10 = arith.constant 0 : i32
    %9 = arith.addi %c0_i32_10, %8 : i32
    %c256_i32 = arith.constant 256 : i32
    %10 = arith.muli %9, %c256_i32 : i32
    %11 = tpu.assume_multiple %10, 256 : i32
    %c0_11 = arith.constant 0 : index
    %12 = arith.index_cast %11 : i32 to index
    %c0_12 = arith.constant 0 : index
    %13 = vector.load %arg4[%c0_11, %12, %c0_12] : memref<1x256x128xf32, #tpu.memory_space<vmem>>, vector<1x256x128xf32>
    %14 = vector.shape_cast %13 : vector<1x256x128xf32> to vector<256x128xf32>
    %c0_13 = arith.constant 0 : index
    %15 = arith.index_cast %11 : i32 to index
    %c0_14 = arith.constant 0 : index
    %16 = vector.load %arg5[%c0_13, %15, %c0_14] : memref<1x256x128xf32, #tpu.memory_space<vmem>>, vector<1x256x128xf32>
    %17 = vector.shape_cast %16 : vector<1x256x128xf32> to vector<256x128xf32>
    %cst_15 = arith.constant dense<0.000000e+00> : vector<256x256xf32>
    %18 = tpu.matmul %1, %14, %cst_15 {dimension_numbers = #tpu.dot_dimension_numbers<[1], [1], [0], [0], [0, 0, 1, 0], [], []>} : vector<256x128xf32>, vector<256x128xf32>, vector<256x256xf32> -> vector<256x256xf32>
    %c0_16 = arith.constant 0 : index
    %c0_17 = arith.constant 0 : index
    %19 = vector.load %arg7[%c0_16, %c0_17] : memref<256x1xf32, #tpu.memory_space<vmem>>, vector<256x1xf32>
    %cst_18 = arith.constant dense<0xFF800000> : vector<256xf32>
    %20 = vector.multi_reduction <maximumf>, %18, %cst_18 [1] : vector<256x256xf32> to vector<256xf32>
    %21 = vector.shape_cast %20 : vector<256xf32> to vector<256x1xf32>
    %22 = arith.maximumf %19, %21 : vector<256x1xf32>
    %23 = arith.subf %19, %22 : vector<256x1xf32>
    %24 = math.exp %23 : vector<256x1xf32>
    %25 = vector.broadcast %22 : vector<256x1xf32> to vector<256x256xf32>
    %26 = arith.subf %18, %25 : vector<256x256xf32>
    %27 = math.exp %26 : vector<256x256xf32>
    %c0_19 = arith.constant 0 : index
    %c0_20 = arith.constant 0 : index
    %28 = vector.load %arg8[%c0_19, %c0_20] : memref<256x1xf32, #tpu.memory_space<vmem>>, vector<256x1xf32>
    %29 = arith.mulf %24, %28 : vector<256x1xf32>
    %cst_21 = arith.constant dense<0.000000e+00> : vector<256xf32>
    %30 = vector.multi_reduction <add>, %27, %cst_21 [1] : vector<256x256xf32> to vector<256xf32>
    %31 = vector.shape_cast %30 : vector<256xf32> to vector<256x1xf32>
    %32 = arith.addf %29, %31 : vector<256x1xf32>
    %c0_22 = arith.constant 0 : index
    %c0_23 = arith.constant 0 : index
    %33 = vector.load %arg8[%c0_22, %c0_23] : memref<256x1xf32, #tpu.memory_space<vmem>>, vector<256x1xf32>
    tpu.vector_store %arg8[%c0_22, %c0_23], %32 {strides = array<i32>} : memref<256x1xf32, #tpu.memory_space<vmem>>, vector<256x1xf32>,
    %c0_24 = arith.constant 0 : index
    %c0_25 = arith.constant 0 : index
    %34 = vector.load %arg9[%c0_24, %c0_25] : memref<256x128xf32, #tpu.memory_space<vmem>>, vector<256x128xf32>
    %35 = vector.broadcast %24 : vector<256x1xf32> to vector<256x128xf32>
    %36 = arith.mulf %35, %34 : vector<256x128xf32>
    %cst_26 = arith.constant dense<0.000000e+00> : vector<256x128xf32>
    %37 = tpu.matmul %27, %17, %cst_26 {dimension_numbers = #tpu.dot_dimension_numbers<[1], [0], [0], [1], [0, 0, 1, 1], [], []>} : vector<256x256xf32>, vector<256x128xf32>, vector<256x128xf32> -> vector<256x128xf32>
    %38 = arith.addf %36, %37 : vector<256x128xf32>
    %c0_27 = arith.constant 0 : index
    %c0_28 = arith.constant 0 : index
    %39 = vector.load %arg9[%c0_27, %c0_28] : memref<256x128xf32, #tpu.memory_space<vmem>>, vector<256x128xf32>
    tpu.vector_store %arg9[%c0_27, %c0_28], %38 {strides = array<i32>} : memref<256x128xf32, #tpu.memory_space<vmem>>, vector<256x128xf32>,
    %c0_29 = arith.constant 0 : index
    %c0_30 = arith.constant 0 : index
    %40 = vector.load %arg7[%c0_29, %c0_30] : memref<256x1xf32, #tpu.memory_space<vmem>>, vector<256x1xf32>
    tpu.vector_store %arg7[%c0_29, %c0_30], %22 {strides = array<i32>} : memref<256x1xf32, #tpu.memory_space<vmem>>, vector<256x1xf32>,
    %c1_i32_31 = arith.constant 1 : i32
    %c0_32 = arith.constant 0 : index
    %c0_33 = arith.constant 0 : index
    %41 = vector.load %arg8[%c0_32, %c0_33] : memref<256x1xf32, #tpu.memory_space<vmem>>, vector<256x1xf32>
    %42 = tpu.reciprocal %41 : vector<256x1xf32> -> vector<256x1xf32>
    %c0_34 = arith.constant 0 : index
    %c0_35 = arith.constant 0 : index
    %43 = vector.load %arg9[%c0_34, %c0_35] : memref<256x128xf32, #tpu.memory_space<vmem>>, vector<256x128xf32>
    %44 = vector.broadcast %42 : vector<256x1xf32> to vector<256x128xf32>
    %45 = arith.mulf %43, %44 : vector<256x128xf32>
    %c0_36 = arith.constant 0 : index
    %c0_37 = arith.constant 0 : index
    %c0_38 = arith.constant 0 : index
    %46 = vector.load %arg6[%c0_36, %c0_37, %c0_38] : memref<1x256x128xf32, #tpu.memory_space<vmem>>, vector<1x256x128xf32>
    %47 = vector.shape_cast %46 : vector<1x256x128xf32> to vector<256x128xf32>
    %48 = vector.shape_cast %45 : vector<256x128xf32> to vector<1x256x128xf32>
    tpu.vector_store %arg6[%c0_36, %c0_37, %c0_38], %48 {strides = array<i32>} : memref<1x256x128xf32, #tpu.memory_space<vmem>>, vector<1x256x128xf32>,
    return
  }
  func.func @transform_0(%arg0: i32, %arg1: i32, %arg2: i32) -> (i32, i32, i32) {
    %c0_i32 = arith.constant 0 : i32
    return %arg0, %arg2, %arg1 : i32, i32, i32
  }
  func.func @transform_1(%arg0: i32, %arg1: i32, %arg2: i32) -> (i32, i32, i32) {
    %c0_i32 = arith.constant 0 : i32
    %c0_i32_0 = arith.constant 0 : i32
    return %arg0, %c0_i32, %arg1 : i32, i32, i32
  }
  func.func @transform_2(%arg0: i32, %arg1: i32, %arg2: i32) -> (i32, i32, i32) {
    %c0_i32 = arith.constant 0 : i32
    %c0_i32_0 = arith.constant 0 : i32
    return %arg0, %c0_i32, %arg1 : i32, i32, i32
  }
  func.func @transform_3(%arg0: i32, %arg1: i32, %arg2: i32) -> (i32, i32, i32) {
    %c0_i32 = arith.constant 0 : i32
    return %arg0, %arg2, %arg1 : i32, i32, i32
  }
}

</mosaic_0001>

<bundles_post_ra>
// kernel: tpu_custom_call.1
= control target key start
LH: loop header
LB: loop body
LE: loop exit
PB: predicated region body
PF: predicated region fallthrough
CT: control target
= control target key end

     0   :  { %s5335_s0 = inlined_call_operand.hbm [shape: f32[2,256,256], index: 0, kind: input, shape index: {}]   ;;  %s5336_s1 = inlined_call_operand.hbm [shape: f32[2,256,256], index: 1, kind: input, shape index: {}]   ;;  %s5337_s2 = inlined_call_operand.hbm [shape: f32[2,256,256], index: 2, kind: input, shape index: {}]   ;;  %s5338_s3 = inlined_call_operand.hbm [shape: f32[2,256,256], index: 3, kind: output, shape index: {}]  }
   0x1   :  { %5397 = sst [smem:[#allocation99_spill]] %s5336_s1 }
   0x2   :  { %8 = vsyncpa [#allocation6], 0 }
   0x3   :  { %10 = vsyncpa [#allocation6 + $0x1], 0 }
   0x4   :  { %11 = vsyncpa [#allocation9], 0 }
   0x5   :  { %13 = vsyncpa [#allocation9 + $0x1], 0 }
   0x6   :  { %14 = vsyncpa [#allocation7], 0 }
   0x7   :  { %16 = vsyncpa [#allocation7 + $0x1], 0  ;;  %s3608_s12 = smov 0   ;;  %s3610_s13 = smov 0  }
   0x8   :  { %s3612_s14 = smov 0   ;;  %s3614_s15 = smov 0  }
   0x9   :  { %s3616_s16 = smov 0   ;;  %s3618_s17 = smov 0  }
   0xa   :  { %s3620_s18 = smov 0   ;;  %s3622_s19 = smov 0  }
   0xb LB: > { %5398 = sst [smem:[#allocation15_spill]] %s3549_s12  ;;  %s3649_s20 = sadd.s32 4294967295, %s3577_s19   ;;  %s3577_s19 = sphi %s3622_s19, %s22_s19   ;;  %s3573_s18 = sphi %s3620_s18, %s5639_s18   ;;  %s3569_s17 = sphi %s3618_s17, %s5638_s17   ;;  %s3565_s16 = sphi %s3616_s16, %s5637_s16   ;;  %s3561_s15 = sphi %s3614_s15, %s5636_s15   ;;  %s3557_s14 = sphi %s3612_s14, %s5635_s14   ;;  %s3553_s13 = sphi %s3610_s13, %s5641_s13   ;;  %s3549_s12 = sphi %s3608_s12, %s5640_s12  }
   0xc   : > { %5399 = sst [smem:[#allocation16_spill]] %s3557_s14  ;;  %s3007_s21 = sadd.s32 4294967294, %s3577_s19  }
   0xd   : > { %5400 = sst [smem:[#allocation17_spill]] %s3569_s17  ;;  %s37_s22 = sadd.s32 1, %s3569_s17 }
   0xe   : > { %5401 = sst [smem:[#allocation18_spill]] %s3573_s18  ;;  %s41_s23 = sadd.s32 1, %s3573_s18 }
   0xf   : > { %5402 = sst [smem:[#allocation19_spill]] %s3577_s19  ;;  %p39_p0 = scmp.ge.s32.totalorder %s37_s22, 2 }
  0x10   : > { %s52_s24 = sadd.s32 1, %s3557_s14  ;;  %p59_p1 = scmp.ne.s32.totalorder %s3557_s14, %s3553_s13 }
  0x11   : > { %p60_p2 = scmp.eq.s32.totalorder %s3577_s19, 0  ;;  %s5643_s22 = smov (%p39_p0, %s37_s22), 0 }
  0x12   : > { %5403 = sst [smem:[#allocation20_spill]] %s5643_s22  ;;  %s5645_s23 = smov (!%p39_p0, %s41_s23), %s3573_s18 }
  0x13   : > { %s48_s25 = ssub.s32 %s3569_s17, %s5643_s22  ;;  %p3663_p3 = por %p60_p2, %p59_p1 }
  0x14   : > { %p43_p4 = scmp.ge.s32.totalorder %s5645_s23, 2  ;;  %p65_p5 = scmp.ne.s32.totalorder %s3553_s13, %s3549_s12 }
  0x15   : > { %p66_p6 = scmp.eq.s32.totalorder %s3649_s20, 0  ;;  %p149_p7 = scmp.eq.s32.totalorder %s3649_s20, 3 }
  0x16   : > { %s5647_s23 = smov (%p43_p4, %s5645_s23), 0  ;;  %p155_p10 = scmp.eq.s32.totalorder %s3007_s21, 3 }
  0x17   : > { %5405 = sst [smem:[#allocation21_spill]] %s5647_s23  ;;  %p3673_p8 = por %p66_p6, %p65_p5 }
  0x18   : > { %p3677_p9 = por %p149_p7, %p59_p1  ;;  %s45_s29 = ssub.s32 %s3573_s18, %s5647_s23 }
  0x19   : > { %s49_s30 = sor.u32 %s48_s25, %s45_s29  ;;  %p3683_p12 = por %p155_p10, %p65_p5 }
  0x1a   : > { %p50_p11 = scmp.eq.s32.totalorder %s49_s30, 0  ;;  %p3051_p13 = scmp.lt.s32.totalorder %s3577_s19, 4 }
  0x1b   : > { %s5408_s4 = scalar_select %p3683_p12, 1, 0 }
  0x1c   : > { %s175_s5 = sand.u32 1, %s3557_s14   ;;  %s3011_s8 = sshll.u32 %s3573_s18, 6 }
  0x1d   : > { %5409 = sst [smem:[#allocation22_spill]] %s5408_s4  ;;  %s3692_s7 = sshll.u32 %s175_s5, 8 }
  0x1e   : > { %s3690_s6 = scalar_select %p50_p11, %s3557_s14, %s52_s24  }
  0x1f   : > { %s186_s9 = sadd.s32 %s3569_s17, %s3011_s8  ;;  %p3698_p0 = pnand %p3051_p13, %p3663_p3 }
  0x20   : > { %5410 = sst [smem:[#allocation23_spill]] %s3690_s6  ;;  %s3012_s11 = sshll.u32 %s186_s9, 3 }
  0x21   : > { %s201_s21 = sand.u32 1, %s3577_s19   ;;  %s5412_s1 = sld [smem:[#allocation99_spill]] }
  0x22   : > { %s205_s30 = scalar_lea.vmem [#allocation8], %s3692_s7  ;;  %p3019_p1 = scmp.ge.s32.totalorder %s3577_s19, 1 }
  0x23   : > { %s214_s23 = sshll.u32 %s205_s30, 4  ;;  %s202_s26 = scalar_lea.sflag [#allocation9], %s201_s21  ;;  %s215_s23 = int_to_ptr.vmem [resolvable:$true] %s214_s23 }
  0x24   : > { %s3579_s8 = smov 256   ;;  %s3580_s18 = smov 128  }
  0x25   : > { %s3581_s17 = smov 8   ;;  %p245_p2 = scmp.lt.s32.totalorder %s3577_s19, 5 }
  0x26   : > { %s179_s30 = scalar_lea.vmem [#allocation5], %s3692_s7  ;;  %s176_s21 = scalar_lea.sflag [#allocation6], %s175_s5 }
  0x27   : > { %s211_s24 = scalar_lea.hbm %s5412_s1, %s3012_s11  ;;  %p3711_p3 = pnand %p3019_p1, %p245_p2 }
  0x28   : > { %s212_s22 = sshll.u32 %s211_s24, 4  ;;  %s188_s24 = scalar_lea.hbm %s5335_s0, %s3012_s11  ;;  %s213_s22 = int_to_ptr.hbm [resolvable:$true] %s212_s22 }
  0x29   : > { %3043 = dma.hbm_to_vmem [thread:$0]  (!%p3698_p0), %s213_s22, 4096, %s215_s23, %s202_s26, %s3579_s8, %s3580_s18, %s3581_s17  }
  0x2a   : > { %s191_s1 = sshll.u32 %s179_s30, 4  ;;  %s189_s6 = sshll.u32 %s188_s24, 4  ;;  %s192_s1 = int_to_ptr.vmem [resolvable:$true] %s191_s1  ;;  %s190_s6 = int_to_ptr.hbm [resolvable:$true] %s189_s6 }
  0x2b   : > { %3040 = dma.hbm_to_vmem [thread:$0]  (!%p3698_p0), %s190_s6, 4096, %s192_s1, %s176_s21, %s3579_s8, %s3580_s18, %s3581_s17  }
  0x2c   : > { %s234_s23 = scalar_lea.hbm %s5337_s2, %s3012_s11  ;;  %s228_s4 = scalar_lea.vmem [#allocation10], %s3692_s7 }
  0x2d   : > { %s237_s12 = sshll.u32 %s228_s4, 4  ;;  %s235_s19 = sshll.u32 %s234_s23, 4  ;;  %s238_s12 = int_to_ptr.vmem [resolvable:$true] %s237_s12  ;;  %s236_s19 = int_to_ptr.hbm [resolvable:$true] %s235_s19 }
  0x2e   : > { %3046 = dma.hbm_to_vmem [thread:$0]  (!%p3698_p0), %s236_s19, 4096, %s238_s12, %s202_s26, %s3579_s8, %s3580_s18, %s3581_s17  }
  0x2f   : > { %249 = sbr.rel (%p3711_p3) target bundleno = 1738 (0x6ca), region = 32 }
  0x34   : > { %s3730_s25 = sand.u32 1, %s3553_s13  }
  0x35   : > { %s3733_s1 = sshll.u32 %s3730_s25, 8  ;;  %s252_s14 = scalar_lea.sflag [#allocation6], %s3730_s25 }
  0x36   : > { %s3737_s5 = scalar_lea.vmem [#allocation5], %s3733_s1 }
  0x37   : > { %3536 = dma.done.wait (%p3673_p8), %s252_s14, 4096  }
  0x38   : > { %3538 = vsyncadd (%p3673_p8), %s252_s14, 4294963200  ;;  %s261_s12 = sand.u32 1, %s3649_s20   ;;  %s3745_s18 = scalar_lea.vmem [#allocation8], %s3733_s1 }
  0x39   : > { %s262_s17 = scalar_lea.sflag [#allocation9], %s261_s12 }
  0x3a   : > { %3540 = dma.done.wait (%p3673_p8), %s262_s17, 8192  }
  0x3b   : > { %3542 = vsyncadd (%p3673_p8), %s262_s17, 4294959104  ;;  %v455_v0 = vld [vmem:[%s3745_s18 + $0x78] sm:$0xff]  ;;  %v454_v2 = vld [vmem:[%s3745_s18 + $0x70] sm:$0xff]  ;;  %vm343_vm0 = vcmask 7168   ;;  %s4083_s19 = scalar_lea.vmem [#allocation10], %s3733_s1  ;;  %s4905_s20 = scalar_lea.vmem [#allocation11], %s3733_s1 }
  0x3c   : > { %v471_v1 = vld [vmem:[%s3745_s18 + $0xf8] sm:$0xff]  ;;  %504 = vmatpush.xpose.msra.mxu0 %v455_v0  ;;  %v470_v3 = vld [vmem:[%s3745_s18 + $0xf0] sm:$0xff]  ;;  %v453_v4 = vld [vmem:[%s3745_s18 + $0x68] sm:$0xff]  ;;  %s3025_s27 = sshll.u32 %s3565_s16, 6  ;;  %s2861_s26 = sshll.u32 %s4905_s20, 4  ;;  %s2862_s26 = int_to_ptr.vmem [resolvable:$true] %s2861_s26 }
  0x3d   : > { %617 = vmatpush.xpose.msra.mxu1 %v471_v1  ;;  %v469_v5 = vld [vmem:[%s3745_s18 + $0xe8] sm:$0xff]  ;;  %v452_v6 = vld [vmem:[%s3745_s18 + $0x60] sm:$0xff]  ;;  %v451_v8 = vld [vmem:[%s3745_s18 + $0x58] sm:$0xff]  ;;  %s2858_s4 = sadd.s32 %s3561_s15, %s3025_s27  ;;  %s2845_s16 = scalar_lea.sflag [#allocation7], %s3730_s25 }
  0x3e   : > { %v468_v7 = vld [vmem:[%s3745_s18 + $0xe0] sm:$0xff]  ;;  %v467_v9 = vld [vmem:[%s3745_s18 + $0xd8] sm:$0xff]  ;;  %v450_v10 = vld [vmem:[%s3745_s18 + $0x50] sm:$0xff]  ;;  %s3026_s6 = sshll.u32 %s2858_s4, 3  ;;  %s3495_s30 = scalar_lea.hbm %s5338_s3, 1024 }
  0x3f   : > { %v466_v11 = vld [vmem:[%s3745_s18 + $0xd0] sm:$0xff]  ;;  %v449_v12 = vld [vmem:[%s3745_s18 + $0x48] sm:$0xff]  ;;  %v448_v14 = vld [vmem:[%s3745_s18 + $0x40] sm:$0xff]  ;;  %s2860_s11 = scalar_lea.hbm %s5338_s3, %s3026_s6 }
  0x40   : > { %505 = vmatpush.xpose.msra.mxu0 %v454_v2  ;;  %v465_v13 = vld [vmem:[%s3745_s18 + $0xc8] sm:$0xff]  ;;  %v464_v15 = vld [vmem:[%s3745_s18 + $0xc0] sm:$0xff]  ;;  %v447_v16 = vld [vmem:[%s3745_s18 + $0x38] sm:$0xff]  ;;  %s2863_s8 = sshll.u32 %s2860_s11, 4  ;;  %s2864_s8 = int_to_ptr.hbm [resolvable:$true] %s2863_s8 }
  0x41   : > { %618 = vmatpush.xpose.msra.mxu1 %v470_v3  ;;  %v463_v17 = vld [vmem:[%s3745_s18 + $0xb8] sm:$0xff]  ;;  %v446_v18 = vld [vmem:[%s3745_s18 + $0x30] sm:$0xff]  ;;  %v445_v20 = vld [vmem:[%s3745_s18 + $0x28] sm:$0xff]  ;;  %s3489_s15 = sshra.s32 %s2864_s8, 4  ;;  %s3490_s15 = int_to_ptr.hbm [resolvable:$true] %s3489_s15 }
  0x42   : > { %v462_v19 = vld [vmem:[%s3745_s18 + $0xb0] sm:$0xff]  ;;  %v461_v21 = vld [vmem:[%s3745_s18 + $0xa8] sm:$0xff]  ;;  %v444_v22 = vld [vmem:[%s3745_s18 + $0x20] sm:$0xff]  ;;  %s3491_s9 = scalar_lea.hbm %s3490_s15, 256  ;;  %p3496_p7 = scmp.lt.s32.totalorder %s3490_s15, %s5338_s3 }
  0x43   : > { %v460_v23 = vld [vmem:[%s3745_s18 + $0xa0] sm:$0xff]  ;;  %v443_v24 = vld [vmem:[%s3745_s18 + $0x18] sm:$0xff]  ;;  %v442_v26 = vld [vmem:[%s3745_s18 + $0x10] sm:$0xff]  ;;  %p3492_p4 = scmp.ne.s32.totalorder %s3490_s15, %s3491_s9  ;;  %p3497_p8 = scmp.lt.s32.totalorder %s3495_s30, %s3491_s9 }
  0x44   : > { %506 = vmatpush.xpose.msra.mxu0 %v453_v4  ;;  %v459_v25 = vld [vmem:[%s3745_s18 + $0x98] sm:$0xff]  ;;  %v458_v27 = vld [vmem:[%s3745_s18 + $0x90] sm:$0xff]  ;;  %v441_v28 = vld [vmem:[%s3745_s18 + $0x8] sm:$0xff] }
  0x45   : > { %619 = vmatpush.xpose.msra.mxu1 %v469_v5  ;;  %v457_v29 = vld [vmem:[%s3745_s18 + $0x88] sm:$0xff]  ;;  %v440_v30 = vld [vmem:[%s3745_s18] sm:$0xff]  ;;  %v313_v34 = vld [vmem:[%s3737_s5 + $0x10] sm:$0xff]  ;;  %p3493_p5 = pnand %p3492_p4, %p3677_p9  ;;  %p3498_p10 = por %p3497_p8, %p3496_p7 }
  0x46   : > { %v456_v31 = vld [vmem:[%s3745_s18 + $0x80] sm:$0xff]  ;;  %v312_v33 = vld [vmem:[%s3737_s5 + $0x8] sm:$0xff]  ;;  %v314_v35 = vld [vmem:[%s3737_s5 + $0x18] sm:$0xff] }
  0x47   : > { %v311_v32 = vld [vmem:[%s3737_s5] sm:$0xff]  ;;  %v316_v37 = vld [vmem:[%s3737_s5 + $0x28] sm:$0xff]  ;;  %v317_v38 = vld [vmem:[%s3737_s5 + $0x30] sm:$0xff]  ;;  %p3494_p6 = pneg %p3493_p5 }
  0x48   : > { %507 = vmatpush.xpose.msra.mxu0 %v452_v6  ;;  %v315_v36 = vld [vmem:[%s3737_s5 + $0x20] sm:$0xff]  ;;  %v318_v39 = vld [vmem:[%s3737_s5 + $0x38] sm:$0xff]  ;;  %v320_v41 = vld [vmem:[%s3737_s5 + $0x48] sm:$0xff] }
  0x49   : > { %620 = vmatpush.xpose.msra.mxu1 %v468_v7  ;;  %v319_v40 = vld [vmem:[%s3737_s5 + $0x40] sm:$0xff]  ;;  %v321_v42 = vld [vmem:[%s3737_s5 + $0x50] sm:$0xff]  ;;  %v322_v43 = vld [vmem:[%s3737_s5 + $0x58] sm:$0xff]  ;;  %p3499_p11 = pnand %p3498_p10, %p3494_p6 }
  0x4a   : > { %v323_v44 = vld [vmem:[%s3737_s5 + $0x60] sm:$0xff]  ;;  %v324_v45 = vld [vmem:[%s3737_s5 + $0x68] sm:$0xff]  ;;  %v325_v46 = vld [vmem:[%s3737_s5 + $0x70] sm:$0xff] }
  0x4b   : > { %v326_v47 = vld [vmem:[%s3737_s5 + $0x78] sm:$0xff]  ;;  %v327_v50 = vld [vmem:[%s3737_s5 + $0x80] sm:$0xff]  ;;  %v328_v57 = vld [vmem:[%s3737_s5 + $0x88] sm:$0xff] }
  0x4c   : > { %508 = vmatpush.xpose.msra.mxu0 %v451_v8  ;;  %v329_v61 = vld [vmem:[%s3737_s5 + $0x90] sm:$0xff]  ;;  %v330_v5 = vld [vmem:[%s3737_s5 + $0x98] sm:$0xff] }
  0x4d   : > { %621 = vmatpush.xpose.msra.mxu1 %v467_v9 }
  0x50   : > { %509 = vmatpush.xpose.msra.mxu0 %v450_v10 }
  0x51   : > { %622 = vmatpush.xpose.msra.mxu1 %v466_v11 }
  0x54   : > { %510 = vmatpush.xpose.msra.mxu0 %v449_v12 }
  0x55   : > { %623 = vmatpush.xpose.msra.mxu1 %v465_v13 }
  0x58   : > { %511 = vmatpush.xpose.msra.mxu0 %v448_v14 }
  0x59   : > { %624 = vmatpush.xpose.msra.mxu1 %v464_v15 }
  0x5c   : > { %512 = vmatpush.xpose.msra.mxu0 %v447_v16 }
  0x5d   : > { %625 = vmatpush.xpose.msra.mxu1 %v463_v17 }
  0x60   : > { %513 = vmatpush.xpose.msra.mxu0 %v446_v18 }
  0x61   : > { %626 = vmatpush.xpose.msra.mxu1 %v462_v19 }
  0x64   : > { %514 = vmatpush.xpose.msra.mxu0 %v445_v20  ;;  %v3582_v20 = vmov -inf  }
  0x65   : > { %627 = vmatpush.xpose.msra.mxu1 %v461_v21  ;;  %344 = vst.msk [vmem:[#allocation2] sm:$0xff] %vm343_vm0, %v3582_v20 }
  0x66   : > { %345 = vst.msk [vmem:[#allocation2 + $0x8] sm:$0xff] %vm343_vm0, %v3582_v20 }
  0x67   : > { %346 = vst.msk [vmem:[#allocation2 + $0x10] sm:$0xff] %vm343_vm0, %v3582_v20 }
  0x68   : > { %515 = vmatpush.xpose.msra.mxu0 %v444_v22  ;;  %347 = vst.msk [vmem:[#allocation2 + $0x18] sm:$0xff] %vm343_vm0, %v3582_v20  ;;  %v331_v22 = vld [vmem:[%s3737_s5 + $0xa0] sm:$0xff] }
  0x69   : > { %628 = vmatpush.xpose.msra.mxu1 %v460_v23  ;;  %348 = vst.msk [vmem:[#allocation2 + $0x20] sm:$0xff] %vm343_vm0, %v3582_v20 }
  0x6a   : > { %349 = vst.msk [vmem:[#allocation2 + $0x28] sm:$0xff] %vm343_vm0, %v3582_v20 }
  0x6b   : > { %350 = vst.msk [vmem:[#allocation2 + $0x30] sm:$0xff] %vm343_vm0, %v3582_v20 }
  0x6c   : > { %516 = vmatpush.xpose.msra.mxu0 %v443_v24  ;;  %351 = vst.msk [vmem:[#allocation2 + $0x38] sm:$0xff] %vm343_vm0, %v3582_v20 }
  0x6d   : > { %629 = vmatpush.xpose.msra.mxu1 %v459_v25  ;;  %352 = vst.msk [vmem:[#allocation2 + $0x40] sm:$0xff] %vm343_vm0, %v3582_v20 }
  0x6e   : > { %353 = vst.msk [vmem:[#allocation2 + $0x48] sm:$0xff] %vm343_vm0, %v3582_v20 }
  0x6f   : > { %354 = vst.msk [vmem:[#allocation2 + $0x50] sm:$0xff] %vm343_vm0, %v3582_v20 }
  0x70   : > { %517 = vmatpush.xpose.msra.mxu0 %v442_v26  ;;  %355 = vst.msk [vmem:[#allocation2 + $0x58] sm:$0xff] %vm343_vm0, %v3582_v20  ;;  %v332_v26 = vld [vmem:[%s3737_s5 + $0xa8] sm:$0xff] }
  0x71   : > { %630 = vmatpush.xpose.msra.mxu1 %v458_v27  ;;  %356 = vst.msk [vmem:[#allocation2 + $0x60] sm:$0xff] %vm343_vm0, %v3582_v20 }
  0x72   : > { %357 = vst.msk [vmem:[#allocation2 + $0x68] sm:$0xff] %vm343_vm0, %v3582_v20 }
  0x73   : > { %358 = vst.msk [vmem:[#allocation2 + $0x70] sm:$0xff] %vm343_vm0, %v3582_v20 }
  0x74   : > { %518 = vmatpush.xpose.msra.mxu0 %v441_v28  ;;  %359 = vst.msk [vmem:[#allocation2 + $0x78] sm:$0xff] %vm343_vm0, %v3582_v20 }
  0x75   : > { %631 = vmatpush.xpose.msra.mxu1 %v457_v29  ;;  %360 = vst.msk [vmem:[#allocation2 + $0x80] sm:$0xff] %vm343_vm0, %v3582_v20 }
  0x76   : > { %361 = vst.msk [vmem:[#allocation2 + $0x88] sm:$0xff] %vm343_vm0, %v3582_v20 }
  0x77   : > { %362 = vst.msk [vmem:[#allocation2 + $0x90] sm:$0xff] %vm343_vm0, %v3582_v20 }
  0x78   : > { %519 = vmatpush.xpose.msra.mxu0 %v440_v30  ;;  %363 = vst.msk [vmem:[#allocation2 + $0x98] sm:$0xff] %vm343_vm0, %v3582_v20 }
  0x79   : > { %632 = vmatpush.xpose.msra.mxu1 %v456_v31  ;;  %364 = vst.msk [vmem:[#allocation2 + $0xa0] sm:$0xff] %vm343_vm0, %v3582_v20 }
  0x7a   : > { %365 = vst.msk [vmem:[#allocation2 + $0xa8] sm:$0xff] %vm343_vm0, %v3582_v20 }
  0x7b   : > { %520 = vmatmul.f32.vlgmr.msra.gmra.mxu0 %v311_v32  ;;  %366 = vst.msk [vmem:[#allocation2 + $0xb0] sm:$0xff] %vm343_vm0, %v3582_v20 }
  0x7c   : > { %633 = vmatmul.f32.vlgmr.msra.gmra.mxu1 %v311_v32  ;;  %367 = vst.msk [vmem:[#allocation2 + $0xb8] sm:$0xff] %vm343_vm0, %v3582_v20 }
  0x7d   : > { %368 = vst.msk [vmem:[#allocation2 + $0xc0] sm:$0xff] %vm343_vm0, %v3582_v20 }
  0x7e   : > { %369 = vst.msk [vmem:[#allocation2 + $0xc8] sm:$0xff] %vm343_vm0, %v3582_v20 }
  0x7f   : > { %370 = vst.msk [vmem:[#allocation2 + $0xd0] sm:$0xff] %vm343_vm0, %v3582_v20 }
  0x80   : > { %371 = vst.msk [vmem:[#allocation2 + $0xd8] sm:$0xff] %vm343_vm0, %v3582_v20 }
  0x81   : > { %372 = vst.msk [vmem:[#allocation2 + $0xe0] sm:$0xff] %vm343_vm0, %v3582_v20 }
  0x82   : > { %373 = vst.msk [vmem:[#allocation2 + $0xe8] sm:$0xff] %vm343_vm0, %v3582_v20 }
  0x83   : > { %523 = vmatmul.f32.gmra.mxu0 %v312_v33  ;;  %374 = vst.msk [vmem:[#allocation2 + $0xf0] sm:$0xff] %vm343_vm0, %v3582_v20 }
  0x84   : > { %636 = vmatmul.f32.gmra.mxu1 %v312_v33  ;;  %v3583_v33 = vmov 0   ;;  %375 = vst.msk [vmem:[#allocation2 + $0xf8] sm:$0xff] %vm343_vm0, %v3582_v20 }
  0x85   : > { %3126 = vset.pattern.permute.xlu2 %v3583_v33  ;;  %3127 = vset.pattern.permute.xlu0 %v3583_v33 }
  0x86   : > { %3128 = vset.pattern.permute.xlu1 %v3583_v33  ;;  %v335_v33 = vld [vmem:[%s3737_s5 + $0xc0] sm:$0xff] }
  0x8b   : > { %526 = vmatmul.f32.gmra.mxu0 %v313_v34 }
  0x8c   : > { %639 = vmatmul.f32.gmra.mxu1 %v313_v34 }
  0x93   : > { %529 = vmatmul.f32.gmra.mxu0 %v314_v35 }
  0x94   : > { %642 = vmatmul.f32.gmra.mxu1 %v314_v35 }
  0x9b   : > { %532 = vmatmul.f32.gmra.mxu0 %v315_v36 }
  0x9c   : > { %645 = vmatmul.f32.gmra.mxu1 %v315_v36  ;;  %v3584_v36 = vmov 0.0  }
  0x9d   : > { %376 = vst.msk [vmem:[#allocation3] sm:$0xff] %vm343_vm0, %v3584_v36 }
  0x9e   : > { %377 = vst.msk [vmem:[#allocation3 + $0x8] sm:$0xff] %vm343_vm0, %v3584_v36 }
  0x9f   : > { %378 = vst.msk [vmem:[#allocation3 + $0x10] sm:$0xff] %vm343_vm0, %v3584_v36 }
  0xa0   : > { %379 = vst.msk [vmem:[#allocation3 + $0x18] sm:$0xff] %vm343_vm0, %v3584_v36 }
  0xa1   : > { %380 = vst.msk [vmem:[#allocation3 + $0x20] sm:$0xff] %vm343_vm0, %v3584_v36 }
  0xa2   : > { %381 = vst.msk [vmem:[#allocation3 + $0x28] sm:$0xff] %vm343_vm0, %v3584_v36 }
  0xa3   : > { %535 = vmatmul.f32.gmra.mxu0 %v316_v37  ;;  %382 = vst.msk [vmem:[#allocation3 + $0x30] sm:$0xff] %vm343_vm0, %v3584_v36 }
  0xa4   : > { %648 = vmatmul.f32.gmra.mxu1 %v316_v37  ;;  %383 = vst.msk [vmem:[#allocation3 + $0x38] sm:$0xff] %vm343_vm0, %v3584_v36 }
  0xa5   : > { %384 = vst.msk [vmem:[#allocation3 + $0x40] sm:$0xff] %vm343_vm0, %v3584_v36 }
  0xa6   : > { %385 = vst.msk [vmem:[#allocation3 + $0x48] sm:$0xff] %vm343_vm0, %v3584_v36 }
  0xa7   : > { %386 = vst.msk [vmem:[#allocation3 + $0x50] sm:$0xff] %vm343_vm0, %v3584_v36 }
  0xa8   : > { %387 = vst.msk [vmem:[#allocation3 + $0x58] sm:$0xff] %vm343_vm0, %v3584_v36 }
  0xa9   : > { %388 = vst.msk [vmem:[#allocation3 + $0x60] sm:$0xff] %vm343_vm0, %v3584_v36 }
  0xaa   : > { %389 = vst.msk [vmem:[#allocation3 + $0x68] sm:$0xff] %vm343_vm0, %v3584_v36 }
  0xab   : > { %538 = vmatmul.f32.gmra.mxu0 %v317_v38  ;;  %390 = vst.msk [vmem:[#allocation3 + $0x70] sm:$0xff] %vm343_vm0, %v3584_v36 }
  0xac   : > { %651 = vmatmul.f32.gmra.mxu1 %v317_v38  ;;  %v730_v38 = vld [vmem:[#allocation2] sm:$0xff]  ;;  %391 = vst.msk [vmem:[#allocation3 + $0x78] sm:$0xff] %vm343_vm0, %v3584_v36 }
  0xad   : > { %392 = vst.msk [vmem:[#allocation3 + $0x80] sm:$0xff] %vm343_vm0, %v3584_v36 }
  0xae   : > { %393 = vst.msk [vmem:[#allocation3 + $0x88] sm:$0xff] %vm343_vm0, %v3584_v36 }
  0xaf   : > { %394 = vst.msk [vmem:[#allocation3 + $0x90] sm:$0xff] %vm343_vm0, %v3584_v36 }
  0xb0   : > { %395 = vst.msk [vmem:[#allocation3 + $0x98] sm:$0xff] %vm343_vm0, %v3584_v36 }
  0xb1   : > { %396 = vst.msk [vmem:[#allocation3 + $0xa0] sm:$0xff] %vm343_vm0, %v3584_v36 }
  0xb2   : > { %397 = vst.msk [vmem:[#allocation3 + $0xa8] sm:$0xff] %vm343_vm0, %v3584_v36 }
  0xb3   : > { %541 = vmatmul.f32.gmra.mxu0 %v318_v39  ;;  %398 = vst.msk [vmem:[#allocation3 + $0xb0] sm:$0xff] %vm343_vm0, %v3584_v36 }
  0xb4   : > { %654 = vmatmul.f32.gmra.mxu1 %v318_v39  ;;  %399 = vst.msk [vmem:[#allocation3 + $0xb8] sm:$0xff] %vm343_vm0, %v3584_v36 }
  0xb5   : > { %400 = vst.msk [vmem:[#allocation3 + $0xc0] sm:$0xff] %vm343_vm0, %v3584_v36 }
  0xb6   : > { %401 = vst.msk [vmem:[#allocation3 + $0xc8] sm:$0xff] %vm343_vm0, %v3584_v36 }
  0xb7   : > { %402 = vst.msk [vmem:[#allocation3 + $0xd0] sm:$0xff] %vm343_vm0, %v3584_v36 }
  0xb8   : > { %403 = vst.msk [vmem:[#allocation3 + $0xd8] sm:$0xff] %vm343_vm0, %v3584_v36 }
  0xb9   : > { %404 = vst.msk [vmem:[#allocation3 + $0xe0] sm:$0xff] %vm343_vm0, %v3584_v36 }
  0xba   : > { %405 = vst.msk [vmem:[#allocation3 + $0xe8] sm:$0xff] %vm343_vm0, %v3584_v36 }
  0xbb   : > { %544 = vmatmul.f32.gmra.mxu0 %v319_v40  ;;  %406 = vst.msk [vmem:[#allocation3 + $0xf0] sm:$0xff] %vm343_vm0, %v3584_v36 }
  0xbc   : > { %657 = vmatmul.f32.gmra.mxu1 %v319_v40  ;;  %407 = vst.msk [vmem:[#allocation3 + $0xf8] sm:$0xff] %vm343_vm0, %v3584_v36 }
  0xc3   : > { %547 = vmatmul.f32.gmra.mxu0 %v320_v41 }
  0xc4   : > { %660 = vmatmul.f32.gmra.mxu1 %v320_v41 }
  0xcb   : > { %550 = vmatmul.f32.gmra.mxu0 %v321_v42 }
  0xcc   : > { %663 = vmatmul.f32.gmra.mxu1 %v321_v42 }
  0xd3   : > { %553 = vmatmul.f32.gmra.mxu0 %v322_v43 }
  0xd4   : > { %666 = vmatmul.f32.gmra.mxu1 %v322_v43 }
  0xdb   : > { %556 = vmatmul.f32.gmra.mxu0 %v323_v44 }
  0xdc   : > { %669 = vmatmul.f32.gmra.mxu1 %v323_v44  ;;  %v3958_v44 = vld [vmem:[#allocation2 + $0x8] sm:$0xff] }
  0xe3   : > { %559 = vmatmul.f32.gmra.mxu0 %v324_v45 }
  0xe4   : > { %672 = vmatmul.f32.gmra.mxu1 %v324_v45 }
  0xeb   : > { %562 = vmatmul.f32.gmra.mxu0 %v325_v46 }
  0xec   : > { %675 = vmatmul.f32.gmra.mxu1 %v325_v46 }
  0xf3   : > { %565 = vmatmul.f32.gmra.mxu0 %v326_v47 }
  0xf4   : > { %678 = vmatmul.f32.gmra.mxu1 %v326_v47 }
  0xf8   : > { %v3799_v48 = vpop.f32.mrf.mxu0 }
  0xf9   : > { %v3801_v49 = vpop.f32.mrf.mxu1 }
  0xfa   : > { %v762_v51 = vmax.f32 %v3799_v48, %v3801_v49 }
  0xfb   : > { %568 = vmatmul.f32.gmra.mxu0 %v327_v50 }
  0xfc   : > { %681 = vmatmul.f32.gmra.mxu1 %v327_v50  ;;  %763 = vmax.xlane.f32.xlu0 %v762_v51 }
 0x100   : > { %v3806_v52 = vpop.f32.mrf.mxu0 }
 0x101   : > { %v3808_v53 = vpop.f32.mrf.mxu1 }
 0x102   : > { %v765_v54 = vmax.f32 %v3806_v52, %v3808_v53 }
 0x103   : > { %571 = vmatmul.f32.gmra.mxu0 %v328_v57 }
 0x104   : > { %766 = vmax.xlane.f32.xlu0 %v765_v54  ;;  %684 = vmatmul.f32.gmra.mxu1 %v328_v57  ;;  %v333_v54 = vld [vmem:[%s3737_s5 + $0xb0] sm:$0xff]  ;;  %v485_v57 = vld [vmem:[%s4083_s19 + $0x68] sm:$0xff] }
 0x108   : > { %v3812_v55 = vpop.f32.mrf.mxu0 }
 0x109   : > { %v3814_v56 = vpop.f32.mrf.mxu1 }
 0x10a   : > { %v768_v58 = vmax.f32 %v3812_v55, %v3814_v56 }
 0x10b   : > { %574 = vmatmul.f32.gmra.mxu0 %v329_v61 }
 0x10c   : > { %769 = vmax.xlane.f32.xlu1 %v768_v58  ;;  %687 = vmatmul.f32.gmra.mxu1 %v329_v61  ;;  %v3986_v58 = vld [vmem:[#allocation2 + $0x10] sm:$0xff] }
 0x110   : > { %v3819_v59 = vpop.f32.mrf.mxu0 }
 0x111   : > { %v3821_v60 = vpop.f32.mrf.mxu1 }
 0x112   : > { %v771_v62 = vmax.f32 %v3819_v59, %v3821_v60 }
 0x113   : > { %577 = vmatmul.f32.gmra.mxu0 %v330_v5 }
 0x114   : > { %772 = vmax.xlane.f32.xlu1 %v771_v62  ;;  %690 = vmatmul.f32.gmra.mxu1 %v330_v5 }
 0x118   : > { %v3826_v63 = vpop.f32.mrf.mxu0 }
 0x119   : > { %v3828_v0 = vpop.f32.mrf.mxu1 }
 0x11a   : > { %v774_v1 = vmax.f32 %v3826_v63, %v3828_v0 }
 0x11b   : > { %580 = vmatmul.f32.gmra.mxu0 %v331_v22 }
 0x11c   : > { %775 = vmax.xlane.f32.xlu2 %v774_v1  ;;  %693 = vmatmul.f32.gmra.mxu1 %v331_v22  ;;  %v4007_v1 = vld [vmem:[#allocation2 + $0x18] sm:$0xff]  ;;  %v4039_v22 = vld [vmem:[#allocation2 + $0x28] sm:$0xff] }
 0x120   : > { %v3832_v2 = vpop.f32.mrf.mxu0 }
 0x121   : > { %v3834_v3 = vpop.f32.mrf.mxu1 }
 0x122   : > { %v777_v4 = vmax.f32 %v3832_v2, %v3834_v3 }
 0x123   : > { %583 = vmatmul.f32.gmra.mxu0 %v332_v26 }
 0x124   : > { %778 = vmax.xlane.f32.xlu2 %v777_v4  ;;  %696 = vmatmul.f32.gmra.mxu1 %v332_v26 }
 0x128   : > { %v3839_v6 = vpop.f32.mrf.mxu0 }
 0x129   : > { %v3841_v7 = vpop.f32.mrf.mxu1 }
 0x12a   : > { %v780_v8 = vmax.f32 %v3839_v6, %v3841_v7 }
 0x12b   : > { %586 = vmatmul.f32.gmra.mxu0 %v333_v54 }
 0x12c   : > { %781 = vmax.xlane.f32.xlu0 %v780_v8  ;;  %699 = vmatmul.f32.gmra.mxu1 %v333_v54 }
 0x130   : > { %v3845_v9 = vpop.f32.mrf.mxu0 }
 0x131   : > { %v3847_v10 = vpop.f32.mrf.mxu1 }
 0x132   : > { %v783_v11 = vmax.f32 %v3845_v9, %v3847_v10 }
 0x134   : > { %784 = vmax.xlane.f32.xlu1 %v783_v11 }
 0x138   : > { %v3851_v12 = vpop.f32.mrf.mxu0 }
 0x139   : > { %v3853_v13 = vpop.f32.mrf.mxu1 }
 0x13a   : > { %v786_v14 = vmax.f32 %v3851_v12, %v3853_v13 }
 0x13c   : > { %787 = vmax.xlane.f32.xlu2 %v786_v14  ;;  %v4029_v14 = vld [vmem:[#allocation2 + $0x20] sm:$0xff] }
 0x140   : > { %v3857_v15 = vpop.f32.mrf.mxu0 }
 0x141   : > { %v3859_v16 = vpop.f32.mrf.mxu1 }
 0x142   : > { %v789_v17 = vmax.f32 %v3857_v15, %v3859_v16 }
 0x144   : > { %790 = vmax.xlane.f32.xlu0 %v789_v17 }
 0x148   : > { %v3863_v18 = vpop.f32.mrf.mxu0 }
 0x149   : > { %v3865_v19 = vpop.f32.mrf.mxu1 }
 0x14a   : > { %v792_v21 = vmax.f32 %v3863_v18, %v3865_v19 }
 0x14c   : > { %793 = vmax.xlane.f32.xlu1 %v792_v21 }
 0x150   : > { %v3878_v23 = vpop.f32.mrf.mxu0 }
 0x151   : > { %v3880_v24 = vpop.f32.mrf.mxu1 }
 0x152   : > { %v795_v25 = vmax.f32 %v3878_v23, %v3880_v24 }
 0x154   : > { %796 = vmax.xlane.f32.xlu2 %v795_v25  ;;  %v334_v25 = vld [vmem:[%s3737_s5 + $0xb8] sm:$0xff] }
 0x155   : > { %589 = vmatmul.f32.gmra.mxu0 %v334_v25  ;;  %702 = vmatmul.f32.gmra.mxu1 %v334_v25  ;;  %v487_v25 = vld [vmem:[%s4083_s19 + $0x78] sm:$0xff] }
 0x156   : > { %1786 = vmatpush.msra.mxu2 %v487_v25 }
 0x158   : > { %v3893_v27 = vpop.f32.mrf.mxu0 }
 0x159   : > { %5414 = vst [vmem:[#allocation24_spill] sm:$0xff] %v3893_v27  ;;  %v3895_v28 = vpop.f32.mrf.mxu1 }
 0x15a   : > { %5415 = vst [vmem:[#allocation25_spill] sm:$0xff] %v3895_v28  ;;  %v798_v29 = vmax.f32 %v3893_v27, %v3895_v28 }
 0x15c   : > { %799 = vmax.xlane.f32.xlu0 %v798_v29 }
 0x15d   : > { %592 = vmatmul.f32.gmra.mxu0 %v335_v33  ;;  %705 = vmatmul.f32.gmra.mxu1 %v335_v33  ;;  %v4087_v33 = vld [vmem:[#allocation2 + $0x48] sm:$0xff] }
 0x160   : > { %v3907_v30 = vpop.f32.mrf.mxu0 }
 0x161   : > { %v3909_v31 = vpop.f32.mrf.mxu1 }
 0x162   : > { %v801_v32 = vmax.f32 %v3907_v30, %v3909_v31 }
 0x164   : > { %802 = vmax.xlane.f32.xlu1 %v801_v32  ;;  %v4048_v32 = vld [vmem:[#allocation2 + $0x30] sm:$0xff] }
 0x168   : > { %v3921_v34 = vpop.f32.mrf.mxu0 }
 0x169   : > { %v3923_v35 = vpop.f32.mrf.mxu1 }
 0x16a   : > { %5416 = vst [vmem:[#allocation26_spill] sm:$0xff] %v3923_v35  ;;  %v804_v37 = vmax.f32 %v3921_v34, %v3923_v35 }
 0x16c   : > { %805 = vmax.xlane.f32.xlu2 %v804_v37 }
 0x16f   : > { %v764_v39 = vpop.xlane.xlu0 %763 }
 0x170   : > { %v858_v40 = vmax.f32 %v730_v38, %v764_v39  ;;  %v3943_v41 = vpop.f32.mrf.mxu0 }
 0x171   : > { %5417 = vst [vmem:[#allocation27_spill] sm:$0xff] %v3943_v41  ;;  %v3945_v42 = vpop.f32.mrf.mxu1 }
 0x172   : > { %5418 = vst [vmem:[#allocation28_spill] sm:$0xff] %v3945_v42  ;;  %v807_v43 = vmax.f32 %v3943_v41, %v3945_v42  ;;  %v890_v4 = vsub.f32 %v730_v38, %v858_v40 }
 0x173   : > { %2076 = vst.msk [vmem:[#allocation2] sm:$0xff] %vm343_vm0, %v858_v40 }
 0x174   : > { %808 = vmax.xlane.f32.xlu0 %v807_v43  ;;  %v922_v11 = vmul.f32 1.442695, %v890_v4  ;;  %v4073_v4 = vld [vmem:[#allocation2 + $0x40] sm:$0xff] }
 0x176   : > { %3129 = vpow2.f32 %v922_v11 }
 0x177   : > { %v767_v45 = vpop.xlane.xlu0 %766 }
 0x178   : > { %v3967_v46 = vmax.f32 %v3958_v44, %v767_v45  ;;  %v3969_v47 = vpop.f32.mrf.mxu0 }
 0x179   : > { %5419 = vst [vmem:[#allocation29_spill] sm:$0xff] %v3969_v47  ;;  %v3971_v50 = vpop.f32.mrf.mxu1 }
 0x17a   : > { %5420 = vst [vmem:[#allocation30_spill] sm:$0xff] %v3971_v50  ;;  %v810_v51 = vmax.f32 %v3969_v47, %v3971_v50  ;;  %v5426_v25 = vsub.f32 %v3958_v44, %v3967_v46  ;;  %v482_v44 = vld [vmem:[%s4083_s19 + $0x50] sm:$0xff] }
 0x17b   : > { %2077 = vst.msk [vmem:[#allocation2 + $0x8] sm:$0xff] %vm343_vm0, %v3967_v46 }
 0x17c   : > { %811 = vmax.xlane.f32.xlu1 %v810_v51  ;;  %v4036_v21 = vpop.eup %3129 }
 0x17d   : > { %5421 = vst [vmem:[#allocation31_spill] sm:$0xff] %v4036_v21 }
 0x17f   : > { %v770_v61 = vpop.xlane.xlu1 %769 }
 0x180   : > { %v3995_v62 = vmax.f32 %v3986_v58, %v770_v61  ;;  %v4056_v39 = vpop.f32.mrf.mxu0 }
 0x181   : > { %v4054_v38 = vpop.f32.mrf.mxu1  ;;  %5423 = vst [vmem:[#allocation33_spill] sm:$0xff] %v4056_v39 }
 0x182   : > { %2078 = vst.msk [vmem:[#allocation2 + $0x10] sm:$0xff] %vm343_vm0, %v3995_v62  ;;  %v813_v51 = vmax.f32 %v4056_v39, %v4054_v38 }
 0x183   : > { %5422 = vst [vmem:[#allocation32_spill] sm:$0xff] %v4054_v38  ;;  %v336_v38 = vld [vmem:[%s3737_s5 + $0xc8] sm:$0xff] }
 0x184   : > { %988 = vperm.xlu2 %3126, %v858_v40   ;;  %v4060_v40 = vld [vmem:[#allocation2 + $0x38] sm:$0xff]  ;;  %595 = vmatmul.f32.gmra.mxu0 %v336_v38 }
 0x185   : > { %708 = vmatmul.f32.gmra.mxu1 %v336_v38  ;;  %v4155_v38 = vld [vmem:[#allocation2 + $0x60] sm:$0xff] }
 0x187   : > { %v773_v5 = vpop.xlane.xlu1 %772 }
 0x188   : > { %v4016_v8 = vmax.f32 %v4007_v1, %v773_v5  ;;  %993 = vperm.xlu0 %3127, %v3967_v46   ;;  %v4071_v61 = vpop.f32.mrf.mxu0  ;;  %v498_v46 = vld [vmem:[%s4083_s19 + $0xd0] sm:$0xff] }
 0x189   : > { %v4069_v54 = vpop.f32.mrf.mxu1  ;;  %5425 = vst [vmem:[#allocation35_spill] sm:$0xff] %v4071_v61 }
 0x18a   : > { %2079 = vst.msk [vmem:[#allocation2 + $0x18] sm:$0xff] %vm343_vm0, %v4016_v8  ;;  %v816_v5 = vmax.f32 %v4071_v61, %v4069_v54  ;;  %v4107_v61 = vld [vmem:[#allocation2 + $0x50] sm:$0xff]  ;;  %v893_v39 = vsub.f32 %v4007_v1, %v4016_v8 }
 0x18b   : > { %5424 = vst [vmem:[#allocation34_spill] sm:$0xff] %v4069_v54  ;;  %v501_v54 = vld [vmem:[%s4083_s19 + $0xe8] sm:$0xff] }
 0x18f   : > { %v776_v17 = vpop.xlane.xlu2 %775 }
 0x190   : > { %v4032_v20 = vmax.f32 %v4029_v14, %v776_v17 }
 0x192   : > { %2080 = vst.msk [vmem:[#allocation2 + $0x20] sm:$0xff] %vm343_vm0, %v4032_v20 }
 0x195   : > { %1596 = vperm.xlu1 %3128, %v4036_v21  }
 0x197   : > { %v779_v26 = vpop.xlane.xlu2 %778 }
 0x198   : > { %v4043_v29 = vmax.f32 %v4039_v22, %v779_v26  ;;  %v503_v26 = vld [vmem:[%s4083_s19 + $0xf8] sm:$0xff] }
 0x199   : > { %1899 = vmatpush.msra.mxu3 %v503_v26  ;;  %v924_v26 = vmul.f32 1.442695, %v5426_v25  ;;  %v4116_v25 = vpop.f32.mrf.mxu0 }
 0x19a   : > { %2081 = vst.msk [vmem:[#allocation2 + $0x28] sm:$0xff] %vm343_vm0, %v4043_v29 }
 0x19b   : > { %3131 = vpow2.f32 %v924_v26  ;;  %5427 = vst [vmem:[#allocation36_spill] sm:$0xff] %v4116_v25  ;;  %v481_v26 = vld [vmem:[%s4083_s19 + $0x48] sm:$0xff] }
 0x19d   : > { %998 = vperm.xlu1 %3128, %v3995_v62  }
 0x19f   : > { %v782_v36 = vpop.xlane.xlu0 %781 }
 0x1a0   : > { %v4052_v37 = vmax.f32 %v4048_v32, %v782_v36  ;;  %v486_v36 = vld [vmem:[%s4083_s19 + $0x70] sm:$0xff] }
 0x1a1   : > { %1787 = vmatpush.msra.mxu2 %v486_v36 }
 0x1a2   : > { %2082 = vst.msk [vmem:[#allocation2 + $0x30] sm:$0xff] %vm343_vm0, %v4052_v37 }
 0x1a3   : > { %1788 = vmatpush.msra.mxu2 %v485_v57  ;;  %v894_v57 = vsub.f32 %v4029_v14, %v4032_v20  ;;  %v480_v14 = vld [vmem:[%s4083_s19 + $0x40] sm:$0xff] }
 0x1a7   : > { %v785_v43 = vpop.xlane.xlu1 %784 }
 0x1a8   : > { %v4063_v45 = vmax.f32 %v4060_v40, %v785_v43  ;;  %v502_v43 = vld [vmem:[%s4083_s19 + $0xf0] sm:$0xff] }
 0x1a9   : > { %1900 = vmatpush.msra.mxu3 %v502_v43  ;;  %v483_v43 = vld [vmem:[%s4083_s19 + $0x58] sm:$0xff] }
 0x1aa   : > { %2083 = vst.msk [vmem:[#allocation2 + $0x38] sm:$0xff] %vm343_vm0, %v4063_v45 }
 0x1ab   : > { %1901 = vmatpush.msra.mxu3 %v501_v54 }
 0x1ad   : > { %814 = vmax.xlane.f32.xlu2 %v813_v51  ;;  %v892_v51 = vsub.f32 %v3986_v58, %v3995_v62  ;;  %v484_v58 = vld [vmem:[%s4083_s19 + $0x60] sm:$0xff] }
 0x1ae   : > { %v500_v62 = vld [vmem:[%s4083_s19 + $0xe0] sm:$0xff]  ;;  %1789 = vmatpush.msra.mxu2 %v484_v58  ;;  %v4118_v58 = vpop.f32.mrf.mxu1 }
 0x1af   : > { %v788_v11 = vpop.xlane.xlu2 %787  ;;  %v926_v36 = vmul.f32 1.442695, %v892_v51  ;;  %1902 = vmatpush.msra.mxu3 %v500_v62  ;;  %5428 = vst [vmem:[#allocation37_spill] sm:$0xff] %v4118_v58  ;;  %v497_v62 = vld [vmem:[%s4083_s19 + $0xc8] sm:$0xff] }
 0x1b0   : > { %v4078_v17 = vmax.f32 %v4073_v4, %v788_v11  ;;  %1790 = vmatpush.msra.mxu2 %v483_v43  ;;  %v930_v43 = vmul.f32 1.442695, %v894_v57  ;;  %v478_v57 = vld [vmem:[%s4083_s19 + $0x30] sm:$0xff] }
 0x1b1   : > { %3133 = vpow2.f32 %v926_v36  ;;  %v496_v36 = vld [vmem:[%s4083_s19 + $0xc0] sm:$0xff] }
 0x1b2   : > { %2084 = vst.msk [vmem:[#allocation2 + $0x40] sm:$0xff] %vm343_vm0, %v4078_v17  ;;  %817 = vmax.xlane.f32.xlu0 %v816_v5  ;;  %1791 = vmatpush.msra.mxu2 %v482_v44  ;;  %v4128_v44 = vpop.eup %3131  ;;  %3135 = vpow2.f32 %v930_v43  ;;  %v476_v43 = vld [vmem:[%s4083_s19 + $0x20] sm:$0xff] }
 0x1b3   : > { %5429 = vst [vmem:[#allocation38_spill] sm:$0xff] %v4128_v44 }
 0x1b4   : > { %1792 = vmatpush.msra.mxu2 %v481_v26 }
 0x1b6   : > { %1793 = vmatpush.msra.mxu2 %v480_v14  ;;  %v494_v14 = vld [vmem:[%s4083_s19 + $0xb0] sm:$0xff] }
 0x1b7   : > { %v791_v5 = vpop.xlane.xlu0 %790  ;;  %v4132_v26 = vpop.eup %3133 }
 0x1b8   : > { %v4094_v11 = vmax.f32 %v4087_v33, %v791_v5  ;;  %v499_v5 = vld [vmem:[%s4083_s19 + $0xd8] sm:$0xff]  ;;  %5430 = vst [vmem:[#allocation39_spill] sm:$0xff] %v4132_v26 }
 0x1b9   : > { %1903 = vmatpush.msra.mxu3 %v499_v5  ;;  %v819_v5 = vmax.f32 %v4116_v25, %v4118_v58  ;;  %v493_v25 = vld [vmem:[%s4083_s19 + $0xa8] sm:$0xff] }
 0x1ba   : > { %2085 = vst.msk [vmem:[#allocation2 + $0x48] sm:$0xff] %vm343_vm0, %v4094_v11 }
 0x1bb   : > { %1904 = vmatpush.msra.mxu3 %v498_v46  ;;  %v479_v46 = vld [vmem:[%s4083_s19 + $0x38] sm:$0xff] }
 0x1bc   : > { %1794 = vmatpush.msra.mxu2 %v479_v46  ;;  %v477_v46 = vld [vmem:[%s4083_s19 + $0x28] sm:$0xff] }
 0x1bd   : > { %1905 = vmatpush.msra.mxu3 %v497_v62  ;;  %v4135_v62 = vld [vmem:[#allocation2 + $0x58] sm:$0xff] }
 0x1be   : > { %1795 = vmatpush.msra.mxu2 %v478_v57  ;;  %v474_v57 = vld [vmem:[%s4083_s19 + $0x10] sm:$0xff] }
 0x1bf   : > { %v794_v54 = vpop.xlane.xlu1 %793  ;;  %1906 = vmatpush.msra.mxu3 %v496_v36 }
 0x1c0   : > { %v4114_v51 = vmax.f32 %v4107_v61, %v794_v54  ;;  %v495_v54 = vld [vmem:[%s4083_s19 + $0xb8] sm:$0xff]  ;;  %1796 = vmatpush.msra.mxu2 %v477_v46 }
 0x1c1   : > { %1907 = vmatpush.msra.mxu3 %v495_v54  ;;  %v492_v54 = vld [vmem:[%s4083_s19 + $0xa0] sm:$0xff] }
 0x1c2   : > { %2086 = vst.msk [vmem:[#allocation2 + $0x50] sm:$0xff] %vm343_vm0, %v4114_v51  ;;  %1797 = vmatpush.msra.mxu2 %v476_v43  ;;  %v473_v43 = vld [vmem:[%s4083_s19 + $0x8] sm:$0xff] }
 0x1c3   : > { %1908 = vmatpush.msra.mxu3 %v494_v14  ;;  %v490_v14 = vld [vmem:[%s4083_s19 + $0x90] sm:$0xff] }
 0x1c5   : > { %1601 = vperm.xlu2 %3126, %v4128_v44   ;;  %1909 = vmatpush.msra.mxu3 %v493_v25  ;;  %v489_v44 = vld [vmem:[%s4083_s19 + $0x88] sm:$0xff] }
 0x1c6   : > { %1606 = vperm.xlu0 %3127, %v4132_v26   ;;  %v4152_v26 = vpop.eup %3135 }
 0x1c7   : > { %v797_v36 = vpop.xlane.xlu2 %796  ;;  %820 = vmax.xlane.f32.xlu1 %v819_v5  ;;  %v475_v5 = vld [vmem:[%s4083_s19 + $0x18] sm:$0xff]  ;;  %5431 = vst [vmem:[#allocation40_spill] sm:$0xff] %v4152_v26  ;;  %1910 = vmatpush.msra.mxu3 %v492_v54  ;;  %v472_v54 = vld [vmem:[%s4083_s19] sm:$0xff] }
 0x1c8   : > { %v4142_v58 = vmax.f32 %v4135_v62, %v797_v36  ;;  %v491_v36 = vld [vmem:[%s4083_s19 + $0x98] sm:$0xff]  ;;  %1798 = vmatpush.msra.mxu2 %v475_v5  ;;  %v488_v5 = vld [vmem:[%s4083_s19 + $0x80] sm:$0xff] }
 0x1c9   : > { %1911 = vmatpush.msra.mxu3 %v491_v36  ;;  %v928_v36 = vmul.f32 1.442695, %v893_v39 }
 0x1ca   : > { %2087 = vst.msk [vmem:[#allocation2 + $0x58] sm:$0xff] %vm343_vm0, %v4142_v58  ;;  %1799 = vmatpush.msra.mxu2 %v474_v57  ;;  %v4172_v57 = vld [vmem:[#allocation2 + $0x68] sm:$0xff] }
 0x1cb   : > { %1912 = vmatpush.msra.mxu3 %v490_v14  ;;  %3137 = vpow2.f32 %v928_v36  ;;  %v4180_v14 = vld [vmem:[#allocation2 + $0x70] sm:$0xff]  ;;  %v4195_v36 = vpop.f32.mrf.mxu1 }
 0x1cc   : > { %1800 = vmatpush.msra.mxu2 %v473_v43  ;;  %v338_v43 = vld [vmem:[%s3737_s5 + $0xd8] sm:$0xff] }
 0x1cd   : > { %1003 = vperm.xlu2 %3126, %v4016_v8   ;;  %1913 = vmatpush.msra.mxu3 %v489_v44  ;;  %v337_v8 = vld [vmem:[%s3737_s5 + $0xd0] sm:$0xff] }
 0x1ce   : > { %1616 = vperm.xlu0 %3127, %v4152_v26   ;;  %1801 = vmatpush.msra.mxu2 %v472_v54  ;;  %v4191_v54 = vld [vmem:[#allocation2 + $0x78] sm:$0xff] }
 0x1cf   : > { %v800_v25 = vpop.xlane.xlu0 %799  ;;  %1914 = vmatpush.msra.mxu3 %v488_v5  ;;  %598 = vmatmul.f32.gmra.mxu0 %v337_v8  ;;  %v4193_v5 = vpop.f32.mrf.mxu0 }
 0x1d0   : > { %v4161_v46 = vmax.f32 %v4155_v38, %v800_v25  ;;  %711 = vmatmul.f32.gmra.mxu1 %v337_v8 }
 0x1d1   : > { %v4182_v39 = vpop.eup %3137 }
 0x1d2   : > { %2088 = vst.msk [vmem:[#allocation2 + $0x60] sm:$0xff] %vm343_vm0, %v4161_v46 }
 0x1d3   : > { %5432 = vst [vmem:[#allocation41_spill] sm:$0xff] %v4182_v39 }
 0x1d5   : > { %1008 = vperm.xlu2 %3126, %v4032_v20  }
 0x1d7   : > { %v803_v25 = vpop.xlane.xlu1 %802  ;;  %601 = vmatmul.f32.gmra.mxu0 %v338_v43 }
 0x1d8   : > { %v4175_v1 = vmax.f32 %v4172_v57, %v803_v25  ;;  %714 = vmatmul.f32.gmra.mxu1 %v338_v43  ;;  %v4205_v43 = vld [vmem:[#allocation2 + $0x80] sm:$0xff] }
 0x1da   : > { %2089 = vst.msk [vmem:[#allocation2 + $0x68] sm:$0xff] %vm343_vm0, %v4175_v1 }
 0x1df   : > { %v806_v20 = vpop.xlane.xlu2 %805 }
 0x1e0   : > { %v4185_v44 = vmax.f32 %v4180_v14, %v806_v20  ;;  %1611 = vperm.xlu1 %3128, %v4182_v39  }
 0x1e2   : > { %2090 = vst.msk [vmem:[#allocation2 + $0x70] sm:$0xff] %vm343_vm0, %v4185_v44 }
 0x1e7   : > { %v989_v25 = vpop.permute.xlu2 %988  ;;  %v809_v8 = vpop.xlane.xlu0 %808 }
 0x1e8   : > { %v1146_v26 = vsub.f32 %v3799_v48, %v989_v25  ;;  %v1147_v20 = vsub.f32 %v3801_v49, %v989_v25  ;;  %v4200_v39 = vmax.f32 %v4191_v54, %v809_v8  ;;  %1013 = vperm.xlu1 %3128, %v4043_v29   ;;  %v4211_v48 = vpop.f32.mrf.mxu0  ;;  %v4213_v49 = vpop.f32.mrf.mxu1  ;;  %v822_v8 = vmax.f32 %v4193_v5, %v4195_v36 }
 0x1e9   : > { %5433 = vst [vmem:[#allocation42_spill] sm:$0xff] %v4211_v48 }
 0x1ea   : > { %v1210_v42 = vmul.f32 1.442695, %v1146_v26  ;;  %v1212_v41 = vmul.f32 1.442695, %v1147_v20  ;;  %2091 = vst.msk [vmem:[#allocation2 + $0x78] sm:$0xff] %vm343_vm0, %v4200_v39 }
 0x1eb   : > { %5434 = vst [vmem:[#allocation43_spill] sm:$0xff] %v4213_v49 }
 0x1ec   : > { %3139 = vpow2.f32 %v1210_v42 }
 0x1ed   : > { %3141 = vpow2.f32 %v1212_v41  ;;  %v825_v41 = vmax.f32 %v4211_v48, %v4213_v49 }
 0x1ef   : > { %v812_v21 = vpop.xlane.xlu1 %811 }
 0x1f0   : > { %v4208_v50 = vmax.f32 %v4205_v43, %v812_v21  ;;  %1023 = vperm.xlu1 %3128, %v4063_v45  }
 0x1f2   : > { %v3140_v25 = vpop.eup %3139  ;;  %2092 = vst.msk [vmem:[#allocation2 + $0x80] sm:$0xff] %vm343_vm0, %v4208_v50 }
 0x1f3   : > { %v3142_v26 = vpop.eup %3141  ;;  %1802 = vmatmul.f32.vlgmr.msra.gmra.mxu2 %v3140_v25 }
 0x1f4   : > { %1915 = vmatmul.f32.vlgmr.msra.gmra.mxu3 %v3142_v26  ;;  %v4219_v42 = vadd.f32 %v3142_v26, %v3140_v25  ;;  %v897_v25 = vsub.f32 %v4060_v40, %v4063_v45 }
 0x1f6   : > { %v936_v48 = vmul.f32 1.442695, %v897_v25  ;;  %v4252_v25 = vld [vmem:[#allocation2 + $0x88] sm:$0xff] }
 0x1f8   : > { %826 = vmax.xlane.f32.xlu0 %v825_v41 }
 0x1fa   : > { %v994_v21 = vpop.permute.xlu0 %993 }
 0x1fb   : > { %v1148_v20 = vsub.f32 %v3806_v52, %v994_v21  ;;  %v1149_v47 = vsub.f32 %v3808_v53, %v994_v21  ;;  %v339_v52 = vld [vmem:[%s3737_s5 + $0xe0] sm:$0xff]  ;;  %v895_v53 = vsub.f32 %v4039_v22, %v4043_v29 }
 0x1fc   : > { %604 = vmatmul.f32.gmra.mxu0 %v339_v52  ;;  %717 = vmatmul.f32.gmra.mxu1 %v339_v52 }
 0x1fd   : > { %v1214_v28 = vmul.f32 1.442695, %v1148_v20  ;;  %v1216_v27 = vmul.f32 1.442695, %v1149_v47  ;;  %v4241_v20 = vpop.f32.mrf.mxu1 }
 0x1fe   : > { %823 = vmax.xlane.f32.xlu2 %v822_v8  ;;  %v4239_v8 = vpop.f32.mrf.mxu0  ;;  %5436 = vst [vmem:[#allocation45_spill] sm:$0xff] %v4241_v20 }
 0x1ff   : > { %3143 = vpow2.f32 %v1214_v28 }
 0x200   : > { %3145 = vpow2.f32 %v1216_v27 }
 0x201   : > { %3147 = vpow2.f32 %v936_v48 }
 0x205   : > { %v3144_v35 = vpop.eup %3143 }
 0x206   : > { %v3146_v26 = vpop.eup %3145  ;;  %1805 = vmatmul.f32.gmra.mxu2 %v3144_v35 }
 0x207   : > { %1918 = vmatmul.f32.gmra.mxu3 %v3146_v26  ;;  %v4227_v41 = vpop.permute.xlu1 %1596  ;;  %v4229_v49 = vadd.f32 %v3146_v26, %v3144_v35  ;;  %v4237_v21 = vpop.eup %3147  ;;  %v932_v35 = vmul.f32 1.442695, %v895_v53  ;;  %v340_v53 = vld [vmem:[%s3737_s5 + $0xe8] sm:$0xff] }
 0x208   : > { %5435 = vst [vmem:[#allocation44_spill] sm:$0xff] %v4227_v41  ;;  %607 = vmatmul.f32.gmra.mxu0 %v340_v53  ;;  %720 = vmatmul.f32.gmra.mxu1 %v340_v53  ;;  %v4285_v41 = vld [vmem:[#allocation2 + $0x98] sm:$0xff] }
 0x20c   : > { %1028 = vperm.xlu0 %3127, %v4078_v17  }
 0x20f   : > { %v999_v27 = vpop.permute.xlu1 %998 }
 0x210   : > { %v1150_v28 = vsub.f32 %v3812_v55, %v999_v27  ;;  %v1151_v47 = vsub.f32 %v3814_v56, %v999_v27  ;;  %v828_v55 = vmax.f32 %v4239_v8, %v4241_v20  ;;  %v4260_v27 = vld [vmem:[#allocation2 + $0x90] sm:$0xff] }
 0x212   : > { %v1218_v40 = vmul.f32 1.442695, %v1150_v28  ;;  %v1220_v45 = vmul.f32 1.442695, %v1151_v47  ;;  %v896_v28 = vsub.f32 %v4048_v32, %v4052_v37 }
 0x214   : > { %3149 = vpow2.f32 %v1218_v40  ;;  %1631 = vperm.xlu0 %3127, %v4237_v21  }
 0x215   : > { %3151 = vpow2.f32 %v1220_v45  ;;  %v341_v45 = vld [vmem:[%s3737_s5 + $0xf0] sm:$0xff] }
 0x216   : > { %1018 = vperm.xlu2 %3126, %v4052_v37   ;;  %3153 = vpow2.f32 %v932_v35  ;;  %v934_v35 = vmul.f32 1.442695, %v896_v28  ;;  %610 = vmatmul.f32.gmra.mxu0 %v341_v45 }
 0x217   : > { %723 = vmatmul.f32.gmra.mxu1 %v341_v45 }
 0x218   : > { %3155 = vpow2.f32 %v934_v35 }
 0x21a   : > { %v3150_v56 = vpop.eup %3149  ;;  %829 = vmax.xlane.f32.xlu1 %v828_v55 }
 0x21b   : > { %v3152_v22 = vpop.eup %3151  ;;  %1808 = vmatmul.f32.gmra.mxu2 %v3150_v56 }
 0x21c   : > { %1921 = vmatmul.f32.gmra.mxu3 %v3152_v22  ;;  %v4247_v29 = vadd.f32 %v3152_v22, %v3150_v56  ;;  %v4249_v48 = vpop.eup %3153  ;;  %v4272_v56 = vpop.f32.mrf.mxu1 }
 0x21d   : > { %v4274_v22 = vpop.f32.mrf.mxu0 }
 0x21e   : > { %1621 = vperm.xlu2 %3126, %v4249_v48   ;;  %v4278_v53 = vpop.eup %3155 }
 0x21f   : > { %5438 = vst [vmem:[#allocation47_spill] sm:$0xff] %v4278_v53 }
 0x220   : > { %v815_v26 = vpop.xlane.xlu2 %814 }
 0x221   : > { %v4255_v52 = vmax.f32 %v4252_v25, %v815_v26 }
 0x223   : > { %2093 = vst.msk [vmem:[#allocation2 + $0x88] sm:$0xff] %vm343_vm0, %v4255_v52 }
 0x225   : > { %v818_v47 = vpop.xlane.xlu0 %817  ;;  %v4283_v45 = vpop.f32.mrf.mxu0 }
 0x226   : > { %v4265_v40 = vmax.f32 %v4260_v27, %v818_v47  ;;  %5440 = vst [vmem:[#allocation49_spill] sm:$0xff] %v4283_v45 }
 0x228   : > { %v4268_v55 = vpop.permute.xlu2 %1601  ;;  %2094 = vst.msk [vmem:[#allocation2 + $0x90] sm:$0xff] %vm343_vm0, %v4265_v40 }
 0x229   : > { %5437 = vst [vmem:[#allocation46_spill] sm:$0xff] %v4268_v55  ;;  %v4281_v55 = vpop.f32.mrf.mxu1 }
 0x22a   : > { %5439 = vst [vmem:[#allocation48_spill] sm:$0xff] %v4281_v55 }
 0x230   : > { %v1004_v26 = vpop.permute.xlu2 %1003 }
 0x231   : > { %v1152_v32 = vsub.f32 %v3819_v59, %v1004_v26  ;;  %v1153_v37 = vsub.f32 %v3821_v60, %v1004_v26  ;;  %v834_v26 = vmax.f32 %v4283_v45, %v4281_v55 }
 0x233   : > { %v1222_v28 = vmul.f32 1.442695, %v1152_v32  ;;  %v1224_v47 = vmul.f32 1.442695, %v1153_v37  ;;  %1626 = vperm.xlu1 %3128, %v4278_v53  }
 0x235   : > { %3157 = vpow2.f32 %v1222_v28 }
 0x236   : > { %3159 = vpow2.f32 %v1224_v47 }
 0x238   : > { %v1009_v35 = vpop.permute.xlu2 %1008 }
 0x239   : > { %v1154_v20 = vsub.f32 %v3826_v63, %v1009_v35  ;;  %v1155_v59 = vsub.f32 %v3828_v0, %v1009_v35 }
 0x23a   : > { %v821_v60 = vpop.xlane.xlu1 %820 }
 0x23b   : > { %v3158_v32 = vpop.eup %3157  ;;  %v1226_v37 = vmul.f32 1.442695, %v1154_v20  ;;  %v1228_v53 = vmul.f32 1.442695, %v1155_v59  ;;  %v4292_v28 = vmax.f32 %v4285_v41, %v821_v60  ;;  %1038 = vperm.xlu1 %3128, %v4114_v51   ;;  %v831_v20 = vmax.f32 %v4274_v22, %v4272_v56 }
 0x23c   : > { %v3160_v47 = vpop.eup %3159  ;;  %1811 = vmatmul.f32.gmra.mxu2 %v3158_v32  ;;  %v900_v60 = vsub.f32 %v4107_v61, %v4114_v51  ;;  %v342_v51 = vld [vmem:[%s3737_s5 + $0xf8] sm:$0xff] }
 0x23d   : > { %3161 = vpow2.f32 %v1226_v37  ;;  %2095 = vst.msk [vmem:[#allocation2 + $0x98] sm:$0xff] %vm343_vm0, %v4292_v28  ;;  %1924 = vmatmul.f32.gmra.mxu3 %v3160_v47  ;;  %v4297_v63 = vadd.f32 %v3160_v47, %v3158_v32  ;;  %v4312_v32 = vpop.permute.xlu0 %1606  ;;  %613 = vmatmul.f32.gmra.mxu0 %v342_v51 }
 0x23e   : > { %3163 = vpow2.f32 %v1228_v53  ;;  %835 = vmax.xlane.f32.xlu0 %v834_v26  ;;  %v942_v37 = vmul.f32 1.442695, %v900_v60  ;;  %v898_v53 = vsub.f32 %v4073_v4, %v4078_v17  ;;  %5443 = vst [vmem:[#allocation52_spill] sm:$0xff] %v4312_v32  ;;  %726 = vmatmul.f32.gmra.mxu1 %v342_v51  ;;  %v4320_v4 = vpop.f32.mrf.mxu0 }
 0x23f   : > { %5445 = vst [vmem:[#allocation54_spill] sm:$0xff] %v4320_v4 }
 0x240   : > { %3165 = vpow2.f32 %v942_v37  ;;  %v938_v47 = vmul.f32 1.442695, %v898_v53  ;;  %v4318_v37 = vpop.f32.mrf.mxu1 }
 0x241   : > { %5444 = vst [vmem:[#allocation53_spill] sm:$0xff] %v4318_v37  ;;  %v837_v17 = vmax.f32 %v4320_v4, %v4318_v37 }
 0x242   : > { %3167 = vpow2.f32 %v938_v47 }
 0x243   : > { %v3162_v0 = vpop.eup %3161 }
 0x244   : > { %v3164_v35 = vpop.eup %3163  ;;  %1814 = vmatmul.f32.gmra.mxu2 %v3162_v0 }
 0x245   : > { %1927 = vmatmul.f32.gmra.mxu3 %v3164_v35  ;;  %v4301_v59 = vadd.f32 %v3164_v35, %v3162_v0  ;;  %v4325_v53 = vpop.permute.xlu0 %1616 }
 0x246   : > { %v4310_v26 = vpop.eup %3165  ;;  %5446 = vst [vmem:[#allocation55_spill] sm:$0xff] %v4325_v53  ;;  %v4334_v53 = vld [vmem:[#allocation2 + $0xa8] sm:$0xff] }
 0x247   : > { %832 = vmax.xlane.f32.xlu2 %v831_v20  ;;  %5442 = vst [vmem:[#allocation51_spill] sm:$0xff] %v4310_v26 }
 0x252   : > { %v4305_v55 = vpop.permute.xlu1 %1611  ;;  %1043 = vperm.xlu0 %3127, %v4142_v58  }
 0x253   : > { %5441 = vst [vmem:[#allocation50_spill] sm:$0xff] %v4305_v55 }
 0x25a   : > { %v1014_v0 = vpop.permute.xlu1 %1013  ;;  %1646 = vperm.xlu0 %3127, %v4310_v26  }
 0x25b   : > { %v1156_v20 = vsub.f32 %v3832_v2, %v1014_v0  ;;  %v1157_v61 = vsub.f32 %v3834_v3, %v1014_v0 }
 0x25d   : > { %v1230_v35 = vmul.f32 1.442695, %v1156_v20  ;;  %v1232_v60 = vmul.f32 1.442695, %v1157_v61  ;;  %v4329_v20 = vpop.eup %3167 }
 0x25e   : > { %5447 = vst [vmem:[#allocation56_spill] sm:$0xff] %v4329_v20 }
 0x25f   : > { %3169 = vpow2.f32 %v1230_v35  ;;  %1033 = vperm.xlu2 %3126, %v4094_v11  }
 0x260   : > { %3171 = vpow2.f32 %v1232_v60 }
 0x262   : > { %v1024_v2 = vpop.permute.xlu1 %1023 }
 0x263   : > { %v1160_v3 = vsub.f32 %v3845_v9, %v1024_v2  ;;  %v1161_v0 = vsub.f32 %v3847_v10, %v1024_v2 }
 0x265   : > { %v3170_v47 = vpop.eup %3169  ;;  %v1238_v61 = vmul.f32 1.442695, %v1160_v3  ;;  %v1240_v51 = vmul.f32 1.442695, %v1161_v0  ;;  %838 = vmax.xlane.f32.xlu1 %v837_v17  ;;  %v899_v17 = vsub.f32 %v4087_v33, %v4094_v11  ;;  %v4343_v3 = vld [vmem:[#allocation2 + $0xa0] sm:$0xff] }
 0x266   : > { %v3172_v35 = vpop.eup %3171  ;;  %1817 = vmatmul.f32.gmra.mxu2 %v3170_v47 }
 0x267   : > { %3173 = vpow2.f32 %v1238_v61  ;;  %1930 = vmatmul.f32.gmra.mxu3 %v3172_v35  ;;  %1636 = vperm.xlu2 %3126, %v4329_v20   ;;  %v4332_v60 = vadd.f32 %v3172_v35, %v3170_v47  ;;  %v4350_v35 = vpop.f32.mrf.mxu1 }
 0x268   : > { %3175 = vpow2.f32 %v1240_v51  ;;  %v940_v51 = vmul.f32 1.442695, %v899_v17  ;;  %5448 = vst [vmem:[#allocation57_spill] sm:$0xff] %v4350_v35 }
 0x26a   : > { %3177 = vpow2.f32 %v940_v51 }
 0x26b   : > { %v827_v9 = vpop.xlane.xlu0 %826 }
 0x26c   : > { %v4337_v10 = vmax.f32 %v4334_v53, %v827_v9  ;;  %v4352_v9 = vpop.f32.mrf.mxu0 }
 0x26d   : > { %v3174_v2 = vpop.eup %3173 }
 0x26e   : > { %v3176_v55 = vpop.eup %3175  ;;  %2097 = vst.msk [vmem:[#allocation2 + $0xa8] sm:$0xff] %vm343_vm0, %v4337_v10 }
 0x26f   : > { %v4345_v0 = vadd.f32 %v3176_v55, %v3174_v2 }
 0x270   : > { %v4358_v20 = vpop.eup %3177 }
 0x271   : > { %v824_v47 = vpop.xlane.xlu2 %823  ;;  %5449 = vst [vmem:[#allocation58_spill] sm:$0xff] %v4358_v20 }
 0x272   : > { %v4348_v61 = vmax.f32 %v4343_v3, %v824_v47  ;;  %v4360_v47 = vpop.f32.mrf.mxu1 }
 0x273   : > { %5450 = vst [vmem:[#allocation59_spill] sm:$0xff] %v4360_v47 }
 0x274   : > { %2096 = vst.msk [vmem:[#allocation2 + $0xa0] sm:$0xff] %vm343_vm0, %v4348_v61  ;;  %v4362_v17 = vpop.f32.mrf.mxu0 }
 0x275   : > { %5451 = vst [vmem:[#allocation60_spill] sm:$0xff] %v4362_v17 }
 0x279   : > { %v1019_v32 = vpop.permute.xlu2 %1018 }
 0x27a   : > { %v1158_v33 = vsub.f32 %v3839_v6, %v1019_v32  ;;  %v1159_v11 = vsub.f32 %v3841_v7, %v1019_v32  ;;  %v843_v6 = vmax.f32 %v4362_v17, %v4360_v47 }
 0x27c   : > { %v1234_v37 = vmul.f32 1.442695, %v1158_v33  ;;  %v1236_v4 = vmul.f32 1.442695, %v1159_v11 }
 0x27e   : > { %3179 = vpow2.f32 %v1234_v37  ;;  %v1029_v45 = vpop.permute.xlu0 %1028  ;;  %1641 = vperm.xlu1 %3128, %v4358_v20   ;;  %v4372_v20 = vld [vmem:[#allocation2 + $0xb0] sm:$0xff] }
 0x27f   : > { %3181 = vpow2.f32 %v1236_v4  ;;  %v1162_v51 = vsub.f32 %v3851_v12, %v1029_v45  ;;  %v1163_v26 = vsub.f32 %v3853_v13, %v1029_v45  ;;  %v840_v45 = vmax.f32 %v4352_v9, %v4350_v35 }
 0x281   : > { %v1242_v7 = vmul.f32 1.442695, %v1162_v51  ;;  %v1244_v32 = vmul.f32 1.442695, %v1163_v26 }
 0x283   : > { %3183 = vpow2.f32 %v1242_v7 }
 0x284   : > { %v3180_v33 = vpop.eup %3179  ;;  %3185 = vpow2.f32 %v1244_v32  ;;  %844 = vmax.xlane.f32.xlu0 %v843_v6  ;;  %v903_v6 = vsub.f32 %v4172_v57, %v4175_v1  ;;  %v4396_v57 = vpop.f32.mrf.mxu1 }
 0x285   : > { %v3182_v11 = vpop.eup %3181  ;;  %1820 = vmatmul.f32.gmra.mxu2 %v3180_v33  ;;  %5455 = vst [vmem:[#allocation64_spill] sm:$0xff] %v4396_v57 }
 0x286   : > { %1933 = vmatmul.f32.gmra.mxu3 %v3182_v11  ;;  %1053 = vperm.xlu1 %3128, %v4175_v1   ;;  %v4370_v37 = vadd.f32 %v3182_v11, %v3180_v33  ;;  %v948_v7 = vmul.f32 1.442695, %v903_v6  ;;  %v4393_v11 = vpop.permute.xlu0 %1631  ;;  %v4398_v1 = vpop.f32.mrf.mxu0 }
 0x287   : > { %5454 = vst [vmem:[#allocation63_spill] sm:$0xff] %v4393_v11 }
 0x288   : > { %3187 = vpow2.f32 %v948_v7  ;;  %5456 = vst [vmem:[#allocation65_spill] sm:$0xff] %v4398_v1 }
 0x289   : > { %v3184_v4 = vpop.eup %3183 }
 0x28a   : > { %v3186_v12 = vpop.eup %3185 }
 0x28b   : > { %v4374_v13 = vadd.f32 %v3186_v12, %v3184_v4 }
 0x28d   : > { %1823 = vmatmul.f32.gmra.mxu2 %v3174_v2  ;;  %v830_v26 = vpop.xlane.xlu1 %829 }
 0x28e   : > { %1936 = vmatmul.f32.gmra.mxu3 %v3176_v55  ;;  %v4379_v51 = vmax.f32 %v4372_v20, %v830_v26  ;;  %v4386_v32 = vpop.eup %3187  ;;  %v901_v55 = vsub.f32 %v4135_v62, %v4142_v58  ;;  %v4406_v26 = vld [vmem:[#allocation2 + $0xc0] sm:$0xff] }
 0x28f   : > { %5452 = vst [vmem:[#allocation61_spill] sm:$0xff] %v4386_v32 }
 0x290   : > { %2098 = vst.msk [vmem:[#allocation2 + $0xb0] sm:$0xff] %vm343_vm0, %v4379_v51  ;;  %841 = vmax.xlane.f32.xlu2 %v840_v45  ;;  %v944_v2 = vmul.f32 1.442695, %v901_v55 }
 0x292   : > { %3189 = vpow2.f32 %v944_v2  ;;  %v4409_v2 = vpop.permute.xlu2 %1621 }
 0x293   : > { %5458 = vst [vmem:[#allocation67_spill] sm:$0xff] %v4409_v2 }
 0x295   : > { %1826 = vmatmul.f32.gmra.mxu2 %v3184_v4  ;;  %v846_v4 = vmax.f32 %v4398_v1, %v4396_v57 }
 0x296   : > { %1939 = vmatmul.f32.gmra.mxu3 %v3186_v12 }
 0x298   : > { %1058 = vperm.xlu0 %3127, %v4185_v44   ;;  %v4404_v62 = vpop.eup %3189 }
 0x299   : > { %5457 = vst [vmem:[#allocation66_spill] sm:$0xff] %v4404_v62 }
 0x2a0   : > { %1661 = vperm.xlu0 %3127, %v4386_v32  }
 0x2a5   : > { %v4391_v33 = vpop.permute.xlu1 %1626 }
 0x2a6   : > { %5453 = vst [vmem:[#allocation62_spill] sm:$0xff] %v4391_v33 }
 0x2a8   : > { %1048 = vperm.xlu2 %3126, %v4161_v46  }
 0x2ad   : > { %v1039_v12 = vpop.permute.xlu1 %1038 }
 0x2ae   : > { %v1166_v45 = vsub.f32 %v3863_v18, %v1039_v12  ;;  %v1167_v58 = vsub.f32 %v3865_v19, %v1039_v12  ;;  %v4416_v19 = vld [vmem:[#allocation2 + $0xb8] sm:$0xff] }
 0x2b0   : > { %v1250_v6 = vmul.f32 1.442695, %v1166_v45  ;;  %v1252_v7 = vmul.f32 1.442695, %v1167_v58  ;;  %1651 = vperm.xlu2 %3126, %v4404_v62   ;;  %847 = vmax.xlane.f32.xlu1 %v846_v4  ;;  %v4418_v45 = vpop.f32.mrf.mxu0  ;;  %v4420_v58 = vpop.f32.mrf.mxu1  ;;  %v902_v4 = vsub.f32 %v4155_v38, %v4161_v46 }
 0x2b1   : > { %v836_v55 = vpop.xlane.xlu0 %835  ;;  %5459 = vst [vmem:[#allocation68_spill] sm:$0xff] %v4418_v45 }
 0x2b2   : > { %3191 = vpow2.f32 %v1250_v6  ;;  %v4412_v11 = vmax.f32 %v4406_v26, %v836_v55  ;;  %5460 = vst [vmem:[#allocation69_spill] sm:$0xff] %v4420_v58 }
 0x2b3   : > { %3193 = vpow2.f32 %v1252_v7  ;;  %v946_v7 = vmul.f32 1.442695, %v902_v4 }
 0x2b4   : > { %2100 = vst.msk [vmem:[#allocation2 + $0xc0] sm:$0xff] %vm343_vm0, %v4412_v11 }
 0x2b5   : > { %3195 = vpow2.f32 %v946_v7 }
 0x2b8   : > { %v3192_v18 = vpop.eup %3191  ;;  %v4433_v62 = vpop.f32.mrf.mxu0 }
 0x2b9   : > { %v3194_v12 = vpop.eup %3193  ;;  %5461 = vst [vmem:[#allocation70_spill] sm:$0xff] %v4433_v62  ;;  %v4435_v47 = vpop.f32.mrf.mxu1 }
 0x2ba   : > { %v833_v33 = vpop.xlane.xlu2 %832  ;;  %v4424_v6 = vadd.f32 %v3194_v12, %v3192_v18  ;;  %5462 = vst [vmem:[#allocation71_spill] sm:$0xff] %v4435_v47  ;;  %v852_v4 = vmax.f32 %v4433_v62, %v4435_v47  ;;  %v5476_v62 = vld [vmem:[#allocation25_spill] sm:$0xff] }
 0x2bb   : > { %v4427_v55 = vmax.f32 %v4416_v19, %v833_v33 }
 0x2bd   : > { %2099 = vst.msk [vmem:[#allocation2 + $0xb8] sm:$0xff] %vm343_vm0, %v4427_v55 }
 0x2c2   : > { %v1034_v2 = vpop.permute.xlu2 %1033 }
 0x2c3   : > { %v1164_v57 = vsub.f32 %v3857_v15, %v1034_v2  ;;  %v1165_v1 = vsub.f32 %v3859_v16, %v1034_v2  ;;  %v4441_v15 = vpop.eup %3195 }
 0x2c4   : > { %v1044_v38 = vpop.permute.xlu0 %1043  ;;  %5463 = vst [vmem:[#allocation72_spill] sm:$0xff] %v4441_v15 }
 0x2c5   : > { %v1246_v46 = vmul.f32 1.442695, %v1164_v57  ;;  %v1248_v17 = vmul.f32 1.442695, %v1165_v1  ;;  %v1168_v33 = vsub.f32 %v3878_v23, %v1044_v38  ;;  %v1169_v35 = vsub.f32 %v3880_v24, %v1044_v38 }
 0x2c7   : > { %3197 = vpow2.f32 %v1246_v46  ;;  %v1254_v7 = vmul.f32 1.442695, %v1168_v33  ;;  %v1256_v32 = vmul.f32 1.442695, %v1169_v35  ;;  %v849_v35 = vmax.f32 %v4418_v45, %v4420_v58 }
 0x2c8   : > { %3199 = vpow2.f32 %v1248_v17  ;;  %v4452_v17 = vld [vmem:[#allocation2 + $0xc8] sm:$0xff]  ;;  %v906_v46 = vsub.f32 %v4205_v43, %v4208_v50  ;;  %v4474_v43 = vpop.f32.mrf.mxu0 }
 0x2c9   : > { %3201 = vpow2.f32 %v1254_v7  ;;  %1656 = vperm.xlu1 %3128, %v4441_v15   ;;  %5467 = vst [vmem:[#allocation76_spill] sm:$0xff] %v4474_v43 }
 0x2ca   : > { %3203 = vpow2.f32 %v1256_v32  ;;  %853 = vmax.xlane.f32.xlu0 %v852_v4 }
 0x2cc   : > { %v4467_v4 = vpop.permute.xlu0 %1646 }
 0x2cd   : > { %v3198_v16 = vpop.eup %3197 }
 0x2ce   : > { %v3200_v57 = vpop.eup %3199  ;;  %1829 = vmatmul.f32.gmra.mxu2 %v3198_v16 }
 0x2cf   : > { %v3202_v23 = vpop.eup %3201  ;;  %1942 = vmatmul.f32.gmra.mxu3 %v3200_v57  ;;  %v4444_v24 = vadd.f32 %v3200_v57, %v3198_v16  ;;  %v4476_v16 = vld [vmem:[#allocation2 + $0xd8] sm:$0xff] }
 0x2d0   : > { %v3204_v1 = vpop.eup %3203 }
 0x2d1   : > { %1068 = vperm.xlu1 %3128, %v4208_v50   ;;  %v4447_v2 = vadd.f32 %v3204_v1, %v3202_v23  ;;  %v4472_v50 = vpop.f32.mrf.mxu1 }
 0x2d2   : > { %1403 = vadd.xlane.f32.xlu0 %v4219_v42  ;;  %v954_v42 = vmul.f32 1.442695, %v906_v46  ;;  %5466 = vst [vmem:[#allocation75_spill] sm:$0xff] %v4472_v50  ;;  %v4491_v46 = vpop.permute.xlu2 %1636 }
 0x2d3   : > { %5469 = vst [vmem:[#allocation78_spill] sm:$0xff] %v4491_v46  ;;  %v905_v46 = vsub.f32 %v4191_v54, %v4200_v39 }
 0x2d4   : > { %3205 = vpow2.f32 %v954_v42 }
 0x2d6   : > { %1832 = vmatmul.f32.gmra.mxu2 %v3192_v18  ;;  %v904_v18 = vsub.f32 %v4180_v14, %v4185_v44  ;;  %v855_v14 = vmax.f32 %v4474_v43, %v4472_v50 }
 0x2d7   : > { %1945 = vmatmul.f32.gmra.mxu3 %v3194_v12 }
 0x2d8   : > { %v839_v32 = vpop.xlane.xlu1 %838  ;;  %v950_v33 = vmul.f32 1.442695, %v904_v18 }
 0x2d9   : > { %v4455_v38 = vmax.f32 %v4452_v17, %v839_v32  ;;  %850 = vmax.xlane.f32.xlu2 %v849_v35 }
 0x2da   : > { %v4464_v12 = vpop.eup %3205  ;;  %3207 = vpow2.f32 %v950_v33  ;;  %v4493_v33 = vld [vmem:[#allocation2 + $0xd0] sm:$0xff] }
 0x2db   : > { %2101 = vst.msk [vmem:[#allocation2 + $0xc8] sm:$0xff] %vm343_vm0, %v4455_v38 }
 0x2dc   : > { %5464 = vst [vmem:[#allocation73_spill] sm:$0xff] %v4464_v12 }
 0x2de   : > { %1835 = vmatmul.f32.gmra.mxu2 %v3202_v23 }
 0x2df   : > { %1948 = vmatmul.f32.gmra.mxu3 %v3204_v1 }
 0x2e0   : > { %v4481_v57 = vpop.eup %3207 }
 0x2e1   : > { %5468 = vst [vmem:[#allocation77_spill] sm:$0xff] %v4481_v57 }
 0x2e6   : > { %1073 = vperm.xlu0 %3127, %v4255_v52  }
 0x2ee   : > { %1676 = vperm.xlu0 %3127, %v4464_v12  }
 0x2f0   : > { %v4469_v7 = vpop.permute.xlu1 %1641 }
 0x2f1   : > { %5465 = vst [vmem:[#allocation74_spill] sm:$0xff] %v4469_v7  ;;  %1063 = vperm.xlu2 %3126, %v4200_v39   ;;  %v4495_v7 = vpop.f32.mrf.mxu2 }
 0x2f2   : > { %5470 = vst [vmem:[#allocation79_spill] sm:$0xff] %v4495_v7  ;;  %v5473_v7 = vld [vmem:[#allocation26_spill] sm:$0xff] }
 0x2f6   : > { %1088 = vperm.xlu0 %3127, %v4348_v61  }
 0x2f7   : > { %v845_v44 = vpop.xlane.xlu0 %844 }
 0x2f8   : > { %v1054_v23 = vpop.permute.xlu1 %1053  ;;  %v4484_v1 = vmax.f32 %v4476_v16, %v845_v44 }
 0x2f9   : > { %v1172_v35 = vsub.f32 %v3907_v30, %v1054_v23  ;;  %v1173_v32 = vsub.f32 %v3909_v31, %v1054_v23  ;;  %1666 = vperm.xlu2 %3126, %v4481_v57   ;;  %v4497_v31 = vpop.f32.mrf.mxu3 }
 0x2fa   : > { %2103 = vst.msk [vmem:[#allocation2 + $0xd8] sm:$0xff] %vm343_vm0, %v4484_v1 }
 0x2fb   : > { %v1262_v42 = vmul.f32 1.442695, %v1172_v35  ;;  %v1264_v18 = vmul.f32 1.442695, %v1173_v32  ;;  %856 = vmax.xlane.f32.xlu1 %v855_v14  ;;  %5471 = vst [vmem:[#allocation80_spill] sm:$0xff] %v4497_v31 }
 0x2fc   : > { %v952_v14 = vmul.f32 1.442695, %v905_v46 }
 0x2fd   : > { %3209 = vpow2.f32 %v1262_v42  ;;  %v4508_v42 = vpop.f32.mrf.mxu2 }
 0x2fe   : > { %3211 = vpow2.f32 %v1264_v18  ;;  %5472 = vst [vmem:[#allocation81_spill] sm:$0xff] %v4508_v42 }
 0x2ff   : > { %3213 = vpow2.f32 %v952_v14 }
 0x301   : > { %v4512_v57 = vpop.f32.mrf.mxu3 }
 0x302   : > { %5474 = vst [vmem:[#allocation26_spill] sm:$0xff] %v4512_v57 }
 0x303   : > { %v3210_v44 = vpop.eup %3209  ;;  %v842_v30 = vpop.xlane.xlu2 %841 }
 0x304   : > { %v3212_v50 = vpop.eup %3211  ;;  %v4500_v23 = vmax.f32 %v4493_v33, %v842_v30  ;;  %v5475_v30 = vld [vmem:[#allocation24_spill] sm:$0xff] }
 0x305   : > { %v4504_v35 = vadd.f32 %v3212_v50, %v3210_v44  ;;  %v4516_v46 = vpop.eup %3213 }
 0x306   : > { %2102 = vst.msk [vmem:[#allocation2 + $0xd0] sm:$0xff] %vm343_vm0, %v4500_v23 }
 0x307   : > { %5477 = vst [vmem:[#allocation24_spill] sm:$0xff] %v4516_v46 }
 0x30a   : > { %v1059_v32 = vpop.permute.xlu0 %1058 }
 0x30b   : > { %v1174_v18 = vsub.f32 %v3921_v34, %v1059_v32  ;;  %v1175_v43 = vsub.f32 %v5473_v7, %v1059_v32  ;;  %v1049_v31 = vpop.permute.xlu2 %1048  ;;  %v4518_v34 = vpop.f32.mrf.mxu2 }
 0x30c   : > { %v1170_v47 = vsub.f32 %v5475_v30, %v1049_v31  ;;  %v1171_v39 = vsub.f32 %v5476_v62, %v1049_v31  ;;  %5478 = vst [vmem:[#allocation25_spill] sm:$0xff] %v4518_v34  ;;  %v4520_v7 = vpop.f32.mrf.mxu3 }
 0x30d   : > { %v1266_v54 = vmul.f32 1.442695, %v1174_v18  ;;  %v1268_v15 = vmul.f32 1.442695, %v1175_v43  ;;  %5479 = vst [vmem:[#allocation82_spill] sm:$0xff] %v4520_v7  ;;  %v4590_v7 = vld [vmem:[#allocation2 + $0xe8] sm:$0xff] }
 0x30e   : > { %v1258_v58 = vmul.f32 1.442695, %v1170_v47  ;;  %v1260_v45 = vmul.f32 1.442695, %v1171_v39  ;;  %v909_v39 = vsub.f32 %v4285_v41, %v4292_v28  ;;  %v907_v41 = vsub.f32 %v4252_v25, %v4255_v52 }
 0x30f   : > { %3215 = vpow2.f32 %v1266_v54 }
 0x310   : > { %3217 = vpow2.f32 %v1268_v15  ;;  %v4532_v15 = vld [vmem:[#allocation2 + $0xe0] sm:$0xff] }
 0x311   : > { %3219 = vpow2.f32 %v1258_v58 }
 0x312   : > { %3221 = vpow2.f32 %v1260_v45 }
 0x313   : > { %v4527_v58 = vpop.f32.mrf.mxu2 }
 0x314   : > { %1671 = vperm.xlu1 %3128, %v4516_v46   ;;  %5481 = vst [vmem:[#allocation84_spill] sm:$0xff] %v4527_v58  ;;  %v4529_v45 = vpop.f32.mrf.mxu3  ;;  %v5496_v58 = vld [vmem:[#allocation30_spill] sm:$0xff] }
 0x315   : > { %v3216_v32 = vpop.eup %3215  ;;  %5482 = vst [vmem:[#allocation85_spill] sm:$0xff] %v4529_v45  ;;  %v5495_v45 = vld [vmem:[#allocation29_spill] sm:$0xff] }
 0x316   : > { %v3218_v30 = vpop.eup %3217 }
 0x317   : > { %v3220_v62 = vpop.eup %3219  ;;  %v4523_v31 = vadd.f32 %v3218_v30, %v3216_v32 }
 0x318   : > { %v3222_v43 = vpop.eup %3221  ;;  %1838 = vmatmul.f32.gmra.mxu2 %v3220_v62 }
 0x319   : > { %5480 = vst [vmem:[#allocation83_spill] sm:$0xff] %v4523_v31  ;;  %1951 = vmatmul.f32.gmra.mxu3 %v3222_v43  ;;  %v4525_v47 = vadd.f32 %v3222_v43, %v3220_v62 }
 0x31b   : > { %v4540_v54 = vpop.f32.mrf.mxu2 }
 0x31c   : > { %5483 = vst [vmem:[#allocation86_spill] sm:$0xff] %v4540_v54  ;;  %v4542_v62 = vpop.f32.mrf.mxu3  ;;  %v4580_v54 = vpop.permute.xlu2 %1651 }
 0x31d   : > { %5484 = vst [vmem:[#allocation87_spill] sm:$0xff] %v4542_v62 }
 0x31e   : > { %5494 = vst [vmem:[#allocation97_spill] sm:$0xff] %v4580_v54 }
 0x320   : > { %1841 = vmatmul.f32.gmra.mxu2 %v3210_v44  ;;  %1415 = vadd.xlane.f32.xlu0 %v4301_v59  ;;  %v960_v59 = vmul.f32 1.442695, %v909_v39  ;;  %v4564_v39 = vld [vmem:[#allocation2 + $0xf0] sm:$0xff] }
 0x321   : > { %1954 = vmatmul.f32.gmra.mxu3 %v3212_v50  ;;  %5490 = vst [vmem:[#allocation93_spill] sm:$0xff] %v4564_v39 }
 0x322   : > { %1406 = vadd.xlane.f32.xlu2 %v4229_v49  ;;  %3223 = vpow2.f32 %v960_v59 }
 0x323   : > { %v848_v14 = vpop.xlane.xlu1 %847  ;;  %v4546_v50 = vpop.f32.mrf.mxu2 }
 0x324   : > { %v4536_v18 = vmax.f32 %v4532_v15, %v848_v14  ;;  %5485 = vst [vmem:[#allocation88_spill] sm:$0xff] %v4546_v50  ;;  %v4548_v49 = vpop.f32.mrf.mxu3  ;;  %v4557_v14 = vpop.permute.xlu0 %1661 }
 0x325   : > { %5486 = vst [vmem:[#allocation89_spill] sm:$0xff] %v4548_v49 }
 0x326   : > { %2104 = vst.msk [vmem:[#allocation2 + $0xe0] sm:$0xff] %vm343_vm0, %v4536_v18 }
 0x328   : > { %1844 = vmatmul.f32.gmra.mxu2 %v3216_v32  ;;  %v4550_v44 = vpop.eup %3223  ;;  %v956_v32 = vmul.f32 1.442695, %v907_v41 }
 0x329   : > { %1957 = vmatmul.f32.gmra.mxu3 %v3218_v30  ;;  %5487 = vst [vmem:[#allocation90_spill] sm:$0xff] %v4550_v44 }
 0x32a   : > { %3225 = vpow2.f32 %v956_v32  ;;  %v1338_v32 = vld [vmem:[#allocation3] sm:$0xff] }
 0x32b   : > { %v4555_v43 = vpop.f32.mrf.mxu2 }
 0x32c   : > { %5488 = vst [vmem:[#allocation91_spill] sm:$0xff] %v4555_v43  ;;  %v4559_v62 = vpop.f32.mrf.mxu3 }
 0x32d   : > { %5489 = vst [vmem:[#allocation92_spill] sm:$0xff] %v4559_v62 }
 0x330   : > { %v4577_v41 = vpop.eup %3225 }
 0x331   : > { %5493 = vst [vmem:[#allocation96_spill] sm:$0xff] %v4577_v41 }
 0x333   : > { %v4571_v52 = vpop.f32.mrf.mxu2 }
 0x334   : > { %1691 = vperm.xlu0 %3127, %v4550_v44   ;;  %5491 = vst [vmem:[#allocation94_spill] sm:$0xff] %v4571_v52  ;;  %v4573_v43 = vpop.f32.mrf.mxu3  ;;  %v5505_v44 = vld [vmem:[#allocation32_spill] sm:$0xff] }
 0x335   : > { %5492 = vst [vmem:[#allocation95_spill] sm:$0xff] %v4573_v43 }
 0x33a   : > { %1078 = vperm.xlu2 %3126, %v4265_v40  }
 0x33b   : > { %v4562_v30 = vpop.permute.xlu1 %1656  ;;  %v4586_v46 = vpop.f32.mrf.mxu2 }
 0x33c   : > { %1103 = vperm.xlu0 %3127, %v4427_v55   ;;  %5498 = vst [vmem:[#allocation29_spill] sm:$0xff] %v4586_v46 }
 0x33d   : > { %v854_v59 = vpop.xlane.xlu0 %853 }
 0x33e   : > { %v4568_v25 = vmax.f32 %v4564_v39, %v854_v59  ;;  %1409 = vadd.xlane.f32.xlu1 %v4247_v29  ;;  %v5497_v29 = vld [vmem:[#allocation31_spill] sm:$0xff] }
 0x33f   : > { %v1370_v42 = vmul.f32 %v5497_v29, %v1338_v32  ;;  %v5502_v32 = vld [vmem:[#allocation27_spill] sm:$0xff] }
 0x340   : > { %2106 = vst.msk [vmem:[#allocation2 + $0xf0] sm:$0xff] %vm343_vm0, %v4568_v25 }
 0x342   : > { %1681 = vperm.xlu2 %3126, %v4577_v41   ;;  %v4588_v41 = vpop.f32.mrf.mxu3 }
 0x343   : > { %v1069_v62 = vpop.permute.xlu1 %1068  ;;  %5499 = vst [vmem:[#allocation30_spill] sm:$0xff] %v4588_v41 }
 0x344   : > { %v1178_v59 = vsub.f32 %v5495_v45, %v1069_v62  ;;  %v1179_v57 = vsub.f32 %v5496_v58, %v1069_v62 }
 0x345   : > { %v1404_v52 = vpop.xlane.xlu0 %1403 }
 0x346   : > { %v1274_v49 = vmul.f32 1.442695, %v1178_v59  ;;  %v1276_v43 = vmul.f32 1.442695, %v1179_v57  ;;  %v1498_v50 = vadd.f32 %v1404_v52, %v1370_v42  ;;  %v908_v57 = vsub.f32 %v4260_v27, %v4265_v40  ;;  %v5504_v27 = vld [vmem:[#allocation33_spill] sm:$0xff] }
 0x348   : > { %3227 = vpow2.f32 %v1274_v49  ;;  %1530 = vst.msk [vmem:[#allocation3] sm:$0xff] %vm343_vm0, %v1498_v50 }
 0x349   : > { %3229 = vpow2.f32 %v1276_v43  ;;  %v958_v43 = vmul.f32 1.442695, %v908_v57  ;;  %v1764_v57 = vmul.f32 0.0, %v4467_v4 }
 0x34b   : > { %3231 = vpow2.f32 %v958_v43 }
 0x34c   : > { %v851_v54 = vpop.xlane.xlu2 %850 }
 0x34d   : > { %v4593_v45 = vmax.f32 %v4590_v7, %v851_v54  ;;  %v5503_v54 = vld [vmem:[#allocation28_spill] sm:$0xff] }
 0x34e   : > { %v3228_v58 = vpop.eup %3227 }
 0x34f   : > { %v3230_v62 = vpop.eup %3229  ;;  %2105 = vst.msk [vmem:[#allocation2 + $0xe8] sm:$0xff] %vm343_vm0, %v4593_v45 }
 0x350   : > { %v4599_v42 = vadd.f32 %v3230_v62, %v3228_v58 }
 0x351   : > { %v4601_v50 = vpop.f32.mrf.mxu2 }
 0x352   : > { %5500 = vst [vmem:[#allocation31_spill] sm:$0xff] %v4601_v50  ;;  %v4603_v49 = vpop.f32.mrf.mxu3 }
 0x353   : > { %5501 = vst [vmem:[#allocation98_spill] sm:$0xff] %v4603_v49 }
 0x354   : > { %v1064_v52 = vpop.permute.xlu2 %1063 }
 0x355   : > { %v1176_v59 = vsub.f32 %v5502_v32, %v1064_v52  ;;  %v1177_v29 = vsub.f32 %v5503_v54, %v1064_v52 }
 0x357   : > { %v1270_v41 = vmul.f32 1.442695, %v1176_v59  ;;  %v1272_v46 = vmul.f32 1.442695, %v1177_v29  ;;  %1083 = vperm.xlu1 %3128, %v4292_v28   ;;  %v4613_v59 = vpop.eup %3231  ;;  %v1342_v29 = vld [vmem:[#allocation3 + $0x20] sm:$0xff] }
 0x358   : > { %v1074_v34 = vpop.permute.xlu0 %1073 }
 0x359   : > { %3233 = vpow2.f32 %v1270_v41  ;;  %v1180_v40 = vsub.f32 %v5504_v27, %v1074_v34  ;;  %v1181_v12 = vsub.f32 %v5505_v44, %v1074_v34  ;;  %v1833_v50 = vpop.f32.mrf.mxu2 }
 0x35a   : > { %3235 = vpow2.f32 %v1272_v46  ;;  %v1946_v49 = vpop.f32.mrf.mxu3 }
 0x35b   : > { %v1278_v39 = vmul.f32 1.442695, %v1180_v40  ;;  %v1280_v32 = vmul.f32 1.442695, %v1181_v12  ;;  %v1947_v31 = vadd.f32 %v1946_v49, %v1833_v50  ;;  %v912_v12 = vsub.f32 %v4372_v20, %v4379_v51 }
 0x35c   : > { %v4646_v54 = vpop.permute.xlu2 %1666 }
 0x35d   : > { %3237 = vpow2.f32 %v1278_v39  ;;  %v4611_v52 = vadd.f32 %v1947_v31, %v1764_v57  ;;  %v4624_v31 = vld [vmem:[#allocation2 + $0xf8] sm:$0xff]  ;;  %v966_v50 = vmul.f32 1.442695, %v912_v12  ;;  %v911_v12 = vsub.f32 %v4334_v53, %v4337_v10 }
 0x35e   : > { %3239 = vpow2.f32 %v1280_v32 }
 0x35f   : > { %5506 = vst [vmem:[#allocation27_spill] sm:$0xff] %v4611_v52  ;;  %v3234_v28 = vpop.eup %3233  ;;  %1686 = vperm.xlu1 %3128, %v4613_v59   ;;  %3241 = vpow2.f32 %v966_v50  ;;  %v5509_v52 = vld [vmem:[#allocation35_spill] sm:$0xff] }
 0x360   : > { %v3236_v41 = vpop.eup %3235  ;;  %1847 = vmatmul.f32.gmra.mxu2 %v3234_v28 }
 0x361   : > { %1960 = vmatmul.f32.gmra.mxu3 %v3236_v41  ;;  %v4616_v34 = vadd.f32 %v3236_v41, %v3234_v28  ;;  %v4649_v40 = vpop.f32.mrf.mxu2  ;;  %v5508_v41 = vld [vmem:[#allocation38_spill] sm:$0xff] }
 0x362   : > { %v4651_v32 = vpop.f32.mrf.mxu3 }
 0x363   : > { %v3238_v46 = vpop.eup %3237 }
 0x364   : > { %v3240_v44 = vpop.eup %3239 }
 0x365   : > { %v4618_v4 = vadd.f32 %v3240_v44, %v3238_v46 }
 0x366   : > { %1424 = vadd.xlane.f32.xlu0 %v4345_v0  ;;  %v4631_v0 = vpop.eup %3241 }
 0x368   : > { %1850 = vmatmul.f32.gmra.mxu2 %v3228_v58  ;;  %v4636_v58 = vpop.permute.xlu0 %1676 }
 0x369   : > { %1963 = vmatmul.f32.gmra.mxu3 %v3230_v62 }
 0x36b   : > { %1412 = vadd.xlane.f32.xlu2 %v4297_v63  ;;  %v910_v63 = vsub.f32 %v4343_v3, %v4348_v61  ;;  %v1339_v3 = vld [vmem:[#allocation3 + $0x8] sm:$0xff]  ;;  %v5507_v61 = vld [vmem:[#allocation40_spill] sm:$0xff] }
 0x36c   : > { %v1374_v27 = vmul.f32 %v5507_v61, %v1342_v29 }
 0x36d   : > { %v962_v20 = vmul.f32 1.442695, %v910_v63  ;;  %v964_v63 = vmul.f32 1.442695, %v911_v12 }
 0x36e   : > { %v857_v39 = vpop.xlane.xlu1 %856 }
 0x36f   : > { %v4627_v49 = vmax.f32 %v4624_v31, %v857_v39  ;;  %3243 = vpow2.f32 %v962_v20  ;;  %v1766_v20 = vmul.f32 0.0, %v4562_v30  ;;  %v1767_v30 = vmul.f32 0.0, %v4557_v14 }
 0x370   : > { %1853 = vmatmul.f32.gmra.mxu2 %v3238_v46  ;;  %v4643_v43 = vpop.permute.xlu0 %1088  ;;  %3245 = vpow2.f32 %v964_v63  ;;  %v915_v14 = vsub.f32 %v4452_v17, %v4455_v38 }
 0x371   : > { %2107 = vst.msk [vmem:[#allocation2 + $0xf8] sm:$0xff] %vm343_vm0, %v4627_v49  ;;  %1966 = vmatmul.f32.gmra.mxu3 %v3240_v44 }
 0x375   : > { %v4641_v62 = vpop.eup %3243 }
 0x37a   : > { %1706 = vperm.xlu0 %3127, %v4631_v0  }
 0x382   : > { %1118 = vperm.xlu0 %3127, %v4500_v23  }
 0x383   : > { %1093 = vperm.xlu2 %3126, %v4337_v10  }
 0x389   : > { %1418 = vadd.xlane.f32.xlu1 %v4332_v60  ;;  %v1371_v60 = vmul.f32 %v5508_v41, %v1339_v3 }
 0x38b   : > { %1696 = vperm.xlu2 %3126, %v4641_v62  }
 0x393   : > { %v1416_v57 = vpop.xlane.xlu0 %1415 }
 0x394   : > { %v1502_v28 = vadd.f32 %v1416_v57, %v1374_v27  ;;  %v5510_v57 = vld [vmem:[#allocation34_spill] sm:$0xff] }
 0x395   : > { %v1407_v46 = vpop.xlane.xlu2 %1406 }
 0x396   : > { %1534 = vst.msk [vmem:[#allocation3 + $0x20] sm:$0xff] %vm343_vm0, %v1502_v28  ;;  %v1499_v44 = vadd.f32 %v1407_v46, %v1371_v60 }
 0x398   : > { %1531 = vst.msk [vmem:[#allocation3 + $0x8] sm:$0xff] %vm343_vm0, %v1499_v44  ;;  %v4665_v44 = vpop.eup %3245 }
 0x39b   : > { %v1839_v39 = vpop.f32.mrf.mxu2 }
 0x39c   : > { %v1952_v50 = vpop.f32.mrf.mxu3 }
 0x39d   : > { %v1953_v29 = vadd.f32 %v1952_v50, %v1839_v39  ;;  %v1079_v61 = vpop.permute.xlu2 %1078  ;;  %v4669_v50 = vpop.permute.xlu1 %1671 }
 0x39e   : > { %v1182_v27 = vsub.f32 %v5509_v52, %v1079_v61  ;;  %v1183_v3 = vsub.f32 %v5510_v57, %v1079_v61  ;;  %v972_v57 = vmul.f32 1.442695, %v915_v14 }
 0x39f   : > { %v4661_v41 = vadd.f32 %v1953_v29, %v1766_v20  ;;  %v5511_v20 = vld [vmem:[#allocation39_spill] sm:$0xff] }
 0x3a0   : > { %v1282_v28 = vmul.f32 1.442695, %v1182_v27  ;;  %v1284_v60 = vmul.f32 1.442695, %v1183_v3 }
 0x3a2   : > { %3247 = vpow2.f32 %v1282_v28  ;;  %1098 = vperm.xlu1 %3128, %v4379_v51   ;;  %v1340_v51 = vld [vmem:[#allocation3 + $0x10] sm:$0xff] }
 0x3a3   : > { %3249 = vpow2.f32 %v1284_v60  ;;  %v1842_v53 = vpop.f32.mrf.mxu2  ;;  %v1372_v29 = vmul.f32 %v5511_v20, %v1340_v51 }
 0x3a4   : > { %v1955_v10 = vpop.f32.mrf.mxu3  ;;  %3251 = vpow2.f32 %v972_v57 }
 0x3a5   : > { %v1956_v46 = vadd.f32 %v1955_v10, %v1842_v53  ;;  %v5512_v53 = vld [vmem:[#allocation36_spill] sm:$0xff] }
 0x3a6   : > { %v4685_v28 = vpop.permute.xlu0 %1691 }
 0x3a7   : > { %v4667_v52 = vadd.f32 %v1956_v46, %v1767_v30  ;;  %v5513_v46 = vld [vmem:[#allocation37_spill] sm:$0xff] }
 0x3a8   : > { %v3248_v12 = vpop.eup %3247 }
 0x3a9   : > { %v3250_v39 = vpop.eup %3249  ;;  %1856 = vmatmul.f32.gmra.mxu2 %v3248_v12 }
 0x3aa   : > { %1969 = vmatmul.f32.gmra.mxu3 %v3250_v39  ;;  %1701 = vperm.xlu1 %3128, %v4665_v44   ;;  %v4672_v63 = vadd.f32 %v3250_v39, %v3248_v12  ;;  %v4680_v3 = vpop.eup %3251  ;;  %v1186_v39 = vsub.f32 %v4193_v5, %v4643_v43  ;;  %v4701_v5 = vpop.permute.xlu2 %1681 }
 0x3ac   : > { %1433 = vadd.xlane.f32.xlu0 %v4424_v6  ;;  %v913_v6 = vsub.f32 %v4416_v19, %v4427_v55  ;;  %v1187_v19 = vsub.f32 %v4195_v36, %v4643_v43  ;;  %v1290_v51 = vmul.f32 1.442695, %v1186_v39 }
 0x3ae   : > { %v968_v17 = vmul.f32 1.442695, %v913_v6  ;;  %v4695_v55 = vpop.permute.xlu0 %1103 }
 0x3b0   : > { %3253 = vpow2.f32 %v968_v17  ;;  %v1341_v17 = vld [vmem:[#allocation3 + $0x18] sm:$0xff] }
 0x3b1   : > { %v1410_v61 = vpop.xlane.xlu1 %1409 }
 0x3b2   : > { %v1500_v27 = vadd.f32 %v1410_v61, %v1372_v29  ;;  %v1292_v29 = vmul.f32 1.442695, %v1187_v19  ;;  %v1769_v19 = vmul.f32 0.0, %v4669_v50  ;;  %v1770_v50 = vmul.f32 0.0, %v4636_v58 }
 0x3b3   : > { %v918_v58 = vsub.f32 %v4532_v15, %v4536_v18  ;;  %v916_v15 = vsub.f32 %v4493_v33, %v4500_v23  ;;  %v1193_v33 = vsub.f32 %v4272_v56, %v4695_v55  ;;  %v1348_v23 = vld [vmem:[#allocation3 + $0x50] sm:$0xff] }
 0x3b4   : > { %1532 = vst.msk [vmem:[#allocation3 + $0x10] sm:$0xff] %vm343_vm0, %v1500_v27  ;;  %1421 = vadd.xlane.f32.xlu2 %v4370_v37  ;;  %v1345_v27 = vld [vmem:[#allocation3 + $0x38] sm:$0xff] }
 0x3b5   : > { %v1377_v43 = vmul.f32 %v4237_v21, %v1345_v27 }
 0x3b6   : > { %v4697_v20 = vpop.eup %3253 }
 0x3c0   : > { %1721 = vperm.xlu0 %3127, %v4680_v3  }
 0x3c8   : > { %1133 = vperm.xlu0 %3127, %v4593_v45  }
 0x3c9   : > { %v1084_v60 = vpop.permute.xlu1 %1083 }
 0x3ca   : > { %v1184_v10 = vsub.f32 %v5512_v53, %v1084_v60  ;;  %v1185_v30 = vsub.f32 %v5513_v46, %v1084_v60  ;;  %v4706_v60 = vpop.f32.mrf.mxu2  ;;  %v5514_v46 = vld [vmem:[#allocation41_spill] sm:$0xff] }
 0x3cc   : > { %v1286_v37 = vmul.f32 1.442695, %v1184_v10  ;;  %v1288_v12 = vmul.f32 1.442695, %v1185_v30  ;;  %1108 = vperm.xlu2 %3126, %v4412_v11   ;;  %v1373_v30 = vmul.f32 %v5514_v46, %v1341_v17 }
 0x3ce   : > { %3255 = vpow2.f32 %v1286_v37 }
 0x3cf   : > { %3257 = vpow2.f32 %v1288_v12 }
 0x3d0   : > { %3259 = vpow2.f32 %v1290_v51 }
 0x3d1   : > { %3261 = vpow2.f32 %v1292_v29  ;;  %v914_v29 = vsub.f32 %v4406_v26, %v4412_v11 }
 0x3d4   : > { %v3256_v14 = vpop.eup %3255  ;;  %1711 = vperm.xlu2 %3126, %v4697_v20   ;;  %1427 = vadd.xlane.f32.xlu1 %v4374_v13  ;;  %v4710_v13 = vpop.f32.mrf.mxu3 }
 0x3d5   : > { %v3258_v61 = vpop.eup %3257  ;;  %1859 = vmatmul.f32.gmra.mxu2 %v3256_v14 }
 0x3d6   : > { %1972 = vmatmul.f32.gmra.mxu3 %v3258_v61  ;;  %v4703_v36 = vadd.f32 %v3258_v61, %v3256_v14  ;;  %v4708_v53 = vpop.eup %3259  ;;  %v5515_v61 = vld [vmem:[#allocation42_spill] sm:$0xff] }
 0x3d7   : > { %v4713_v10 = vpop.eup %3261 }
 0x3d9   : > { %v1425_v57 = vpop.xlane.xlu0 %1424 }
 0x3da   : > { %v1505_v6 = vadd.f32 %v1425_v57, %v1377_v43  ;;  %v5516_v43 = vld [vmem:[#allocation43_spill] sm:$0xff] }
 0x3dc   : > { %1537 = vst.msk [vmem:[#allocation3 + $0x38] sm:$0xff] %vm343_vm0, %v1505_v6 }
 0x3dd   : > { %1862 = vmatmul.f32.gmra.mxu2 %v4708_v53 }
 0x3de   : > { %1975 = vmatmul.f32.gmra.mxu3 %v4713_v10  ;;  %v1413_v21 = vpop.xlane.xlu2 %1412 }
 0x3df   : > { %v1501_v37 = vadd.f32 %v1413_v21, %v1373_v30  ;;  %v970_v30 = vmul.f32 1.442695, %v914_v29  ;;  %v1687_v29 = vpop.permute.xlu1 %1686 }
 0x3e1   : > { %1533 = vst.msk [vmem:[#allocation3 + $0x18] sm:$0xff] %vm343_vm0, %v1501_v37 }
 0x3e3   : > { %v1848_v12 = vpop.f32.mrf.mxu2 }
 0x3e4   : > { %v1961_v39 = vpop.f32.mrf.mxu3 }
 0x3e5   : > { %v1962_v51 = vadd.f32 %v1961_v39, %v1848_v12 }
 0x3e6   : > { %v1094_v14 = vpop.permute.xlu2 %1093 }
 0x3e7   : > { %v1188_v27 = vsub.f32 %v5515_v61, %v1094_v14  ;;  %v1189_v57 = vsub.f32 %v5516_v43, %v1094_v14  ;;  %v4724_v6 = vadd.f32 %v1962_v51, %v1769_v19  ;;  %v978_v14 = vmul.f32 1.442695, %v918_v58  ;;  %v5519_v58 = vld [vmem:[#allocation51_spill] sm:$0xff] }
 0x3e9   : > { %v1294_v17 = vmul.f32 1.442695, %v1188_v27  ;;  %v1296_v46 = vmul.f32 1.442695, %v1189_v57 }
 0x3eb   : > { %3263 = vpow2.f32 %v1294_v17  ;;  %v1851_v21 = vpop.f32.mrf.mxu2  ;;  %v974_v17 = vmul.f32 1.442695, %v916_v15 }
 0x3ec   : > { %3265 = vpow2.f32 %v1296_v46  ;;  %v1964_v37 = vpop.f32.mrf.mxu3  ;;  %v4744_v57 = vpop.permute.xlu0 %1706 }
 0x3ed   : > { %v1965_v12 = vadd.f32 %v1964_v37, %v1851_v21  ;;  %1113 = vperm.xlu1 %3128, %v4455_v38   ;;  %3267 = vpow2.f32 %v970_v30  ;;  %v1343_v38 = vld [vmem:[#allocation3 + $0x28] sm:$0xff]  ;;  %5517 = vst [vmem:[#allocation28_spill] sm:$0xff] %v4744_v57 }
 0x3ee   : > { %v1375_v61 = vmul.f32 %v4249_v48, %v1343_v38  ;;  %3269 = vpow2.f32 %v978_v14  ;;  %v5518_v30 = vld [vmem:[#allocation45_spill] sm:$0xff]  ;;  %v1380_v38 = vmul.f32 %v5519_v58, %v1348_v23 }
 0x3ef   : > { %v4728_v11 = vadd.f32 %v1965_v12, %v1770_v50  ;;  %3271 = vpow2.f32 %v974_v17  ;;  %v1192_v12 = vsub.f32 %v4274_v22, %v4695_v55  ;;  %v1344_v55 = vld [vmem:[#allocation3 + $0x30] sm:$0xff] }
 0x3f1   : > { %v3264_v26 = vpop.eup %3263 }
 0x3f2   : > { %v3266_v39 = vpop.eup %3265  ;;  %1442 = vadd.xlane.f32.xlu0 %v4504_v35  ;;  %1865 = vmatmul.f32.gmra.mxu2 %v3264_v26 }
 0x3f3   : > { %1978 = vmatmul.f32.gmra.mxu3 %v3266_v39  ;;  %v4731_v19 = vadd.f32 %v3266_v39, %v3264_v26  ;;  %v4733_v51 = vpop.eup %3267  ;;  %v1304_v39 = vmul.f32 1.442695, %v1193_v33  ;;  %v4767_v15 = vpop.f32.mrf.mxu2  ;;  %v1772_v33 = vmul.f32 0.0, %v1687_v29  ;;  %v921_v29 = vsub.f32 %v4624_v31, %v4627_v49  ;;  %v1346_v31 = vld [vmem:[#allocation3 + $0x40] sm:$0xff] }
 0x3f4   : > { %v4741_v35 = vpop.eup %3269  ;;  %v4769_v17 = vpop.f32.mrf.mxu3 }
 0x3f5   : > { %1716 = vperm.xlu1 %3128, %v4733_v51   ;;  %v4757_v26 = vpop.eup %3271 }
 0x3fc   : > { %v1419_v27 = vpop.xlane.xlu1 %1418 }
 0x3fd   : > { %v1503_v43 = vadd.f32 %v1419_v27, %v1375_v61  ;;  %1430 = vadd.xlane.f32.xlu2 %v4444_v24  ;;  %v4751_v24 = vpop.permute.xlu0 %1118  ;;  %v4761_v61 = vpop.permute.xlu2 %1696 }
 0x3ff   : > { %1535 = vst.msk [vmem:[#allocation3 + $0x28] sm:$0xff] %vm343_vm0, %v1503_v43 }
 0x406   : > { %1736 = vperm.xlu0 %3127, %v4741_v35  }
 0x414   : > { %v1099_v46 = vpop.permute.xlu1 %1098 }
 0x415   : > { %v1190_v48 = vsub.f32 %v4239_v8, %v1099_v46  ;;  %v1191_v21 = vsub.f32 %v5518_v30, %v1099_v46  ;;  %1123 = vperm.xlu2 %3126, %v4484_v1   ;;  %v1302_v8 = vmul.f32 1.442695, %v1192_v12  ;;  %v5520_v46 = vld [vmem:[#allocation47_spill] sm:$0xff] }
 0x417   : > { %v1298_v37 = vmul.f32 1.442695, %v1190_v48  ;;  %v1300_v50 = vmul.f32 1.442695, %v1191_v21  ;;  %v1376_v48 = vmul.f32 %v5520_v46, %v1344_v55 }
 0x419   : > { %3273 = vpow2.f32 %v1298_v37 }
 0x41a   : > { %3275 = vpow2.f32 %v1300_v50 }
 0x41b   : > { %3277 = vpow2.f32 %v1302_v8 }
 0x41c   : > { %3279 = vpow2.f32 %v1304_v39  ;;  %v5521_v39 = vld [vmem:[#allocation49_spill] sm:$0xff] }
 0x41d   : > { %1726 = vperm.xlu2 %3126, %v4757_v26  }
 0x41f   : > { %v3274_v14 = vpop.eup %3273  ;;  %v1434_v27 = vpop.xlane.xlu0 %1433  ;;  %1436 = vadd.xlane.f32.xlu1 %v4447_v2 }
 0x420   : > { %v3276_v22 = vpop.eup %3275  ;;  %v1508_v43 = vadd.f32 %v1434_v27, %v1380_v38  ;;  %1868 = vmatmul.f32.gmra.mxu2 %v3274_v14  ;;  %v5522_v38 = vld [vmem:[#allocation48_spill] sm:$0xff] }
 0x421   : > { %1981 = vmatmul.f32.gmra.mxu3 %v3276_v22  ;;  %v4764_v56 = vadd.f32 %v3276_v22, %v3274_v14  ;;  %v4772_v30 = vpop.eup %3277  ;;  %v917_v22 = vsub.f32 %v4476_v16, %v4484_v1  ;;  %v4793_v1 = vpop.permute.xlu1 %1701 }
 0x422   : > { %1540 = vst.msk [vmem:[#allocation3 + $0x50] sm:$0xff] %vm343_vm0, %v1508_v43  ;;  %v4774_v21 = vpop.eup %3279 }
 0x423   : > { %v976_v46 = vmul.f32 1.442695, %v917_v22  ;;  %5523 = vst [vmem:[#allocation33_spill] sm:$0xff] %v4793_v1 }
 0x427   : > { %v1422_v2 = vpop.xlane.xlu2 %1421 }
 0x428   : > { %v1504_v37 = vadd.f32 %v1422_v2, %v1376_v48  ;;  %1871 = vmatmul.f32.gmra.mxu2 %v4772_v30  ;;  %v984_v48 = vmul.f32 1.442695, %v921_v29  ;;  %v5527_v29 = vld [vmem:[#allocation54_spill] sm:$0xff] }
 0x429   : > { %1984 = vmatmul.f32.gmra.mxu3 %v4774_v21 }
 0x42a   : > { %1536 = vst.msk [vmem:[#allocation3 + $0x30] sm:$0xff] %vm343_vm0, %v1504_v37 }
 0x42c   : > { %v1857_v50 = vpop.f32.mrf.mxu2 }
 0x42d   : > { %v1970_v12 = vpop.f32.mrf.mxu3 }
 0x42e   : > { %v1971_v23 = vadd.f32 %v1970_v12, %v1857_v50 }
 0x42f   : > { %v1109_v8 = vpop.permute.xlu2 %1108 }
 0x430   : > { %v1194_v58 = vsub.f32 %v5521_v39, %v1109_v8  ;;  %v1195_v14 = vsub.f32 %v5522_v38, %v1109_v8  ;;  %1451 = vadd.xlane.f32.xlu0 %v4599_v42  ;;  %v4782_v27 = vadd.f32 %v1971_v23, %v1772_v33  ;;  %v919_v39 = vsub.f32 %v4590_v7, %v4593_v45  ;;  %v1351_v7 = vld [vmem:[#allocation3 + $0x68] sm:$0xff] }
 0x432   : > { %v1306_v43 = vmul.f32 1.442695, %v1194_v58  ;;  %v1308_v55 = vmul.f32 1.442695, %v1195_v14  ;;  %v4802_v8 = vpop.permute.xlu0 %1721  ;;  %v1773_v14 = vmul.f32 0.0, %v4685_v28  ;;  %v1198_v28 = vsub.f32 %v4352_v9, %v4751_v24 }
 0x433   : > { %5525 = vst [vmem:[#allocation32_spill] sm:$0xff] %v4802_v8 }
 0x434   : > { %3281 = vpow2.f32 %v1306_v43  ;;  %v980_v43 = vmul.f32 1.442695, %v919_v39  ;;  %v5530_v39 = vld [vmem:[#allocation57_spill] sm:$0xff] }
 0x435   : > { %3283 = vpow2.f32 %v1308_v55 }
 0x436   : > { %3285 = vpow2.f32 %v976_v46 }
 0x437   : > { %3287 = vpow2.f32 %v984_v48 }
 0x438   : > { %1128 = vperm.xlu1 %3128, %v4536_v18   ;;  %v5524_v18 = vld [vmem:[#allocation56_spill] sm:$0xff]  ;;  %3289 = vpow2.f32 %v980_v43  ;;  %v4822_v43 = vpop.permute.xlu2 %1711 }
 0x439   : > { %v1378_v12 = vmul.f32 %v5524_v18, %v1346_v31  ;;  %v2110_v31 = vld [vmem:[#allocation3 + $0x10] sm:$0xff] }
 0x43a   : > { %v3282_v2 = vpop.eup %3281  ;;  %3291 = vrcp.f32 %v2110_v31  ;;  %vm2173_vm2 = vweird.f32 %v2110_v31 }
 0x43b   : > { %v3284_v37 = vpop.eup %3283  ;;  %1874 = vmatmul.f32.gmra.mxu2 %v3282_v2 }
 0x43c   : > { %1987 = vmatmul.f32.gmra.mxu3 %v3284_v37  ;;  %v4789_v42 = vadd.f32 %v3284_v37, %v3282_v2  ;;  %v4791_v16 = vpop.eup %3285  ;;  %v5528_v2 = vld [vmem:[#allocation53_spill] sm:$0xff] }
 0x43d   : > { %v4796_v50 = vpop.eup %3287 }
 0x440   : > { %1731 = vperm.xlu1 %3128, %v4791_v16  }
 0x444   : > { %1751 = vperm.xlu0 %3127, %v4796_v50  }
 0x446   : > { %1439 = vadd.xlane.f32.xlu2 %v4525_v47  ;;  %v4809_v47 = vpop.permute.xlu0 %1133 }
 0x447   : > { %v1428_v33 = vpop.xlane.xlu1 %1427 }
 0x448   : > { %v1506_v23 = vadd.f32 %v1428_v33, %v1378_v12  ;;  %v5529_v12 = vld [vmem:[#allocation61_spill] sm:$0xff] }
 0x449   : > { %v1383_v33 = vmul.f32 %v5529_v12, %v1351_v7 }
 0x44a   : > { %1538 = vst.msk [vmem:[#allocation3 + $0x40] sm:$0xff] %vm343_vm0, %v1506_v23  ;;  %v4817_v23 = vpop.eup %3289 }
 0x458   : > { %v1860_v58 = vpop.f32.mrf.mxu2 }
 0x459   : > { %v1973_v38 = vpop.f32.mrf.mxu3 }
 0x45a   : > { %v1974_v22 = vadd.f32 %v1973_v38, %v1860_v58  ;;  %v1199_v58 = vsub.f32 %v5530_v39, %v4751_v24  ;;  %v1347_v24 = vld [vmem:[#allocation3 + $0x48] sm:$0xff] }
 0x45c   : > { %v4807_v55 = vadd.f32 %v1974_v22, %v1773_v14  ;;  %v1314_v22 = vmul.f32 1.442695, %v1198_v28  ;;  %v1316_v9 = vmul.f32 1.442695, %v1199_v58 }
 0x45e   : > { %5526 = vst [vmem:[#allocation40_spill] sm:$0xff] %v4807_v55  ;;  %1138 = vperm.xlu2 %3126, %v4568_v25   ;;  %v5562_v55 = vld [vmem:[#allocation44_spill] sm:$0xff] }
 0x45f   : > { %v1114_v46 = vpop.permute.xlu1 %1113  ;;  %v1754_v1 = vmul.f32 0.0, %v5562_v55 }
 0x460   : > { %v1196_v48 = vsub.f32 %v5527_v29, %v1114_v46  ;;  %v1197_v37 = vsub.f32 %v5528_v2, %v1114_v46  ;;  %v3292_v46 = vpop.eup %3291 }
 0x461   : > { %v2169_v7 = vmul.f32 %v3292_v46, %v2110_v31  ;;  %vm2174_vm1 = vweird.f32 %v3292_v46 }
 0x462   : > { %v1310_v45 = vmul.f32 1.442695, %v1196_v48  ;;  %v1312_v18 = vmul.f32 1.442695, %v1197_v37  ;;  %v5531_v48 = vld [vmem:[#allocation83_spill] sm:$0xff]  ;;  %vm2175_vm3 = vmor %vm2173_vm2, %vm2174_vm1 }
 0x463   : > { %v2170_v39 = vsub.f32 1.0, %v2169_v7  ;;  %v5535_v7 = vld [vmem:[#allocation93_spill] sm:$0xff] }
 0x464   : > { %3293 = vpow2.f32 %v1310_v45  ;;  %v5532_v45 = vld [vmem:[#allocation58_spill] sm:$0xff] }
 0x465   : > { %3295 = vpow2.f32 %v1312_v18  ;;  %v1443_v38 = vpop.xlane.xlu0 %1442  ;;  %v1379_v18 = vmul.f32 %v5532_v45, %v1347_v24  ;;  %v2179_v45 = vand.u32 2147483648, %v2110_v31 }
 0x466   : > { %v1511_v14 = vadd.f32 %v1443_v38, %v1383_v33  ;;  %1741 = vperm.xlu2 %3126, %v4817_v23   ;;  %3297 = vpow2.f32 %v1314_v22  ;;  %v2171_v38 = vmul.f32 %v3292_v46, %v2170_v39  ;;  %v5533_v22 = vld [vmem:[#allocation60_spill] sm:$0xff] }
 0x467   : > { %3299 = vpow2.f32 %v1316_v9  ;;  %v5534_v9 = vld [vmem:[#allocation59_spill] sm:$0xff]  ;;  %v2180_v39 = vor.u32 1.1754944e-38, %v2179_v45 }
 0x468   : > { %1543 = vst.msk [vmem:[#allocation3 + $0x68] sm:$0xff] %vm343_vm0, %v1511_v14 }
 0x46a   : > { %v3294_v29 = vpop.eup %3293  ;;  %1445 = vadd.xlane.f32.xlu1 %v5531_v48  ;;  %v2172_v48 = vadd.f32 %v3292_v46, %v2171_v38 }
 0x46b   : > { %v3296_v2 = vpop.eup %3295  ;;  %1877 = vmatmul.f32.gmra.mxu2 %v3294_v29 }
 0x46c   : > { %1990 = vmatmul.f32.gmra.mxu3 %v3296_v2  ;;  %v4826_v37 = vadd.f32 %v3296_v2, %v3294_v29  ;;  %v4830_v33 = vpop.eup %3297 }
 0x46d   : > { %v4832_v58 = vpop.eup %3299 }
 0x46e   : > { %1460 = vadd.xlane.f32.xlu0 %v4703_v36 }
 0x470   : > { %v1431_v28 = vpop.xlane.xlu2 %1430 }
 0x471   : > { %v1507_v12 = vadd.f32 %v1431_v28, %v1379_v18  ;;  %v920_v18 = vsub.f32 %v5535_v7, %v4568_v25  ;;  %v2177_v28 = vand.u32 2147483647, %v2110_v31  ;;  %v2108_v25 = vld [vmem:[#allocation3] sm:$0xff] }
 0x472   : > { %vm2145_vm6 = vweird.f32 %v2108_v25 }
 0x473   : > { %1539 = vst.msk [vmem:[#allocation3 + $0x48] sm:$0xff] %vm343_vm0, %v1507_v12  ;;  %1880 = vmatmul.f32.gmra.mxu2 %v4830_v33  ;;  %v2176_v12 = vsel %vm2175_vm3, %v3292_v46, %v2172_v48  ;;  %v982_v8 = vmul.f32 1.442695, %v920_v18  ;;  %vm2178_vm4 = vcmp.eq.f32.partialorder %v2177_v28, 8.507059e+37  ;;  %v1349_v46 = vld [vmem:[#allocation3 + $0x58] sm:$0xff]  ;;  %v5537_v48 = vld [vmem:[#allocation66_spill] sm:$0xff] }
 0x474   : > { %1993 = vmatmul.f32.gmra.mxu3 %v4832_v58  ;;  %v1354_v28 = vld [vmem:[#allocation3 + $0x80] sm:$0xff] }
 0x478   : > { %v1124_v14 = vpop.permute.xlu2 %1123  ;;  %v4852_v7 = vpop.permute.xlu0 %1736 }
 0x479   : > { %v1200_v36 = vsub.f32 %v5533_v22, %v1124_v14  ;;  %v1201_v29 = vsub.f32 %v5534_v9, %v1124_v14  ;;  %v2181_v22 = vsel %vm2178_vm4, %v2180_v39, %v2176_v12  ;;  %v4846_v9 = vpop.permute.xlu1 %1716  ;;  %5538 = vst [vmem:[#allocation35_spill] sm:$0xff] %v4852_v7  ;;  %v2151_v39 = vand.u32 2147483648, %v2108_v25 }
 0x47a   : > { %5536 = vst [vmem:[#allocation38_spill] sm:$0xff] %v4846_v9  ;;  %v5541_v9 = vld [vmem:[#allocation64_spill] sm:$0xff] }
 0x47b   : > { %v1318_v2 = vmul.f32 1.442695, %v1200_v36  ;;  %v1320_v24 = vmul.f32 1.442695, %v1201_v29 }
 0x47d   : > { %3301 = vpow2.f32 %v1318_v2 }
 0x47e   : > { %3303 = vpow2.f32 %v1320_v24 }
 0x47f   : > { %3305 = vpow2.f32 %v982_v8 }
 0x480   : > { %3307 = vrcp.f32 %v2108_v25 }
 0x482   : > { %2632 = vperm.xlu0 %3127, %v2181_v22   ;;  %v2113_v22 = vld [vmem:[#allocation3 + $0x28] sm:$0xff] }
 0x483   : > { %v3302_v14 = vpop.eup %3301  ;;  %1143 = vperm.xlu1 %3128, %v4627_v49   ;;  %v1381_v49 = vmul.f32 %v5537_v48, %v1349_v46  ;;  %3309 = vrcp.f32 %v2113_v22  ;;  %vm2215_vm10 = vweird.f32 %v2113_v22 }
 0x484   : > { %v3304_v38 = vpop.eup %3303  ;;  %1883 = vmatmul.f32.gmra.mxu2 %v3302_v14 }
 0x485   : > { %1996 = vmatmul.f32.gmra.mxu3 %v3304_v38  ;;  %v4842_v36 = vadd.f32 %v3304_v38, %v3302_v14  ;;  %v4844_v31 = vpop.eup %3305  ;;  %v2149_v14 = vand.u32 2147483647, %v2108_v25 }
 0x486   : > { %v3308_v29 = vpop.eup %3307 }
 0x487   : > { %v2141_v24 = vmul.f32 %v3308_v29, %v2108_v25  ;;  %vm2146_vm5 = vweird.f32 %v3308_v29  ;;  %vm2150_vm8 = vcmp.eq.f32.partialorder %v2149_v14, 8.507059e+37  ;;  %v5543_v14 = vld [vmem:[#allocation69_spill] sm:$0xff] }
 0x488   : > { %vm2147_vm7 = vmor %vm2145_vm6, %vm2146_vm5 }
 0x489   : > { %v2142_v45 = vsub.f32 1.0, %v2141_v24  ;;  %v3310_v24 = vpop.eup %3309 }
 0x48a   : > { %v2211_v25 = vmul.f32 %v3310_v24, %v2113_v22  ;;  %vm2216_vm9 = vweird.f32 %v3310_v24 }
 0x48b   : > { %1746 = vperm.xlu1 %3128, %v4844_v31   ;;  %v2143_v18 = vmul.f32 %v3308_v29, %v2142_v45  ;;  %vm2217_vm11 = vmor %vm2215_vm10, %vm2216_vm9 }
 0x48d   : > { %v2144_v12 = vadd.f32 %v3308_v29, %v2143_v18  ;;  %v5540_v18 = vld [vmem:[#allocation65_spill] sm:$0xff] }
 0x48f   : > { %1448 = vadd.xlane.f32.xlu2 %v4616_v34  ;;  %v5539_v34 = vld [vmem:[#allocation73_spill] sm:$0xff]  ;;  %v2148_v48 = vsel %vm2147_vm7, %v3308_v29, %v2144_v12  ;;  %v5542_v12 = vld [vmem:[#allocation68_spill] sm:$0xff] }
 0x490   : > { %v1386_v38 = vmul.f32 %v5539_v34, %v1354_v28  ;;  %v2109_v29 = vld [vmem:[#allocation3 + $0x8] sm:$0xff] }
 0x491   : > { %vm2159_vm14 = vweird.f32 %v2109_v29 }
 0x492   : > { %v1437_v2 = vpop.xlane.xlu1 %1436 }
 0x493   : > { %v1509_v8 = vadd.f32 %v1437_v2, %v1381_v49  ;;  %v2152_v2 = vor.u32 1.1754944e-38, %v2151_v39  ;;  %v1204_v39 = vsub.f32 %v5542_v12, %v4809_v47 }
 0x495   : > { %1541 = vst.msk [vmem:[#allocation3 + $0x58] sm:$0xff] %vm343_vm0, %v1509_v8  ;;  %v2153_v8 = vsel %vm2150_vm8, %v2152_v2, %v2148_v48  ;;  %v4863_v48 = vpop.permute.xlu2 %1726 }
 0x496   : > { %5544 = vst [vmem:[#allocation34_spill] sm:$0xff] %v4863_v48 }
 0x4a3   : > { %v1452_v46 = vpop.xlane.xlu0 %1451 }
 0x4a4   : > { %v1514_v49 = vadd.f32 %v1452_v46, %v1386_v38  ;;  %v1205_v38 = vsub.f32 %v5543_v14, %v4809_v47  ;;  %v2212_v46 = vsub.f32 1.0, %v2211_v25  ;;  %v5545_v47 = vld [vmem:[#allocation72_spill] sm:$0xff] }
 0x4a6   : > { %1546 = vst.msk [vmem:[#allocation3 + $0x80] sm:$0xff] %vm343_vm0, %v1514_v49  ;;  %v1326_v49 = vmul.f32 1.442695, %v1204_v39  ;;  %v2213_v2 = vmul.f32 %v3310_v24, %v2212_v46  ;;  %v2219_v39 = vand.u32 2147483647, %v2113_v22 }
 0x4a7   : > { %2622 = vperm.xlu2 %3126, %v2153_v8  }
 0x4a8   : > { %v2214_v25 = vadd.f32 %v3310_v24, %v2213_v2  ;;  %vm2220_vm12 = vcmp.eq.f32.partialorder %v2219_v39, 8.507059e+37  ;;  %v2111_v39 = vld [vmem:[#allocation3 + $0x18] sm:$0xff] }
 0x4a9   : > { %vm2187_vm3 = vweird.f32 %v2111_v39  ;;  %v2191_v48 = vand.u32 2147483647, %v2111_v39 }
 0x4aa   : > { %v1129_v45 = vpop.permute.xlu1 %1128 }
 0x4ab   : > { %v1202_v7 = vsub.f32 %v5540_v18, %v1129_v45  ;;  %v1203_v57 = vsub.f32 %v5541_v9, %v1129_v45  ;;  %v1328_v9 = vmul.f32 1.442695, %v1205_v38  ;;  %vm2192_vm5 = vcmp.eq.f32.partialorder %v2191_v48, 8.507059e+37  ;;  %v4896_v48 = vpop.f32.mrf.mxu2 }
 0x4ac   : > { %1469 = vadd.xlane.f32.xlu0 %v4764_v56 }
 0x4ad   : > { %v1322_v28 = vmul.f32 1.442695, %v1202_v7  ;;  %v1324_v34 = vmul.f32 1.442695, %v1203_v57  ;;  %v1350_v57 = vld [vmem:[#allocation3 + $0x60] sm:$0xff] }
 0x4ae   : > { %v1382_v18 = vmul.f32 %v5545_v47, %v1350_v57 }
 0x4af   : > { %3311 = vpow2.f32 %v1322_v28 }
 0x4b0   : > { %3313 = vpow2.f32 %v1324_v34  ;;  %v2221_v34 = vand.u32 2147483648, %v2113_v22  ;;  %v5546_v22 = vld [vmem:[#allocation70_spill] sm:$0xff] }
 0x4b1   : > { %3315 = vrcp.f32 %v2109_v29 }
 0x4b2   : > { %3317 = vpow2.f32 %v1326_v49  ;;  %v2222_v46 = vor.u32 1.1754944e-38, %v2221_v34  ;;  %v2165_v34 = vand.u32 2147483648, %v2109_v29 }
 0x4b3   : > { %3319 = vpow2.f32 %v1328_v9 }
 0x4b5   : > { %v3312_v56 = vpop.eup %3311  ;;  %1454 = vadd.xlane.f32.xlu1 %v4618_v4  ;;  %v2218_v4 = vsel %vm2217_vm11, %v3310_v24, %v2214_v25 }
 0x4b6   : > { %v3314_v7 = vpop.eup %3313  ;;  %1886 = vmatmul.f32.gmra.mxu2 %v3312_v56  ;;  %v2223_v2 = vsel %vm2220_vm12, %v2222_v46, %v2218_v4  ;;  %v2166_v4 = vor.u32 1.1754944e-38, %v2165_v34  ;;  %v1357_v34 = vld [vmem:[#allocation3 + $0x98] sm:$0xff] }
 0x4b7   : > { %v3316_v8 = vpop.eup %3315  ;;  %1999 = vmatmul.f32.gmra.mxu3 %v3314_v7  ;;  %v4866_v45 = vadd.f32 %v3314_v7, %v3312_v56  ;;  %v5547_v7 = vld [vmem:[#allocation71_spill] sm:$0xff] }
 0x4b8   : > { %v2155_v14 = vmul.f32 %v3316_v8, %v2109_v29  ;;  %v4870_v38 = vpop.eup %3317  ;;  %vm2160_vm13 = vweird.f32 %v3316_v8 }
 0x4b9   : > { %v1440_v28 = vpop.xlane.xlu2 %1439  ;;  %v4872_v49 = vpop.eup %3319  ;;  %vm2161_vm15 = vmor %vm2159_vm14, %vm2160_vm13 }
 0x4ba   : > { %v1510_v12 = vadd.f32 %v1440_v28, %v1382_v18  ;;  %v2156_v9 = vsub.f32 1.0, %v2155_v14 }
 0x4bc   : > { %1542 = vst.msk [vmem:[#allocation3 + $0x60] sm:$0xff] %vm343_vm0, %v1510_v12  ;;  %v2157_v18 = vmul.f32 %v3316_v8, %v2156_v9  ;;  %v2163_v12 = vand.u32 2147483647, %v2109_v29 }
 0x4be   : > { %1889 = vmatmul.f32.gmra.mxu2 %v4870_v38  ;;  %v2158_v28 = vadd.f32 %v3316_v8, %v2157_v18  ;;  %vm2164_vm1 = vcmp.eq.f32.partialorder %v2163_v12, 8.507059e+37  ;;  %v5550_v18 = vld [vmem:[#allocation77_spill] sm:$0xff] }
 0x4bf   : > { %2002 = vmatmul.f32.gmra.mxu3 %v4872_v49 }
 0x4c0   : > { %2647 = vperm.xlu0 %3127, %v2223_v2   ;;  %v2162_v14 = vsel %vm2161_vm15, %v3316_v8, %v2158_v28  ;;  %v1352_v8 = vld [vmem:[#allocation3 + $0x70] sm:$0xff] }
 0x4c1   : > { %v1139_v56 = vpop.permute.xlu2 %1138 }
 0x4c2   : > { %v1206_v57 = vsub.f32 %v5546_v22, %v1139_v56  ;;  %v1207_v47 = vsub.f32 %v5547_v7, %v1139_v56  ;;  %v2167_v56 = vsel %vm2164_vm1, %v2166_v4, %v2162_v14  ;;  %v4881_v7 = vpop.permute.xlu1 %1731  ;;  %v2116_v14 = vld [vmem:[#allocation3 + $0x40] sm:$0xff]  ;;  %v5551_v4 = vld [vmem:[#allocation90_spill] sm:$0xff] }
 0x4c3   : > { %5548 = vst [vmem:[#allocation39_spill] sm:$0xff] %v4881_v7  ;;  %vm2257_vm7 = vweird.f32 %v2116_v14 }
 0x4c4   : > { %v1330_v24 = vmul.f32 1.442695, %v1206_v57  ;;  %v1332_v25 = vmul.f32 1.442695, %v1207_v47  ;;  %v4883_v47 = vpop.permute.xlu0 %1751 }
 0x4c5   : > { %5549 = vst [vmem:[#allocation36_spill] sm:$0xff] %v4883_v47  ;;  %v5554_v47 = vld [vmem:[#allocation52_spill] sm:$0xff] }
 0x4c6   : > { %3321 = vpow2.f32 %v1330_v24  ;;  %v1384_v24 = vmul.f32 %v5550_v18, %v1352_v8 }
 0x4c7   : > { %3323 = vpow2.f32 %v1332_v25 }
 0x4c8   : > { %3325 = vrcp.f32 %v2111_v39 }
 0x4c9   : > { %3327 = vrcp.f32 %v2116_v14 }
 0x4cc   : > { %v3322_v46 = vpop.eup %3321 }
 0x4cd   : > { %v3324_v2 = vpop.eup %3323  ;;  %1892 = vmatmul.f32.gmra.mxu2 %v3322_v46 }
 0x4ce   : > { %2005 = vmatmul.f32.gmra.mxu3 %v3324_v2  ;;  %2627 = vperm.xlu1 %3128, %v2167_v56   ;;  %v4878_v9 = vadd.f32 %v3324_v2, %v3322_v46  ;;  %v3326_v22 = vpop.eup %3325  ;;  %v1389_v46 = vmul.f32 %v5551_v4, %v1357_v34  ;;  %v2193_v56 = vand.u32 2147483648, %v2111_v39  ;;  %v5552_v34 = vld [vmem:[#allocation25_spill] sm:$0xff] }
 0x4cf   : > { %v2183_v57 = vmul.f32 %v3326_v22, %v2111_v39  ;;  %vm2188_vm2 = vweird.f32 %v3326_v22  ;;  %v3328_v18 = vpop.eup %3327  ;;  %v4893_v39 = vld [vmem:[#allocation3 + $0x20] sm:$0xff] }
 0x4d0   : > { %1457 = vadd.xlane.f32.xlu2 %v4672_v63  ;;  %vm2189_vm4 = vmor %vm2187_vm3, %vm2188_vm2  ;;  %v2194_v8 = vor.u32 1.1754944e-38, %v2193_v56  ;;  %3329 = vrcp.f32 %v4893_v39  ;;  %vm2258_vm6 = vweird.f32 %v3328_v18  ;;  %vm2201_vm11 = vweird.f32 %v4893_v39 }
 0x4d1   : > { %v2184_v29 = vsub.f32 1.0, %v2183_v57  ;;  %vm2259_vm8 = vmor %vm2257_vm7, %vm2258_vm6 }
 0x4d3   : > { %v2185_v25 = vmul.f32 %v3326_v22, %v2184_v29 }
 0x4d5   : > { %v2186_v63 = vadd.f32 %v3326_v22, %v2185_v25 }
 0x4d7   : > { %v2190_v29 = vsel %vm2189_vm4, %v3326_v22, %v2186_v63 }
 0x4dd   : > { %v1446_v28 = vpop.xlane.xlu1 %1445 }
 0x4de   : > { %v1512_v12 = vadd.f32 %v1446_v28, %v1384_v24  ;;  %v2195_v24 = vsel %vm2192_vm5, %v2194_v8, %v2190_v29  ;;  %v2253_v28 = vmul.f32 %v3328_v18, %v2116_v14  ;;  %v4900_v29 = vpop.f32.mrf.mxu3  ;;  %v5555_v8 = vld [vmem:[#allocation76_spill] sm:$0xff] }
 0x4e0   : > { %1544 = vst.msk [vmem:[#allocation3 + $0x70] sm:$0xff] %vm343_vm0, %v1512_v12  ;;  %v2254_v25 = vsub.f32 1.0, %v2253_v28  ;;  %v5553_v12 = vld [vmem:[#allocation82_spill] sm:$0xff]  ;;  %v5556_v28 = vld [vmem:[#allocation75_spill] sm:$0xff] }
 0x4e1   : > { %v1461_v2 = vpop.xlane.xlu0 %1460  ;;  %v1923_v4 = vadd.f32 %v5553_v12, %v5552_v34 }
 0x4e2   : > { %v1517_v57 = vadd.f32 %v1461_v2, %v1389_v46  ;;  %v1756_v46 = vmul.f32 0.0, %v5554_v47  ;;  %v2255_v2 = vmul.f32 %v3328_v18, %v2254_v25  ;;  %v2263_v25 = vand.u32 2147483648, %v2116_v14 }
 0x4e4   : > { %1549 = vst.msk [vmem:[#allocation3 + $0x98] sm:$0xff] %vm343_vm0, %v1517_v57  ;;  %v2014_v57 = vadd.f32 %v1923_v4, %v1756_v46  ;;  %v2256_v34 = vadd.f32 %v3328_v18, %v2255_v2  ;;  %v2261_v46 = vand.u32 2147483647, %v2116_v14  ;;  %v4910_v2 = vpop.f32.mrf.mxu2 }
 0x4e6   : > { %vm2262_vm9 = vcmp.eq.f32.partialorder %v2261_v46, 8.507059e+37 }
 0x4e8   : > { %2637 = vperm.xlu2 %3126, %v2195_v24  }
 0x4ea   : > { %1478 = vadd.xlane.f32.xlu0 %v4826_v37  ;;  %v1462_v37 = vadd.f32 %v4713_v10, %v4708_v53  ;;  %v3330_v53 = vpop.eup %3329  ;;  %v4908_v10 = vpop.permute.xlu2 %1741 }
 0x4eb   : > { %vm2202_vm10 = vweird.f32 %v3330_v53 }
 0x4ec   : > { %vm2203_vm12 = vmor %vm2201_vm11, %vm2202_vm10 }
 0x4f4   : > { %v2633_v22 = vpop.permute.xlu0 %2632 }
 0x4f5   : > { %v2782_v63 = vmul.f32 %v2633_v22, %v2014_v57  ;;  %v1144_v56 = vpop.permute.xlu1 %1143  ;;  %v2260_v57 = vsel %vm2259_vm8, %v3328_v18, %v2256_v34  ;;  %v2264_v22 = vor.u32 1.1754944e-38, %v2263_v25 }
 0x4f6   : > { %v1208_v24 = vsub.f32 %v5555_v8, %v1144_v56  ;;  %v1209_v47 = vsub.f32 %v5556_v28, %v1144_v56  ;;  %v4913_v8 = vpop.f32.mrf.mxu3  ;;  %v5557_v28 = vld [vmem:[#allocation24_spill] sm:$0xff] }
 0x4f7   : > { %2814 = vst [vmem:[%s4905_s20 + $0x10] sm:$0xff] %v2782_v63  ;;  %v2265_v56 = vsel %vm2262_vm9, %v2264_v22, %v2260_v57  ;;  %v2197_v63 = vmul.f32 %v3330_v53, %v4893_v39  ;;  %v4920_v57 = vpop.f32.mrf.mxu2 }
 0x4f8   : > { %v1334_v12 = vmul.f32 1.442695, %v1208_v24  ;;  %v1336_v4 = vmul.f32 1.442695, %v1209_v47  ;;  %1463 = vadd.xlane.f32.xlu1 %v1462_v37  ;;  %v1353_v37 = vld [vmem:[#allocation3 + $0x78] sm:$0xff]  ;;  %5560 = vst [vmem:[#allocation37_spill] sm:$0xff] %v4920_v57 }
 0x4f9   : > { %v1385_v47 = vmul.f32 %v5557_v28, %v1353_v37  ;;  %v2198_v7 = vsub.f32 1.0, %v2197_v63  ;;  %v2114_v28 = vld [vmem:[#allocation3 + $0x30] sm:$0xff] }
 0x4fa   : > { %3331 = vpow2.f32 %v1334_v12  ;;  %v5558_v12 = vld [vmem:[#allocation79_spill] sm:$0xff]  ;;  %vm2229_vm15 = vweird.f32 %v2114_v28 }
 0x4fb   : > { %3333 = vpow2.f32 %v1336_v4  ;;  %v5559_v4 = vld [vmem:[#allocation80_spill] sm:$0xff]  ;;  %v2199_v22 = vmul.f32 %v3330_v53, %v2198_v7 }
 0x4fc   : > { %v1917_v46 = vadd.f32 %v5559_v4, %v5558_v12  ;;  %3335 = vrcp.f32 %v2114_v28 }
 0x4fd   : > { %v2200_v63 = vadd.f32 %v3330_v53, %v2199_v22 }
 0x4fe   : > { %2662 = vperm.xlu0 %3127, %v2265_v56   ;;  %v4923_v56 = vpop.f32.mrf.mxu3  ;;  %v2012_v37 = vadd.f32 %v1917_v46, %v1754_v1 }
 0x4ff   : > { %5561 = vst [vmem:[#allocation41_spill] sm:$0xff] %v4923_v56  ;;  %v2204_v7 = vsel %vm2203_vm12, %v3330_v53, %v2200_v63  ;;  %v4930_v12 = vpop.f32.mrf.mxu2 }
 0x500   : > { %v3332_v24 = vpop.eup %3331 }
 0x501   : > { %v3334_v14 = vpop.eup %3333  ;;  %1895 = vmatmul.f32.gmra.mxu2 %v3332_v24 }
 0x502   : > { %2008 = vmatmul.f32.gmra.mxu3 %v3334_v14  ;;  %v1449_v18 = vpop.xlane.xlu2 %1448  ;;  %v4916_v34 = vadd.f32 %v3334_v14, %v3332_v24  ;;  %v2207_v14 = vand.u32 2147483648, %v4893_v39  ;;  %v3336_v4 = vpop.eup %3335 }
 0x503   : > { %v1513_v25 = vadd.f32 %v1449_v18, %v1385_v47  ;;  %v2205_v18 = vand.u32 2147483647, %v4893_v39  ;;  %v2225_v46 = vmul.f32 %v3336_v4, %v2114_v28  ;;  %vm2230_vm14 = vweird.f32 %v3336_v4 }
 0x504   : > { %vm2231_vm1 = vmor %vm2229_vm15, %vm2230_vm14 }
 0x505   : > { %1545 = vst.msk [vmem:[#allocation3 + $0x78] sm:$0xff] %vm343_vm0, %v1513_v25  ;;  %v2208_v25 = vor.u32 1.1754944e-38, %v2207_v14  ;;  %vm2206_vm13 = vcmp.eq.f32.partialorder %v2205_v18, 8.507059e+37  ;;  %v2226_v39 = vsub.f32 1.0, %v2225_v46  ;;  %v2233_v46 = vand.u32 2147483647, %v2114_v28 }
 0x506   : > { %v4932_v1 = vpop.f32.mrf.mxu3 }
 0x507   : > { %v2209_v55 = vsel %vm2206_vm13, %v2208_v25, %v2204_v7  ;;  %v4935_v22 = vpop.f32.mrf.mxu2  ;;  %v2227_v53 = vmul.f32 %v3336_v4, %v2226_v39  ;;  %vm2234_vm2 = vcmp.eq.f32.partialorder %v2233_v46, 8.507059e+37 }
 0x508   : > { %5563 = vst [vmem:[#allocation42_spill] sm:$0xff] %v4935_v22  ;;  %v1355_v22 = vld [vmem:[#allocation3 + $0x88] sm:$0xff] }
 0x50a   : > { %v2623_v24 = vpop.permute.xlu2 %2622 }
 0x50b   : > { %v2780_v47 = vmul.f32 %v2623_v24, %v2012_v37  ;;  %v1360_v24 = vld [vmem:[#allocation3 + $0xb0] sm:$0xff] }
 0x50c   : > { %v1392_v63 = vmul.f32 %v4631_v0, %v1360_v24 }
 0x50d   : > { %2812 = vst [vmem:[%s4905_s20] sm:$0xff] %v2780_v47  ;;  %v2119_v47 = vld [vmem:[#allocation3 + $0x58] sm:$0xff] }
 0x50e   : > { %v4937_v37 = vpop.f32.mrf.mxu3  ;;  %3337 = vrcp.f32 %v2119_v47  ;;  %vm2299_vm4 = vweird.f32 %v2119_v47 }
 0x50f   : > { %5564 = vst [vmem:[#allocation43_spill] sm:$0xff] %v4937_v37  ;;  %v4940_v14 = vpop.f32.mrf.mxu2  ;;  %v2235_v37 = vand.u32 2147483648, %v2114_v28 }
 0x510   : > { %5565 = vst [vmem:[#allocation45_spill] sm:$0xff] %v4940_v14  ;;  %v5567_v14 = vld [vmem:[#allocation96_spill] sm:$0xff] }
 0x511   : > { %1466 = vadd.xlane.f32.xlu2 %v4731_v19  ;;  %2642 = vperm.xlu1 %3128, %v2209_v55   ;;  %v4944_v19 = vpop.permute.xlu1 %1746  ;;  %v2228_v55 = vadd.f32 %v3336_v4, %v2227_v53  ;;  %v2236_v24 = vor.u32 1.1754944e-38, %v2235_v37  ;;  %v1387_v56 = vmul.f32 %v5567_v14, %v1355_v22  ;;  %v5571_v37 = vld [vmem:[#allocation89_spill] sm:$0xff]  ;;  %v5572_v22 = vld [vmem:[#allocation67_spill] sm:$0xff] }
 0x512   : > { %v1759_v14 = vmul.f32 0.0, %v5572_v22  ;;  %v5578_v22 = vld [vmem:[#allocation26_spill] sm:$0xff] }
 0x513   : > { %v2232_v0 = vsel %vm2231_vm1, %v3336_v4, %v2228_v55  ;;  %v5570_v4 = vld [vmem:[#allocation88_spill] sm:$0xff] }
 0x514   : > { %v3338_v39 = vpop.eup %3337  ;;  %v2237_v57 = vsel %vm2234_vm2, %v2236_v24, %v2232_v0  ;;  %v1932_v55 = vadd.f32 %v5571_v37, %v5570_v4 }
 0x515   : > { %vm2300_vm3 = vweird.f32 %v3338_v39 }
 0x516   : > { %v4942_v7 = vpop.f32.mrf.mxu3  ;;  %v2017_v0 = vadd.f32 %v1932_v55, %v1759_v14  ;;  %vm2301_vm5 = vmor %vm2299_vm4, %vm2300_vm3 }
 0x517   : > { %5566 = vst [vmem:[#allocation51_spill] sm:$0xff] %v4942_v7  ;;  %v4949_v53 = vpop.f32.mrf.mxu2 }
 0x518   : > { %5568 = vst [vmem:[#allocation47_spill] sm:$0xff] %v4949_v53 }
 0x51f   : > { %v1470_v18 = vpop.xlane.xlu0 %1469 }
 0x520   : > { %v1520_v25 = vadd.f32 %v1470_v18, %v1392_v63  ;;  %v2295_v63 = vmul.f32 %v3338_v39, %v2119_v47 }
 0x522   : > { %1552 = vst.msk [vmem:[#allocation3 + $0xb0] sm:$0xff] %vm343_vm0, %v1520_v25  ;;  %v4951_v25 = vpop.f32.mrf.mxu3  ;;  %v2296_v28 = vsub.f32 1.0, %v2295_v63  ;;  %v2303_v63 = vand.u32 2147483647, %v2119_v47 }
 0x523   : > { %5569 = vst [vmem:[#allocation49_spill] sm:$0xff] %v4951_v25  ;;  %v2305_v25 = vand.u32 2147483648, %v2119_v47 }
 0x524   : > { %v2297_v46 = vmul.f32 %v3338_v39, %v2296_v28  ;;  %v1471_v28 = vadd.f32 %v4774_v21, %v4772_v30  ;;  %vm2304_vm6 = vcmp.eq.f32.partialorder %v2303_v63, 8.507059e+37  ;;  %v1783_v63 = vmul.f32 0.0, %v4908_v10 }
 0x525   : > { %v2306_v37 = vor.u32 1.1754944e-38, %v2305_v25 }
 0x528   : > { %1487 = vadd.xlane.f32.xlu0 %v4866_v45  ;;  %v1455_v7 = vpop.xlane.xlu1 %1454  ;;  %v4957_v45 = vpop.f32.mrf.mxu2 }
 0x529   : > { %v1515_v18 = vadd.f32 %v1455_v7, %v1387_v56  ;;  %2652 = vperm.xlu2 %3126, %v2237_v57   ;;  %5573 = vst [vmem:[#allocation48_spill] sm:$0xff] %v4957_v45  ;;  %v2298_v7 = vadd.f32 %v3338_v39, %v2297_v46  ;;  %v2115_v57 = vld [vmem:[#allocation3 + $0x38] sm:$0xff] }
 0x52a   : > { %v4959_v24 = vpop.f32.mrf.mxu3  ;;  %3339 = vrcp.f32 %v2115_v57  ;;  %vm2243_vm8 = vweird.f32 %v2115_v57 }
 0x52b   : > { %1547 = vst.msk [vmem:[#allocation3 + $0x88] sm:$0xff] %vm343_vm0, %v1515_v18  ;;  %v2302_v18 = vsel %vm2301_vm5, %v3338_v39, %v2298_v7  ;;  %v1356_v7 = vld [vmem:[#allocation3 + $0x90] sm:$0xff] }
 0x52c   : > { %5574 = vst [vmem:[#allocation56_spill] sm:$0xff] %v4959_v24  ;;  %v2307_v46 = vsel %vm2304_vm6, %v2306_v37, %v2302_v18  ;;  %v1388_v25 = vmul.f32 %v4613_v59, %v1356_v7  ;;  %v2117_v59 = vld [vmem:[#allocation3 + $0x48] sm:$0xff] }
 0x52d   : > { %3341 = vrcp.f32 %v2117_v59  ;;  %vm2271_vm12 = vweird.f32 %v2117_v59 }
 0x530   : > { %v3340_v47 = vpop.eup %3339 }
 0x531   : > { %v2239_v45 = vmul.f32 %v3340_v47, %v2115_v57  ;;  %vm2244_vm7 = vweird.f32 %v3340_v47 }
 0x532   : > { %v2648_v53 = vpop.permute.xlu0 %2647  ;;  %vm2245_vm9 = vmor %vm2243_vm8, %vm2244_vm7 }
 0x533   : > { %v2785_v56 = vmul.f32 %v2648_v53, %v2017_v0  ;;  %v5577_v53 = vld [vmem:[#allocation81_spill] sm:$0xff]  ;;  %v5579_v0 = vld [vmem:[#allocation46_spill] sm:$0xff] }
 0x534   : > { %v1920_v14 = vadd.f32 %v5578_v22, %v5577_v53  ;;  %v5580_v22 = vld [vmem:[#allocation84_spill] sm:$0xff] }
 0x535   : > { %2817 = vst [vmem:[%s4905_s20 + $0x28] sm:$0xff] %v2785_v56  ;;  %v1755_v56 = vmul.f32 0.0, %v5579_v0 }
 0x537   : > { %v2013_v39 = vadd.f32 %v1920_v14, %v1755_v56  ;;  %v5581_v14 = vld [vmem:[#allocation85_spill] sm:$0xff] }
 0x539   : > { %v4962_v4 = vpop.f32.mrf.mxu2 }
 0x53a   : > { %5575 = vst [vmem:[#allocation54_spill] sm:$0xff] %v4962_v4  ;;  %v4966_v55 = vpop.f32.mrf.mxu3 }
 0x53b   : > { %5576 = vst [vmem:[#allocation53_spill] sm:$0xff] %v4966_v55  ;;  %1472 = vadd.xlane.f32.xlu1 %v1471_v28  ;;  %v2240_v28 = vsub.f32 1.0, %v2239_v45  ;;  %v2247_v45 = vand.u32 2147483647, %v2115_v57 }
 0x53c   : > { %2677 = vperm.xlu0 %3127, %v2307_v46   ;;  %v1926_v46 = vadd.f32 %v5581_v14, %v5580_v22 }
 0x53d   : > { %v2241_v56 = vmul.f32 %v3340_v47, %v2240_v28  ;;  %vm2248_vm10 = vcmp.eq.f32.partialorder %v2247_v45, 8.507059e+37  ;;  %v3342_v28 = vpop.eup %3341 }
 0x53e   : > { %vm2272_vm11 = vweird.f32 %v3342_v28 }
 0x53f   : > { %vm2273_vm13 = vmor %vm2271_vm12, %vm2272_vm11 }
 0x540   : > { %v2628_v24 = vpop.permute.xlu1 %2627 }
 0x541   : > { %v2781_v4 = vmul.f32 %v2628_v24, %v2013_v39  ;;  %v1890_v30 = vpop.f32.mrf.mxu2  ;;  %v5582_v24 = vld [vmem:[#allocation50_spill] sm:$0xff] }
 0x542   : > { %v2003_v21 = vpop.f32.mrf.mxu3  ;;  %v1757_v0 = vmul.f32 0.0, %v5582_v24  ;;  %v1363_v24 = vld [vmem:[#allocation3 + $0xc8] sm:$0xff] }
 0x543   : > { %2813 = vst [vmem:[%s4905_s20 + $0x8] sm:$0xff] %v2781_v4  ;;  %v2004_v55 = vadd.f32 %v2003_v21, %v1890_v30  ;;  %v1458_v53 = vpop.xlane.xlu2 %1457  ;;  %v2242_v4 = vadd.f32 %v3340_v47, %v2241_v56  ;;  %v2249_v30 = vand.u32 2147483648, %v2115_v57  ;;  %v2122_v57 = vld [vmem:[#allocation3 + $0x70] sm:$0xff]  ;;  %v1395_v56 = vmul.f32 %v4680_v3, %v1363_v24 }
 0x544   : > { %v1516_v18 = vadd.f32 %v1458_v53, %v1388_v25  ;;  %v2015_v39 = vadd.f32 %v1926_v46, %v1757_v0  ;;  %v1784_v53 = vmul.f32 0.0, %v4944_v19  ;;  %v2267_v46 = vmul.f32 %v3342_v28, %v2117_v59 }
 0x545   : > { %v4974_v37 = vadd.f32 %v2004_v55, %v1783_v63  ;;  %v2246_v21 = vsel %vm2245_vm9, %v3340_v47, %v2242_v4  ;;  %v2250_v63 = vor.u32 1.1754944e-38, %v2249_v30  ;;  %3343 = vrcp.f32 %v2122_v57 }
 0x546   : > { %1548 = vst.msk [vmem:[#allocation3 + $0x90] sm:$0xff] %vm343_vm0, %v1516_v18  ;;  %v2268_v0 = vsub.f32 1.0, %v2267_v46  ;;  %v2277_v4 = vand.u32 2147483648, %v2117_v59  ;;  %v2275_v30 = vand.u32 2147483647, %v2117_v59  ;;  %v5584_v46 = vld [vmem:[#allocation30_spill] sm:$0xff]  ;;  %vm2341_vm1 = vweird.f32 %v2122_v57 }
 0x547   : > { %v2251_v22 = vsel %vm2248_vm10, %v2250_v63, %v2246_v21  ;;  %v1358_v21 = vld [vmem:[#allocation3 + $0xa0] sm:$0xff] }
 0x548   : > { %v2278_v3 = vor.u32 1.1754944e-38, %v2277_v4  ;;  %vm2276_vm14 = vcmp.eq.f32.partialorder %v2275_v30, 8.507059e+37  ;;  %v1390_v63 = vmul.f32 %v4641_v62, %v1358_v21  ;;  %v2347_v30 = vand.u32 2147483648, %v2122_v57 }
 0x54b   : > { %v2638_v7 = vpop.permute.xlu2 %2637 }
 0x54c   : > { %v2783_v10 = vmul.f32 %v2638_v7, %v2015_v39  ;;  %v2269_v7 = vmul.f32 %v3342_v28, %v2268_v0 }
 0x54e   : > { %2815 = vst [vmem:[%s4905_s20 + $0x18] sm:$0xff] %v2783_v10  ;;  %v2270_v19 = vadd.f32 %v3342_v28, %v2269_v7  ;;  %v3344_v10 = vpop.eup %3343 }
 0x54f   : > { %vm2342_vm15 = vweird.f32 %v3344_v10 }
 0x550   : > { %v1893_v55 = vpop.f32.mrf.mxu2  ;;  %v2274_v45 = vsel %vm2273_vm13, %v3342_v28, %v2270_v19  ;;  %vm2343_vm2 = vmor %vm2341_vm1, %vm2342_vm15 }
 0x551   : > { %v2006_v25 = vpop.f32.mrf.mxu3 }
 0x552   : > { %v2007_v18 = vadd.f32 %v2006_v25, %v1893_v55  ;;  %1475 = vadd.xlane.f32.xlu2 %v4789_v42  ;;  %v2125_v42 = vld [vmem:[#allocation3 + $0x88] sm:$0xff]  ;;  %v2337_v55 = vmul.f32 %v3344_v10, %v2122_v57  ;;  %v2279_v25 = vsel %vm2276_vm14, %v2278_v3, %v2274_v45  ;;  %v2345_v45 = vand.u32 2147483647, %v2122_v57 }
 0x553   : > { %3345 = vrcp.f32 %v2125_v42  ;;  %v1480_v57 = vadd.f32 %v4832_v58, %v4830_v33  ;;  %vm2383_vm5 = vweird.f32 %v2125_v42 }
 0x554   : > { %2657 = vperm.xlu1 %3128, %v2251_v22   ;;  %v4983_v14 = vadd.f32 %v2007_v18, %v1784_v53  ;;  %v2338_v53 = vsub.f32 1.0, %v2337_v55  ;;  %v5583_v22 = vld [vmem:[#allocation29_spill] sm:$0xff]  ;;  %vm2346_vm3 = vcmp.eq.f32.partialorder %v2345_v45, 8.507059e+37 }
 0x555   : > { %v1941_v24 = vadd.f32 %v5584_v46, %v5583_v22  ;;  %v2389_v46 = vand.u32 2147483648, %v2125_v42 }
 0x559   : > { %v3346_v18 = vpop.eup %3345 }
 0x55a   : > { %v2379_v28 = vmul.f32 %v3346_v18, %v2125_v42  ;;  %vm2384_vm4 = vweird.f32 %v3346_v18 }
 0x55b   : > { %vm2385_vm6 = vmor %vm2383_vm5, %vm2384_vm4 }
 0x55c   : > { %v2380_v62 = vsub.f32 1.0, %v2379_v28  ;;  %v2390_v28 = vor.u32 1.1754944e-38, %v2389_v46 }
 0x55d   : > { %v1479_v47 = vpop.xlane.xlu0 %1478 }
 0x55e   : > { %v1523_v39 = vadd.f32 %v1479_v47, %v1395_v56  ;;  %v5585_v56 = vld [vmem:[#allocation78_spill] sm:$0xff]  ;;  %v2381_v21 = vmul.f32 %v3346_v18, %v2380_v62  ;;  %v1359_v62 = vld [vmem:[#allocation3 + $0xa8] sm:$0xff] }
 0x55f   : > { %v1762_v47 = vmul.f32 0.0, %v5585_v56  ;;  %v5587_v56 = vld [vmem:[#allocation87_spill] sm:$0xff] }
 0x560   : > { %1555 = vst.msk [vmem:[#allocation3 + $0xc8] sm:$0xff] %vm343_vm0, %v1523_v39  ;;  %v2382_v22 = vadd.f32 %v3346_v18, %v2381_v21 }
 0x561   : > { %v2020_v39 = vadd.f32 %v1941_v24, %v1762_v47 }
 0x566   : > { %1496 = vadd.xlane.f32.xlu0 %v4916_v34  ;;  %v2339_v34 = vmul.f32 %v3344_v10, %v2338_v53 }
 0x568   : > { %v2340_v4 = vadd.f32 %v3344_v10, %v2339_v34  ;;  %v2386_v34 = vsel %vm2385_vm6, %v3346_v18, %v2382_v22 }
 0x56a   : > { %2667 = vperm.xlu2 %3126, %v2279_v25   ;;  %v2344_v3 = vsel %vm2343_vm2, %v3344_v10, %v2340_v4  ;;  %v2348_v25 = vor.u32 1.1754944e-38, %v2347_v30 }
 0x56b   : > { %v1464_v59 = vpop.xlane.xlu1 %1463 }
 0x56c   : > { %v1518_v0 = vadd.f32 %v1464_v59, %v1390_v63  ;;  %v4994_v63 = vld [vmem:[#allocation3 + $0x50] sm:$0xff]  ;;  %v2349_v53 = vsel %vm2346_vm3, %v2348_v25, %v2344_v3  ;;  %v2387_v59 = vand.u32 2147483647, %v2125_v42  ;;  %v1391_v42 = vmul.f32 %v4665_v44, %v1359_v62 }
 0x56d   : > { %vm2285_vm13 = vweird.f32 %v4994_v63 }
 0x56e   : > { %1550 = vst.msk [vmem:[#allocation3 + $0xa0] sm:$0xff] %vm343_vm0, %v1518_v0  ;;  %v5586_v0 = vld [vmem:[#allocation86_spill] sm:$0xff]  ;;  %vm2388_vm7 = vcmp.eq.f32.partialorder %v2387_v59, 8.507059e+37  ;;  %v5589_v59 = vld [vmem:[#allocation91_spill] sm:$0xff] }
 0x56f   : > { %v1929_v47 = vadd.f32 %v5587_v56, %v5586_v0  ;;  %v2391_v30 = vsel %vm2388_vm7, %v2390_v28, %v2386_v34 }
 0x570   : > { %v2663_v7 = vpop.permute.xlu0 %2662 }
 0x571   : > { %v2788_v19 = vmul.f32 %v2663_v7, %v2020_v39 }
 0x573   : > { %2820 = vst [vmem:[%s4905_s20 + $0x40] sm:$0xff] %v2788_v19  ;;  %v5588_v19 = vld [vmem:[#allocation55_spill] sm:$0xff] }
 0x574   : > { %v1758_v4 = vmul.f32 0.0, %v5588_v19 }
 0x575   : > { %v2128_v55 = vld [vmem:[#allocation3 + $0xa0] sm:$0xff] }
 0x576   : > { %3347 = vrcp.f32 %v2128_v55  ;;  %v2016_v33 = vadd.f32 %v1929_v47, %v1758_v4  ;;  %v2431_v21 = vand.u32 2147483648, %v2128_v55  ;;  %vm2425_vm9 = vweird.f32 %v2128_v55  ;;  %v5591_v47 = vld [vmem:[#allocation62_spill] sm:$0xff] }
 0x577   : > { %3349 = vrcp.f32 %v4994_v63  ;;  %v2429_v22 = vand.u32 2147483647, %v2128_v55  ;;  %v1760_v34 = vmul.f32 0.0, %v5591_v47 }
 0x578   : > { %v2432_v56 = vor.u32 1.1754944e-38, %v2431_v21  ;;  %v1366_v21 = vld [vmem:[#allocation3 + $0xe0] sm:$0xff] }
 0x579   : > { %vm2430_vm11 = vcmp.eq.f32.partialorder %v2429_v22, 8.507059e+37 }
 0x57a   : > { %2692 = vperm.xlu0 %3127, %v2349_v53  }
 0x57c   : > { %v3348_v24 = vpop.eup %3347 }
 0x57d   : > { %v2421_v10 = vmul.f32 %v3348_v24, %v2128_v55  ;;  %v3350_v7 = vpop.eup %3349  ;;  %vm2426_vm8 = vweird.f32 %v3348_v24  ;;  %v2120_v55 = vld [vmem:[#allocation3 + $0x60] sm:$0xff] }
 0x57e   : > { %1481 = vadd.xlane.f32.xlu1 %v1480_v57  ;;  %v2281_v18 = vmul.f32 %v3350_v7, %v4994_v63  ;;  %vm2427_vm10 = vmor %vm2425_vm9, %vm2426_vm8  ;;  %3351 = vrcp.f32 %v2120_v55  ;;  %vm2286_vm12 = vweird.f32 %v3350_v7  ;;  %vm2313_vm2 = vweird.f32 %v2120_v55 }
 0x57f   : > { %v2422_v39 = vsub.f32 1.0, %v2421_v10  ;;  %v5590_v10 = vld [vmem:[#allocation92_spill] sm:$0xff]  ;;  %vm2287_vm14 = vmor %vm2285_vm13, %vm2286_vm12 }
 0x580   : > { %v1935_v0 = vadd.f32 %v5590_v10, %v5589_v59  ;;  %v2282_v44 = vsub.f32 1.0, %v2281_v18  ;;  %v2319_v59 = vand.u32 2147483648, %v2120_v55 }
 0x581   : > { %v2423_v45 = vmul.f32 %v3348_v24, %v2422_v39 }
 0x582   : > { %2707 = vperm.xlu0 %3127, %v2391_v30   ;;  %v2018_v39 = vadd.f32 %v1935_v0, %v1760_v34  ;;  %v2283_v19 = vmul.f32 %v3350_v7, %v2282_v44  ;;  %v2291_v30 = vand.u32 2147483648, %v4994_v63  ;;  %v2320_v10 = vor.u32 1.1754944e-38, %v2319_v59  ;;  %v5592_v44 = vld [vmem:[#allocation97_spill] sm:$0xff] }
 0x583   : > { %v2643_v58 = vpop.permute.xlu1 %2642  ;;  %v2424_v3 = vadd.f32 %v3348_v24, %v2423_v45  ;;  %v2289_v45 = vand.u32 2147483647, %v4994_v63  ;;  %v1950_v0 = vadd.f32 %v4651_v32, %v4649_v40  ;;  %v1765_v47 = vmul.f32 0.0, %v5592_v44 }
 0x584   : > { %v2784_v25 = vmul.f32 %v2643_v58, %v2016_v33  ;;  %v1467_v53 = vpop.xlane.xlu2 %1466  ;;  %v3352_v58 = vpop.eup %3351  ;;  %v1489_v40 = vadd.f32 %v4872_v49, %v4870_v38 }
 0x585   : > { %v1519_v46 = vadd.f32 %v1467_v53, %v1391_v42  ;;  %v2428_v57 = vsel %vm2427_vm10, %v3348_v24, %v2424_v3  ;;  %v2284_v24 = vadd.f32 %v3350_v7, %v2283_v19  ;;  %v2292_v42 = vor.u32 1.1754944e-38, %v2291_v30  ;;  %v5593_v30 = vld [vmem:[#allocation94_spill] sm:$0xff] }
 0x586   : > { %2816 = vst [vmem:[%s4905_s20 + $0x20] sm:$0xff] %v2784_v25  ;;  %v2433_v28 = vsel %vm2430_vm11, %v2432_v56, %v2428_v57  ;;  %vm2290_vm15 = vcmp.eq.f32.partialorder %v2289_v45, 8.507059e+37  ;;  %v2309_v18 = vmul.f32 %v3352_v58, %v2120_v55  ;;  %v1398_v25 = vmul.f32 %v4741_v35, %v1366_v21  ;;  %v1361_v56 = vld [vmem:[#allocation3 + $0xb8] sm:$0xff]  ;;  %v5030_v21 = vld [vmem:[#allocation3 + $0x80] sm:$0xff] }
 0x587   : > { %1551 = vst.msk [vmem:[#allocation3 + $0xa8] sm:$0xff] %vm343_vm0, %v1519_v46  ;;  %v2288_v33 = vsel %vm2287_vm14, %v3350_v7, %v2284_v24  ;;  %vm2314_vm1 = vweird.f32 %v3352_v58  ;;  %v2023_v34 = vadd.f32 %v1950_v0, %v1765_v47  ;;  %v5022_v24 = vld [vmem:[#allocation3 + $0x68] sm:$0xff]  ;;  %v5594_v45 = vld [vmem:[#allocation95_spill] sm:$0xff]  ;;  %v5598_v47 = vld [vmem:[#allocation74_spill] sm:$0xff]  ;;  %vm2369_vm14 = vweird.f32 %v5030_v21 }
 0x588   : > { %v2293_v3 = vsel %vm2290_vm15, %v2292_v42, %v2288_v33  ;;  %v2310_v22 = vsub.f32 1.0, %v2309_v18  ;;  %vm2315_vm3 = vmor %vm2313_vm2, %vm2314_vm1  ;;  %v1362_v33 = vld [vmem:[#allocation3 + $0xc0] sm:$0xff]  ;;  %v5595_v42 = vld [vmem:[#allocation63_spill] sm:$0xff]  ;;  %vm2327_vm10 = vweird.f32 %v5022_v24 }
 0x589   : > { %v5596_v0 = vld [vmem:[#allocation31_spill] sm:$0xff] }
 0x58a   : > { %2722 = vperm.xlu0 %3127, %v2433_v28   ;;  %v2311_v57 = vmul.f32 %v3352_v58, %v2310_v22  ;;  %v1393_v28 = vmul.f32 %v4697_v20, %v1361_v56  ;;  %v1938_v20 = vadd.f32 %v5594_v45, %v5593_v30 }
 0x58c   : > { %v2653_v4 = vpop.permute.xlu2 %2652  ;;  %v2312_v63 = vadd.f32 %v3352_v58, %v2311_v57 }
 0x58d   : > { %v2786_v62 = vmul.f32 %v2653_v4, %v2018_v39 }
 0x58e   : > { %v2316_v7 = vsel %vm2315_vm3, %v3352_v58, %v2312_v63 }
 0x58f   : > { %2818 = vst [vmem:[%s4905_s20 + $0x30] sm:$0xff] %v2786_v62 }
 0x593   : > { %1484 = vadd.xlane.f32.xlu2 %v4842_v36  ;;  %v2317_v36 = vand.u32 2147483647, %v2120_v55 }
 0x595   : > { %vm2318_vm4 = vcmp.eq.f32.partialorder %v2317_v36, 8.507059e+37 }
 0x596   : > { %v2321_v35 = vsel %vm2318_vm4, %v2320_v10, %v2316_v7 }
 0x597   : > { %2672 = vperm.xlu1 %3128, %v2293_v3   ;;  %v1761_v3 = vmul.f32 0.0, %v5595_v42 }
 0x599   : > { %v2019_v22 = vadd.f32 %v1938_v20, %v1761_v3  ;;  %v2333_v3 = vand.u32 2147483648, %v5022_v24 }
 0x59b   : > { %v1488_v53 = vpop.xlane.xlu0 %1487 }
 0x59c   : > { %v1526_v46 = vadd.f32 %v1488_v53, %v1398_v25  ;;  %v1394_v53 = vmul.f32 %v4733_v51, %v1362_v33 }
 0x59e   : > { %1558 = vst.msk [vmem:[#allocation3 + $0xe0] sm:$0xff] %vm343_vm0, %v1526_v46 }
 0x5ab   : > { %2682 = vperm.xlu2 %3126, %v2321_v35   ;;  %v5597_v35 = vld [vmem:[#allocation98_spill] sm:$0xff] }
 0x5ac   : > { %v1944_v51 = vadd.f32 %v5597_v35, %v5596_v0 }
 0x5ae   : > { %v2678_v39 = vpop.permute.xlu0 %2677  ;;  %v1473_v19 = vpop.xlane.xlu1 %1472 }
 0x5af   : > { %v2791_v4 = vmul.f32 %v2678_v39, %v2023_v34  ;;  %v1521_v55 = vadd.f32 %v1473_v19, %v1393_v28  ;;  %v1763_v34 = vmul.f32 0.0, %v5598_v47  ;;  %v5043_v19 = vld [vmem:[#allocation3 + $0x98] sm:$0xff] }
 0x5b0   : > { %vm2411_vm3 = vweird.f32 %v5043_v19 }
 0x5b1   : > { %2823 = vst [vmem:[%s4905_s20 + $0x58] sm:$0xff] %v2791_v4 }
 0x5b2   : > { %1553 = vst.msk [vmem:[#allocation3 + $0xb8] sm:$0xff] %vm343_vm0, %v1521_v55  ;;  %v2021_v55 = vadd.f32 %v1944_v51, %v1763_v34  ;;  %v2375_v51 = vand.u32 2147483648, %v5030_v21 }
 0x5b9   : > { %v2131_v62 = vld [vmem:[#allocation3 + $0xb8] sm:$0xff] }
 0x5ba   : > { %3353 = vrcp.f32 %v2131_v62  ;;  %v2473_v46 = vand.u32 2147483648, %v2131_v62  ;;  %v2471_v57 = vand.u32 2147483647, %v2131_v62  ;;  %vm2467_vm6 = vweird.f32 %v2131_v62 }
 0x5bb   : > { %3355 = vrcp.f32 %v5022_v24 }
 0x5bc   : > { %3357 = vrcp.f32 %v5030_v21  ;;  %v2474_v56 = vor.u32 1.1754944e-38, %v2473_v46  ;;  %vm2472_vm8 = vcmp.eq.f32.partialorder %v2471_v57, 8.507059e+37  ;;  %v1369_v46 = vld [vmem:[#allocation3 + $0xf8] sm:$0xff] }
 0x5bd   : > { %3359 = vrcp.f32 %v5043_v19 }
 0x5c0   : > { %v3354_v32 = vpop.eup %3353 }
 0x5c1   : > { %1490 = vadd.xlane.f32.xlu1 %v1489_v40  ;;  %v2463_v58 = vmul.f32 %v3354_v32, %v2131_v62  ;;  %v5032_v18 = vpop.eup %3355  ;;  %vm2468_vm5 = vweird.f32 %v3354_v32  ;;  %v5045_v62 = vld [vmem:[#allocation3 + $0x78] sm:$0xff] }
 0x5c2   : > { %v2323_v36 = vmul.f32 %v5032_v18, %v5022_v24  ;;  %vm2469_vm7 = vmor %vm2467_vm6, %vm2468_vm5  ;;  %v3358_v4 = vpop.eup %3357  ;;  %3361 = vrcp.f32 %v5045_v62  ;;  %vm2328_vm9 = vweird.f32 %v5032_v18  ;;  %vm2355_vm6 = vweird.f32 %v5045_v62 }
 0x5c3   : > { %v2464_v25 = vsub.f32 1.0, %v2463_v58  ;;  %v5054_v58 = vld [vmem:[#allocation3 + $0xb0] sm:$0xff]  ;;  %v5056_v42 = vpop.eup %3359  ;;  %vm2329_vm11 = vmor %vm2327_vm10, %vm2328_vm9  ;;  %vm2370_vm13 = vweird.f32 %v3358_v4 }
 0x5c4   : > { %v2324_v39 = vsub.f32 1.0, %v2323_v36  ;;  %3363 = vrcp.f32 %v5054_v58  ;;  %v2407_v57 = vmul.f32 %v5056_v42, %v5043_v19  ;;  %vm2371_vm15 = vmor %vm2369_vm14, %vm2370_vm13  ;;  %vm2412_vm2 = vweird.f32 %v5056_v42 }
 0x5c5   : > { %v1476_v38 = vpop.xlane.xlu2 %1475  ;;  %v2465_v49 = vmul.f32 %v3354_v32, %v2464_v25  ;;  %v2331_v25 = vand.u32 2147483647, %v5022_v24  ;;  %vm5109_vm5 = vmor %vm2411_vm3, %vm2412_vm2 }
 0x5c6   : > { %v1522_v63 = vadd.f32 %v1476_v38, %v1394_v53  ;;  %v2658_v59 = vpop.permute.xlu1 %2657  ;;  %v2325_v45 = vmul.f32 %v5032_v18, %v2324_v39  ;;  %v5062_v53 = vld [vmem:[#allocation3 + $0x90] sm:$0xff]  ;;  %v2408_v0 = vsub.f32 1.0, %v2407_v57 }
 0x5c7   : > { %v2787_v7 = vmul.f32 %v2658_v59, %v2019_v22  ;;  %v2466_v10 = vadd.f32 %v3354_v32, %v2465_v49  ;;  %3365 = vrcp.f32 %v5062_v53  ;;  %vm2332_vm12 = vcmp.eq.f32.partialorder %v2331_v25, 8.507059e+37 }
 0x5c8   : > { %1554 = vst.msk [vmem:[#allocation3 + $0xc0] sm:$0xff] %vm343_vm0, %v1522_v63  ;;  %v2326_v20 = vadd.f32 %v5032_v18, %v2325_v45  ;;  %v5064_v22 = vpop.eup %3361  ;;  %v2334_v63 = vor.u32 1.1754944e-38, %v2333_v3  ;;  %v2415_v3 = vand.u32 2147483647, %v5043_v19  ;;  %vm2397_vm14 = vweird.f32 %v5062_v53 }
 0x5c9   : > { %2819 = vst [vmem:[%s4905_s20 + $0x38] sm:$0xff] %v2787_v7  ;;  %v2470_v44 = vsel %vm2469_vm7, %v3354_v32, %v2466_v10  ;;  %v2365_v32 = vmul.f32 %v3358_v4, %v5030_v21  ;;  %v2351_v24 = vmul.f32 %v5064_v22, %v5045_v62  ;;  %v5074_v7 = vld [vmem:[#allocation3 + $0xc8] sm:$0xff]  ;;  %vm2356_vm4 = vweird.f32 %v5064_v22 }
 0x5ca   : > { %v2475_v28 = vsel %vm2472_vm8, %v2474_v56, %v2470_v44  ;;  %v2330_v38 = vsel %vm2329_vm11, %v5032_v18, %v2326_v20  ;;  %v5076_v35 = vpop.eup %3363  ;;  %3367 = vrcp.f32 %v5074_v7  ;;  %v5083_v44 = vld [vmem:[#allocation3 + $0xa8] sm:$0xff]  ;;  %v5098_v20 = vld [vmem:[#allocation3 + $0xe0] sm:$0xff]  ;;  %vm5125_vm7 = vmor %vm2355_vm6, %vm2356_vm4  ;;  %vm2416_vm8 = vcmp.eq.f32.partialorder %v2415_v3, 8.507059e+37 }
 0x5cb   : > { %2737 = vperm.xlu0 %3127, %v2475_v28   ;;  %v2366_v33 = vsub.f32 1.0, %v2365_v32  ;;  %v2335_v36 = vsel %vm2332_vm12, %v2334_v63, %v2330_v38  ;;  %v2352_v56 = vsub.f32 1.0, %v2351_v24  ;;  %v2409_v28 = vmul.f32 %v5056_v42, %v2408_v0 }
 0x5cc   : > { %v2449_v39 = vmul.f32 %v5076_v35, %v5054_v58  ;;  %3369 = vrcp.f32 %v5083_v44  ;;  %v2361_v63 = vand.u32 2147483648, %v5045_v62  ;;  %v2359_v24 = vand.u32 2147483647, %v5045_v62 }
 0x5cd   : > { %v2668_v40 = vpop.permute.xlu2 %2667  ;;  %v2367_v49 = vmul.f32 %v3358_v4, %v2366_v33  ;;  %v5085_v47 = vpop.eup %3365  ;;  %v2417_v33 = vand.u32 2147483648, %v5043_v19  ;;  %3371 = vrcp.f32 %v5098_v20  ;;  %vm2454_vm10 = vweird.f32 %v5076_v35 }
 0x5ce   : > { %v2789_v30 = vmul.f32 %v2668_v40, %v2021_v55  ;;  %v2376_v55 = vor.u32 1.1754944e-38, %v2375_v51  ;;  %v2393_v40 = vmul.f32 %v5085_v47, %v5062_v53  ;;  %v2450_v32 = vsub.f32 1.0, %v2449_v39 }
 0x5cf   : > { %v2368_v18 = vadd.f32 %v3358_v4, %v2367_v49  ;;  %v5105_v38 = vld [vmem:[#allocation3 + $0xc0] sm:$0xff]  ;;  %v1768_v51 = vmul.f32 0.0, %v4646_v54  ;;  %vm2360_vm9 = vcmp.eq.f32.partialorder %v2359_v24, 8.507059e+37  ;;  %vm2453_vm11 = vweird.f32 %v5054_v58 }
 0x5d0   : > { %2821 = vst [vmem:[%s4905_s20 + $0x48] sm:$0xff] %v2789_v30  ;;  %v5094_v45 = vpop.eup %3367  ;;  %3373 = vrcp.f32 %v5105_v38  ;;  %vm2398_vm12 = vweird.f32 %v5085_v47  ;;  %vm5152_vm13 = vmor %vm2453_vm11, %vm2454_vm10  ;;  %v2401_v57 = vand.u32 2147483647, %v5062_v53  ;;  %vm2495_vm4 = vweird.f32 %v5074_v7 }
 0x5d1   : > { %v2372_v34 = vsel %vm2371_vm15, %v3358_v4, %v2368_v18  ;;  %v2410_v4 = vadd.f32 %v5056_v42, %v2409_v28  ;;  %vm5173_vm15 = vmor %vm2397_vm14, %vm2398_vm12  ;;  %vm2496_vm2 = vweird.f32 %v5094_v45  ;;  %v1774_v3 = vmul.f32 0.0, %v4761_v61 }
 0x5d2   : > { %v5107_v49 = vpop.eup %3369  ;;  %vm2402_vm3 = vcmp.eq.f32.partialorder %v2401_v57, 8.507059e+37  ;;  %vm2537_vm12 = vweird.f32 %v5098_v20  ;;  %v2541_v61 = vand.u32 2147483647, %v5098_v20 }
 0x5d3   : > { %v2414_v19 = vsel %vm5109_vm5, %v5056_v42, %v2410_v4  ;;  %v2435_v62 = vmul.f32 %v5107_v49, %v5083_v44  ;;  %v5141_v28 = vpop.eup %3371  ;;  %vm5190_vm5 = vmor %vm2495_vm4, %vm2496_vm2  ;;  %vm2440_vm6 = vweird.f32 %v5107_v49 }
 0x5d4   : > { %1493 = vadd.xlane.f32.xlu2 %v4878_v9  ;;  %v1401_v9 = vmul.f32 %v4796_v50, %v1369_v46  ;;  %v2373_v50 = vand.u32 2147483647, %v5030_v21  ;;  %v2353_v21 = vmul.f32 %v5064_v22, %v2352_v56  ;;  %v2394_v46 = vsub.f32 1.0, %v2393_v40 }
 0x5d5   : > { %v2457_v40 = vand.u32 2147483647, %v5054_v58  ;;  %v2436_v4 = vsub.f32 1.0, %v2435_v62  ;;  %vm2538_vm11 = vweird.f32 %v5141_v28  ;;  %vm2542_vm2 = vcmp.eq.f32.partialorder %v2541_v61, 8.507059e+37 }
 0x5d6   : > { %vm2374_vm1 = vcmp.eq.f32.partialorder %v2373_v50, 8.507059e+37  ;;  %v2354_v25 = vadd.f32 %v5064_v22, %v2353_v21  ;;  %v2395_v0 = vmul.f32 %v5085_v47, %v2394_v46  ;;  %v1364_v21 = vld [vmem:[#allocation3 + $0xd0] sm:$0xff]  ;;  %vm2539_vm14 = vmor %vm2537_vm12, %vm2538_vm11 }
 0x5d7   : > { %v2377_v30 = vsel %vm2374_vm1, %v2376_v55, %v2372_v34  ;;  %v2459_v55 = vand.u32 2147483648, %v5054_v58  ;;  %v1396_v24 = vmul.f32 %v4757_v26, %v1364_v21  ;;  %vm2458_vm1 = vcmp.eq.f32.partialorder %v2457_v40, 8.507059e+37 }
 0x5d8   : > { %v2358_v42 = vsel %vm5125_vm7, %v5064_v22, %v2354_v25  ;;  %v2403_v25 = vand.u32 2147483648, %v5062_v53  ;;  %vm2439_vm7 = vweird.f32 %v5083_v44  ;;  %v2443_v21 = vand.u32 2147483647, %v5083_v44 }
 0x5d9   : > { %v1497_v59 = vpop.xlane.xlu0 %1496 }
 0x5da   : > { %v1529_v10 = vadd.f32 %v1497_v59, %v1401_v9  ;;  %2687 = vperm.xlu1 %3128, %v2335_v36   ;;  %v2491_v9 = vmul.f32 %v5094_v45, %v5074_v7  ;;  %v2451_v59 = vmul.f32 %v5076_v35, %v2450_v32  ;;  %v1959_v36 = vadd.f32 %v4710_v13, %v4706_v60  ;;  %v5148_v32 = vpop.eup %3373 }
 0x5db   : > { %v2362_v13 = vor.u32 1.1754944e-38, %v2361_v63  ;;  %v2533_v63 = vmul.f32 %v5141_v28, %v5098_v20  ;;  %v2404_v26 = vor.u32 1.1754944e-38, %v2403_v25  ;;  %vm2444_vm10 = vcmp.eq.f32.partialorder %v2443_v21, 8.507059e+37 }
 0x5dc   : > { %1561 = vst.msk [vmem:[#allocation3 + $0xf8] sm:$0xff] %vm343_vm0, %v1529_v10  ;;  %v2418_v10 = vor.u32 1.1754944e-38, %v2417_v33  ;;  %v2492_v50 = vsub.f32 1.0, %v2491_v9  ;;  %v2452_v56 = vadd.f32 %v5076_v35, %v2451_v59  ;;  %v2026_v39 = vadd.f32 %v1959_v36, %v1768_v51 }
 0x5dd   : > { %v2363_v22 = vsel %vm2360_vm9, %v2362_v13, %v2358_v42  ;;  %v1771_v9 = vmul.f32 0.0, %v4701_v5  ;;  %v2460_v59 = vor.u32 1.1754944e-38, %v2459_v55  ;;  %v2437_v5 = vmul.f32 %v5107_v49, %v2436_v4 }
 0x5de   : > { %v2419_v60 = vsel %vm2416_vm8, %v2418_v10, %v2414_v19  ;;  %v2493_v46 = vmul.f32 %v5094_v45, %v2492_v50  ;;  %v2456_v58 = vsel %vm5152_vm13, %v5076_v35, %v2452_v56  ;;  %v1968_v19 = vadd.f32 %v4769_v17, %v4767_v15  ;;  %vm2441_vm8 = vmor %vm2439_vm7, %vm2440_vm6 }
 0x5df   : > { %v2477_v15 = vmul.f32 %v5148_v32, %v5105_v38  ;;  %v2461_v36 = vsel %vm2458_vm1, %v2460_v59, %v2456_v58  ;;  %v2534_v42 = vsub.f32 1.0, %v2533_v63  ;;  %v2501_v51 = vand.u32 2147483648, %v5074_v7 }
 0x5e0   : > { %v2494_v10 = vadd.f32 %v5094_v45, %v2493_v46  ;;  %v2499_v50 = vand.u32 2147483647, %v5074_v7  ;;  %v2438_v56 = vadd.f32 %v5107_v49, %v2437_v5  ;;  %vm2482_vm13 = vweird.f32 %v5148_v32 }
 0x5e1   : > { %v2535_v40 = vmul.f32 %v5141_v28, %v2534_v42  ;;  %v2502_v4 = vor.u32 1.1754944e-38, %v2501_v51  ;;  %v2485_v35 = vand.u32 2147483647, %v5105_v38 }
 0x5e2   : > { %2702 = vperm.xlu1 %3128, %v2377_v30   ;;  %v2396_v30 = vadd.f32 %v5085_v47, %v2395_v0  ;;  %v2498_v55 = vsel %vm5190_vm5, %v5094_v45, %v2494_v10  ;;  %vm2500_vm9 = vcmp.eq.f32.partialorder %v2499_v50, 8.507059e+37  ;;  %v2442_v45 = vsel %vm2441_vm8, %v5107_v49, %v2438_v56 }
 0x5e3   : > { %v5139_v34 = vld [vmem:[#allocation3 + $0xf8] sm:$0xff]  ;;  %v2503_v25 = vsel %vm2500_vm9, %v2502_v4, %v2498_v55  ;;  %v2536_v46 = vadd.f32 %v5141_v28, %v2535_v40  ;;  %v2543_v49 = vand.u32 2147483648, %v5098_v20 }
 0x5e4   : > { %3375 = vrcp.f32 %v5139_v34  ;;  %v2400_v53 = vsel %vm5173_vm15, %v5085_v47, %v2396_v30  ;;  %v2029_v47 = vadd.f32 %v1968_v19, %v1771_v9  ;;  %v1977_v30 = vadd.f32 %v4900_v29, %v4896_v48 }
 0x5e5   : > { %v2405_v62 = vsel %vm2402_vm3, %v2404_v26, %v2400_v53  ;;  %v2540_v59 = vsel %vm2539_vm14, %v5141_v28, %v2536_v46  ;;  %vm2481_vm15 = vweird.f32 %v5105_v38  ;;  %v2544_v5 = vor.u32 1.1754944e-38, %v2543_v49  ;;  %v1365_v26 = vld [vmem:[#allocation3 + $0xd8] sm:$0xff] }
 0x5e6   : > { %v2032_v29 = vadd.f32 %v1977_v30, %v1774_v3  ;;  %vm2483_vm1 = vmor %vm2481_vm15, %vm2482_vm13  ;;  %vm2486_vm3 = vcmp.eq.f32.partialorder %v2485_v35, 8.507059e+37  ;;  %vm2579_vm5 = vweird.f32 %v5139_v34  ;;  %v2583_v42 = vand.u32 2147483647, %v5139_v34 }
 0x5e8   : > { %vm2584_vm8 = vcmp.eq.f32.partialorder %v2583_v42, 8.507059e+37 }
 0x5ea   : > { %2717 = vperm.xlu1 %3128, %v2419_v60   ;;  %v5185_v0 = vpop.eup %3375 }
 0x5eb   : > { %v2575_v7 = vmul.f32 %v5185_v0, %v5139_v34  ;;  %vm2580_vm4 = vweird.f32 %v5185_v0 }
 0x5ec   : > { %2697 = vperm.xlu2 %3126, %v2363_v22   ;;  %v2693_v54 = vpop.permute.xlu0 %2692  ;;  %v2478_v22 = vsub.f32 1.0, %v2477_v15  ;;  %v2545_v15 = vsel %vm2542_vm2, %v2544_v5, %v2540_v59  ;;  %vm2581_vm6 = vmor %vm2579_vm5, %vm2580_vm4  ;;  %v1368_v5 = vld [vmem:[#allocation3 + $0xf0] sm:$0xff] }
 0x5ed   : > { %v2794_v33 = vmul.f32 %v2693_v54, %v2026_v39  ;;  %v2445_v54 = vand.u32 2147483648, %v5083_v44  ;;  %v2576_v58 = vsub.f32 1.0, %v2575_v7 }
 0x5ef   : > { %2826 = vst [vmem:[%s4905_s20 + $0x70] sm:$0xff] %v2794_v33  ;;  %v2479_v33 = vmul.f32 %v5148_v32, %v2478_v22  ;;  %v2446_v44 = vor.u32 1.1754944e-38, %v2445_v54  ;;  %v2577_v53 = vmul.f32 %v5185_v0, %v2576_v58 }
 0x5f1   : > { %v1482_v17 = vpop.xlane.xlu1 %1481  ;;  %v2447_v48 = vsel %vm2444_vm10, %v2446_v44, %v2442_v45  ;;  %v2480_v9 = vadd.f32 %v5148_v32, %v2479_v33  ;;  %v2578_v28 = vadd.f32 %v5185_v0, %v2577_v53 }
 0x5f2   : > { %v1524_v18 = vadd.f32 %v1482_v17, %v1396_v24  ;;  %2732 = vperm.xlu1 %3128, %v2461_v36   ;;  %v2487_v24 = vand.u32 2147483648, %v5105_v38  ;;  %v2585_v38 = vand.u32 2147483648, %v5139_v34 }
 0x5f3   : > { %v2484_v20 = vsel %vm2483_vm1, %v5148_v32, %v2480_v9  ;;  %v1397_v32 = vmul.f32 %v4791_v16, %v1365_v26  ;;  %v2582_v51 = vsel %vm2581_vm6, %v5185_v0, %v2578_v28  ;;  %v5609_v16 = vld [vmem:[#allocation27_spill] sm:$0xff]  ;;  %v1986_v9 = vadd.f32 %v4932_v1, %v4930_v12 }
 0x5f4   : > { %1556 = vst.msk [vmem:[#allocation3 + $0xd0] sm:$0xff] %vm343_vm0, %v1524_v18  ;;  %2712 = vperm.xlu2 %3126, %v2405_v62   ;;  %v2708_v60 = vpop.permute.xlu0 %2707  ;;  %v2488_v17 = vor.u32 1.1754944e-38, %v2487_v24 }
 0x5f5   : > { %v2797_v39 = vmul.f32 %v2708_v60, %v2029_v47  ;;  %v2586_v60 = vor.u32 1.1754944e-38, %v2585_v38 }
 0x5f6   : > { %v2489_v10 = vsel %vm2486_vm3, %v2488_v17, %v2484_v20 }
 0x5f7   : > { %2829 = vst [vmem:[%s4905_s20 + $0x88] sm:$0xff] %v2797_v39  ;;  %v2587_v34 = vsel %vm2584_vm8, %v2586_v60, %v2582_v51 }
 0x5fa   : > { %2747 = vperm.xlu1 %3128, %v2503_v25  }
 0x5fb   : > { %v2134_v57 = vld [vmem:[#allocation3 + $0xd0] sm:$0xff] }
 0x5fc   : > { %2727 = vperm.xlu2 %3126, %v2447_v48   ;;  %v2723_v63 = vpop.permute.xlu0 %2722  ;;  %3377 = vrcp.f32 %v2134_v57  ;;  %v2515_v13 = vand.u32 2147483648, %v2134_v57  ;;  %v2513_v22 = vand.u32 2147483647, %v2134_v57  ;;  %vm2509_vm9 = vweird.f32 %v2134_v57 }
 0x5fd   : > { %v2800_v19 = vmul.f32 %v2723_v63, %v2032_v29 }
 0x5fe   : > { %v2516_v0 = vor.u32 1.1754944e-38, %v2515_v13  ;;  %vm2514_vm11 = vcmp.eq.f32.partialorder %v2513_v22, 8.507059e+37  ;;  %v1980_v22 = vadd.f32 %v4913_v8, %v4910_v2 }
 0x5ff   : > { %2832 = vst [vmem:[%s4905_s20 + $0xa0] sm:$0xff] %v2800_v19  ;;  %v1777_v19 = vmul.f32 0.0, %v4822_v43 }
 0x601   : > { %v2035_v24 = vadd.f32 %v1986_v9, %v1777_v19  ;;  %v5618_v9 = vld [vmem:[#allocation45_spill] sm:$0xff]  ;;  %v5619_v19 = vld [vmem:[#allocation51_spill] sm:$0xff] }
 0x602   : > { %v3378_v36 = vpop.eup %3377  ;;  %2762 = vperm.xlu1 %3128, %v2545_v15   ;;  %v1400_v15 = vmul.f32 %v4844_v31, %v1368_v5 }
 0x603   : > { %v2505_v18 = vmul.f32 %v3378_v36, %v2134_v57  ;;  %vm2510_vm7 = vweird.f32 %v3378_v36 }
 0x604   : > { %2742 = vperm.xlu2 %3126, %v2489_v10   ;;  %vm2511_vm10 = vmor %vm2509_vm9, %vm2510_vm7 }
 0x605   : > { %v2506_v62 = vsub.f32 1.0, %v2505_v18 }
 0x606   : > { %v1485_v47 = vpop.xlane.xlu2 %1484 }
 0x607   : > { %v1525_v50 = vadd.f32 %v1485_v47, %v1397_v32  ;;  %v2507_v56 = vmul.f32 %v3378_v36, %v2506_v62 }
 0x609   : > { %1557 = vst.msk [vmem:[#allocation3 + $0xd8] sm:$0xff] %vm343_vm0, %v1525_v50  ;;  %v2673_v39 = vpop.permute.xlu1 %2672  ;;  %v2508_v55 = vadd.f32 %v3378_v36, %v2507_v56 }
 0x60a   : > { %v2790_v54 = vmul.f32 %v2673_v39, %v5609_v16  ;;  %2777 = vperm.xlu1 %3128, %v2587_v34  }
 0x60b   : > { %v2512_v21 = vsel %vm2511_vm10, %v3378_v36, %v2508_v55 }
 0x60c   : > { %2822 = vst [vmem:[%s4905_s20 + $0x50] sm:$0xff] %v2790_v54  ;;  %v2517_v40 = vsel %vm2514_vm11, %v2516_v0, %v2512_v21  ;;  %v5611_v54 = vld [vmem:[#allocation40_spill] sm:$0xff] }
 0x60d   : > { %2752 = vperm.xlu0 %3127, %v2517_v40  }
 0x60e   : > { %v2683_v7 = vpop.permute.xlu2 %2682 }
 0x60f   : > { %v2792_v30 = vmul.f32 %v2683_v7, %v4661_v41  ;;  %v1367_v41 = vld [vmem:[#allocation3 + $0xe8] sm:$0xff] }
 0x610   : > { %v2135_v4 = vld [vmem:[#allocation3 + $0xd8] sm:$0xff]  ;;  %v1399_v57 = vmul.f32 %v4817_v23, %v1367_v41  ;;  %v5612_v7 = vld [vmem:[#allocation37_spill] sm:$0xff] }
 0x611   : > { %2824 = vst [vmem:[%s4905_s20 + $0x60] sm:$0xff] %v2792_v30  ;;  %3379 = vrcp.f32 %v2135_v4  ;;  %v2529_v25 = vand.u32 2147483648, %v2135_v4  ;;  %v2527_v46 = vand.u32 2147483647, %v2135_v4  ;;  %vm2523_vm13 = vweird.f32 %v2135_v4  ;;  %v5613_v30 = vld [vmem:[#allocation41_spill] sm:$0xff] }
 0x613   : > { %v2530_v48 = vor.u32 1.1754944e-38, %v2529_v25  ;;  %vm2528_vm15 = vcmp.eq.f32.partialorder %v2527_v46, 8.507059e+37  ;;  %v5616_v46 = vld [vmem:[#allocation43_spill] sm:$0xff] }
 0x617   : > { %v3380_v45 = vpop.eup %3379 }
 0x618   : > { %v2519_v33 = vmul.f32 %v3380_v45, %v2135_v4  ;;  %vm2524_vm12 = vweird.f32 %v3380_v45 }
 0x619   : > { %vm2525_vm14 = vmor %vm2523_vm13, %vm2524_vm12 }
 0x61a   : > { %v2520_v3 = vsub.f32 1.0, %v2519_v33  ;;  %v5614_v33 = vld [vmem:[#allocation28_spill] sm:$0xff] }
 0x61c   : > { %v2521_v44 = vmul.f32 %v3380_v45, %v2520_v3  ;;  %v1776_v3 = vmul.f32 0.0, %v5614_v33 }
 0x61e   : > { %v2522_v58 = vadd.f32 %v3380_v45, %v2521_v44  ;;  %v5615_v44 = vld [vmem:[#allocation42_spill] sm:$0xff] }
 0x620   : > { %v2526_v29 = vsel %vm2525_vm14, %v3380_v45, %v2522_v58  ;;  %v1989_v58 = vadd.f32 %v5616_v46, %v5615_v44 }
 0x621   : > { %v2531_v49 = vsel %vm2528_vm15, %v2530_v48, %v2526_v29 }
 0x622   : > { %2757 = vperm.xlu2 %3126, %v2531_v49   ;;  %v5617_v49 = vld [vmem:[#allocation38_spill] sm:$0xff] }
 0x623   : > { %v1778_v41 = vmul.f32 0.0, %v5617_v49 }
 0x634   : > { %v1491_v63 = vpop.xlane.xlu1 %1490 }
 0x635   : > { %v1527_v61 = vadd.f32 %v1491_v63, %v1399_v57 }
 0x637   : > { %1559 = vst.msk [vmem:[#allocation3 + $0xe8] sm:$0xff] %vm343_vm0, %v1527_v61  ;;  %v2036_v61 = vadd.f32 %v1989_v58, %v1778_v41 }
 0x63d   : > { %v2738_v59 = vpop.permute.xlu0 %2737 }
 0x63e   : > { %v2803_v35 = vmul.f32 %v2738_v59, %v2035_v24  ;;  %v2137_v53 = vld [vmem:[#allocation3 + $0xe8] sm:$0xff]  ;;  %v1992_v24 = vadd.f32 %v5619_v19, %v5618_v9 }
 0x63f   : > { %3381 = vrcp.f32 %v2137_v53  ;;  %v2557_v28 = vand.u32 2147483648, %v2137_v53  ;;  %v2555_v43 = vand.u32 2147483647, %v2137_v53  ;;  %vm2551_vm2 = vweird.f32 %v2137_v53 }
 0x640   : > { %2835 = vst [vmem:[%s4905_s20 + $0xb8] sm:$0xff] %v2803_v35 }
 0x641   : > { %v2558_v31 = vor.u32 1.1754944e-38, %v2557_v28  ;;  %vm2556_vm4 = vcmp.eq.f32.partialorder %v2555_v43, 8.507059e+37  ;;  %v5623_v28 = vld [vmem:[#allocation35_spill] sm:$0xff]  ;;  %v1896_v43 = vpop.f32.mrf.mxu2 }
 0x645   : > { %v3382_v20 = vpop.eup %3381 }
 0x646   : > { %v2547_v23 = vmul.f32 %v3382_v20, %v2137_v53  ;;  %vm2552_vm1 = vweird.f32 %v3382_v20  ;;  %v5620_v53 = vld [vmem:[#allocation32_spill] sm:$0xff] }
 0x647   : > { %v1494_v17 = vpop.xlane.xlu2 %1493  ;;  %vm2553_vm3 = vmor %vm2551_vm2, %vm2552_vm1  ;;  %v1779_v5 = vmul.f32 0.0, %v5620_v53 }
 0x648   : > { %v1528_v36 = vadd.f32 %v1494_v17, %v1400_v15  ;;  %v2548_v26 = vsub.f32 1.0, %v2547_v23  ;;  %v5621_v17 = vld [vmem:[#allocation54_spill] sm:$0xff] }
 0x64a   : > { %1560 = vst.msk [vmem:[#allocation3 + $0xf0] sm:$0xff] %vm343_vm0, %v1528_v36  ;;  %v2549_v12 = vmul.f32 %v3382_v20, %v2548_v26  ;;  %v5622_v36 = vld [vmem:[#allocation53_spill] sm:$0xff] }
 0x64b   : > { %v2001_v26 = vadd.f32 %v5622_v36, %v5621_v17 }
 0x64c   : > { %v2688_v1 = vpop.permute.xlu1 %2687  ;;  %v2550_v38 = vadd.f32 %v3382_v20, %v2549_v12  ;;  %v1782_v12 = vmul.f32 0.0, %v5623_v28 }
 0x64d   : > { %v2793_v10 = vmul.f32 %v2688_v1, %v4667_v52 }
 0x64e   : > { %v2554_v18 = vsel %vm2553_vm3, %v3382_v20, %v2550_v38  ;;  %v2037_v20 = vadd.f32 %v1992_v24, %v1779_v5  ;;  %v2040_v1 = vadd.f32 %v2001_v26, %v1782_v12  ;;  %v2009_v38 = vpop.f32.mrf.mxu3 }
 0x64f   : > { %2825 = vst [vmem:[%s4905_s20 + $0x68] sm:$0xff] %v2793_v10  ;;  %v2698_v42 = vpop.permute.xlu2 %2697  ;;  %v2559_v32 = vsel %vm2556_vm4, %v2558_v31, %v2554_v18  ;;  %v5624_v18 = vld [vmem:[#allocation48_spill] sm:$0xff] }
 0x650   : > { %v2795_v62 = vmul.f32 %v2698_v42, %v4724_v6  ;;  %2767 = vperm.xlu0 %3127, %v2559_v32   ;;  %v5610_v6 = vld [vmem:[#allocation33_spill] sm:$0xff]  ;;  %v5625_v42 = vld [vmem:[#allocation56_spill] sm:$0xff] }
 0x651   : > { %v2138_v47 = vld [vmem:[#allocation3 + $0xf0] sm:$0xff]  ;;  %v1775_v34 = vmul.f32 0.0, %v5610_v6  ;;  %v1998_v32 = vadd.f32 %v5625_v42, %v5624_v18 }
 0x652   : > { %2827 = vst [vmem:[%s4905_s20 + $0x78] sm:$0xff] %v2795_v62  ;;  %3383 = vrcp.f32 %v2138_v47  ;;  %v2571_v16 = vand.u32 2147483648, %v2138_v47  ;;  %vm2565_vm5 = vweird.f32 %v2138_v47  ;;  %v2010_v62 = vadd.f32 %v2009_v38, %v1896_v43  ;;  %v5630_v6 = vld [vmem:[#allocation34_spill] sm:$0xff] }
 0x653   : > { %v2033_v40 = vadd.f32 %v1980_v22, %v1775_v34  ;;  %v1780_v34 = vmul.f32 0.0, %v5630_v6 }
 0x654   : > { %v2703_v51 = vpop.permute.xlu1 %2702  ;;  %v2572_v8 = vor.u32 1.1754944e-38, %v2571_v16 }
 0x655   : > { %v2796_v60 = vmul.f32 %v2703_v51, %v4728_v11  ;;  %v2569_v11 = vand.u32 2147483647, %v2138_v47 }
 0x657   : > { %2828 = vst [vmem:[%s4905_s20 + $0x80] sm:$0xff] %v2796_v60  ;;  %v2713_v13 = vpop.permute.xlu2 %2712  ;;  %vm2570_vm7 = vcmp.eq.f32.partialorder %v2569_v11, 8.507059e+37  ;;  %v5627_v60 = vld [vmem:[#allocation36_spill] sm:$0xff] }
 0x658   : > { %v3384_v52 = vpop.eup %3383  ;;  %v2798_v50 = vmul.f32 %v2713_v13, %v4782_v27  ;;  %v1983_v27 = vadd.f32 %v5613_v30, %v5612_v7  ;;  %v1785_v13 = vmul.f32 0.0, %v5627_v60 }
 0x659   : > { %v2561_v56 = vmul.f32 %v3384_v52, %v2138_v47  ;;  %vm2566_vm0 = vweird.f32 %v3384_v52  ;;  %v5626_v47 = vld [vmem:[#allocation39_spill] sm:$0xff] }
 0x65a   : > { %2830 = vst [vmem:[%s4905_s20 + $0x90] sm:$0xff] %v2798_v50  ;;  %vm2567_vm6 = vmor %vm2565_vm5, %vm2566_vm0  ;;  %v2034_v29 = vadd.f32 %v1983_v27, %v1776_v3  ;;  %v1781_v51 = vmul.f32 0.0, %v5626_v47  ;;  %v5629_v50 = vld [vmem:[#allocation49_spill] sm:$0xff] }
 0x65b   : > { %v2562_v39 = vsub.f32 1.0, %v2561_v56 }
 0x65c   : > { %v2718_v55 = vpop.permute.xlu1 %2717  ;;  %v2039_v22 = vadd.f32 %v1998_v32, %v1781_v51 }
 0x65d   : > { %v2799_v0 = vmul.f32 %v2718_v55, %v5611_v54  ;;  %v2563_v21 = vmul.f32 %v3384_v52, %v2562_v39  ;;  %v2043_v39 = vadd.f32 %v2010_v62, %v1785_v13 }
 0x65f   : > { %2831 = vst [vmem:[%s4905_s20 + $0x98] sm:$0xff] %v2799_v0  ;;  %v2728_v4 = vpop.permute.xlu2 %2727  ;;  %v2564_v45 = vadd.f32 %v3384_v52, %v2563_v21 }
 0x660   : > { %v2801_v2 = vmul.f32 %v2728_v4, %v2033_v40 }
 0x661   : > { %v2568_v25 = vsel %vm2567_vm6, %v3384_v52, %v2564_v45  ;;  %v5628_v52 = vld [vmem:[#allocation47_spill] sm:$0xff] }
 0x662   : > { %2833 = vst [vmem:[%s4905_s20 + $0xa8] sm:$0xff] %v2801_v2  ;;  %v2573_v48 = vsel %vm2570_vm7, %v2572_v8, %v2568_v25  ;;  %v1995_v56 = vadd.f32 %v5629_v50, %v5628_v52 }
 0x663   : > { %2772 = vperm.xlu2 %3126, %v2573_v48  }
 0x664   : > { %v2733_v57 = vpop.permute.xlu1 %2732  ;;  %v2038_v21 = vadd.f32 %v1995_v56, %v1780_v34 }
 0x665   : > { %v2802_v63 = vmul.f32 %v2733_v57, %v2034_v29 }
 0x667   : > { %2834 = vst [vmem:[%s4905_s20 + $0xb0] sm:$0xff] %v2802_v63  ;;  %v2743_v59 = vpop.permute.xlu2 %2742 }
 0x668   : > { %v2804_v35 = vmul.f32 %v2743_v59, %v2036_v61 }
 0x66a   : > { %2836 = vst [vmem:[%s4905_s20 + $0xc0] sm:$0xff] %v2804_v35 }
 0x66c   : > { %v2748_v15 = vpop.permute.xlu1 %2747 }
 0x66d   : > { %v2805_v23 = vmul.f32 %v2748_v15, %v2037_v20 }
 0x66f   : > { %2837 = vst [vmem:[%s4905_s20 + $0xc8] sm:$0xff] %v2805_v23 }
 0x674   : > { %v2763_v10 = vpop.permute.xlu1 %2762 }
 0x675   : > { %v2808_v31 = vmul.f32 %v2763_v10, %v2040_v1 }
 0x677   : > { %2840 = vst [vmem:[%s4905_s20 + $0xe0] sm:$0xff] %v2808_v31 }
 0x67c   : > { %v2758_v55 = vpop.permute.xlu2 %2757  ;;  %v2778_v16 = vpop.permute.xlu1 %2777 }
 0x67d   : > { %v2807_v54 = vmul.f32 %v2758_v55, %v2039_v22  ;;  %v2811_v0 = vmul.f32 %v2778_v16, %v2043_v39 }
 0x67f   : > { %2839 = vst [vmem:[%s4905_s20 + $0xd8] sm:$0xff] %v2807_v54  ;;  %v2753_v11 = vpop.permute.xlu0 %2752 }
 0x680   : > { %2843 = vst [vmem:[%s4905_s20 + $0xf8] sm:$0xff] %v2811_v0  ;;  %v2806_v40 = vmul.f32 %v2753_v11, %v2038_v21 }
 0x682   : > { %2838 = vst [vmem:[%s4905_s20 + $0xd0] sm:$0xff] %v2806_v40 }
 0x6bd   : > { %v2773_v7 = vpop.permute.xlu2 %2772 }
 0x6be   : > { %v2810_v30 = vmul.f32 %v2773_v7, %v4983_v14 }
 0x6c0   : > { %2842 = vst [vmem:[%s4905_s20 + $0xf0] sm:$0xff] %v2810_v30 }
 0x6c2   : > { %v2768_v27 = vpop.permute.xlu0 %2767 }
 0x6c3   : > { %v2809_v4 = vmul.f32 %v2768_v27, %v4974_v37 }
 0x6c5   : > { %2841 = vst [vmem:[%s4905_s20 + $0xe8] sm:$0xff] %v2809_v4 }
 0x6c6   : > { %3502 = shalt.err (!%p3499_p11)
}
 0x6c7   : > { %s3585_s23 = smov 128   ;;  %s3586_s25 = smov 256  }
 0x6c8   : > { %s3587_s1 = smov 8  }
 0x6c9   : > { %3035 = dma.vmem_to_hbm [thread:$0]  (%p3677_p9), %s2862_s26, 4096, %s2864_s8, %s2845_s16, %s3585_s23, %s3586_s25, %s3587_s1  }
 0x6ca PF: > { %s5631_s14 = sld [smem:[#allocation19_spill]] }
 0x6cb   : > { %s5632_s5 = sld [smem:[#allocation15_spill]] }
 0x6d0   : > { %p3052_p13 = scmp.ge.s32.totalorder %s5631_s14, 2 }
 0x6d1   : > { %s2878_s17 = sand.u32 1, %s5632_s5  }
 0x6d2   : > { %p3048_p0 = pnand %p3052_p13, %p3683_p12  ;;  %s2879_s18 = scalar_lea.sflag [#allocation7], %s2878_s17 }
 0x6d4   : > { %p3049_p1 = pneg %p3048_p0 }
 0x6d6   : > { %3544 = dma.done.wait (%p3049_p1), %s2879_s18, 4096  }
 0x6d7   : > { %3546 = vsyncadd (%p3049_p1), %s2879_s18, 4294963200  ;;  %s22_s19 = sadd.s32 1, %s5631_s14   ;;  %s5634_s20 = sld [smem:[#allocation16_spill]] }
 0x6d8   : > { %p19_p2 = scmp.ge.s32.totalorder %s22_s19, 6   ;;  %s5635_s14 = sld [smem:[#allocation23_spill]] }
 0x6d9   : > { %s5636_s15 = sld [smem:[#allocation17_spill]]  ;;  %s5640_s12 = smov %s3553_s13 }
 0x6da   : > { %s5637_s16 = sld [smem:[#allocation18_spill]]  ;;  %21 = sbr.rel (!%p19_p2) target bundleno = 11 (0xb), region = 101 }
 0x6db   : > { %s5638_s17 = sld [smem:[#allocation20_spill]] }
 0x6dc   : > { %s5639_s18 = sld [smem:[#allocation21_spill]] }
 0x6dd   : > { %s5641_s13 = smov %s5634_s20 }
 0x6df   :  { %2885 = vsyncpa [#allocation6], 1 }
 0x6e0   :  { %2887 = vsyncpa [#allocation6 + $0x1], 1 }
 0x6e1   :  { %2888 = vsyncpa [#allocation9], 1 }
 0x6e2   :  { %2890 = vsyncpa [#allocation9 + $0x1], 1 }
 0x6e3   :  { %2891 = vsyncpa [#allocation7], 1 }
 0x6e4   :  { %2893 = vsyncpa [#allocation7 + $0x1], 1 }

</bundles_post_ra>
